<compile_context>
chip_gen: v5e
topology: v5e:2x2
jax: 0.10.0
libtpu: 0.0.40
codegen_flags: <defaults>
</compile_context>

<pallas_src>
import functools

import numpy as np

import jax
import jax.numpy as jnp
from jax import lax
from jax.experimental import pallas as pl
from jax.experimental.pallas import tpu as pltpu


def _softplus(x):
    # Numerically-stable log(1 + exp(x)), matching F.softplus semantics.
    return jnp.maximum(x, 0.0) + jnp.log1p(jnp.exp(-jnp.abs(x)))


def _circle_loss_kernel(anchor_ref, positive_ref, dk_ref,       # inputs
                        dists_ref, stats_ref,                   # outputs
                        b_hat_scr, sum_b_scr, col_pos_scr, col_neg_scr,
                        loss_col_scr, acc_cnt_scr,              # scratch
                        *, log_scale, safe_radius, pos_margin, neg_margin,
                        n_total, tile_m):
    t = pl.program_id(0)
    n_tiles = pl.num_programs(0)
    N = n_total
    TILE_M = tile_m

    # Compile-time logsumexp shifts: dists in [0, 2]  =>
    #   pos_logits <= log_scale*(2 - pos_margin)^2,  neg_logits <= log_scale*neg_margin^2
    # (masked entries are exactly 0, so clamp the bound at 0).
    pos_shift = max(0.0, float(log_scale) * (2.0 - float(pos_margin)) ** 2)
    neg_shift = max(0.0, float(log_scale) * float(neg_margin) ** 2)

    # ---- one-time setup: normalize `positive`, zero the accumulators -------
    @pl.when(t == 0)
    def _():
        b = positive_ref[...].astype(jnp.float32)                 # (N, D)
        b_hat = b * lax.rsqrt(jnp.sum(b * b, axis=-1, keepdims=True))
        b_hat_scr[...] = b_hat
        sum_b_scr[...] = jnp.sum(b_hat, axis=0, keepdims=True)    # (1, D)
        col_pos_scr[...] = jnp.zeros_like(col_pos_scr)
        col_neg_scr[...] = jnp.zeros_like(col_neg_scr)
        loss_col_scr[...] = jnp.zeros_like(loss_col_scr)
        acc_cnt_scr[...] = jnp.zeros_like(acc_cnt_scr)

    # ---- cosine distances for this row tile (f32 NT matmul on the MXU) -----
    a = anchor_ref[...].astype(jnp.float32)                       # (TILE_M, D)
    a_hat = a * lax.rsqrt(jnp.sum(a * a, axis=-1, keepdims=True))
    b_hat = b_hat_scr[...]                                        # (N, D)
    cos = lax.dot_general(a_hat, b_hat,
                          dimension_numbers=(((1,), (1,)), ((), ())),
                          preferred_element_type=jnp.float32)     # (TILE_M, N)
    dists = 1.0 - cos
    dists_ref[...] = dists

    # ---- O(TILE_M * D) analytic per-row stats (no extra (N, N) passes) -----
    row0 = pl.multiple_of(t * TILE_M, TILE_M)
    b_hat_tile = b_hat_scr[pl.ds(row0, TILE_M), :]                # (TILE_M, D)
    ab = a_hat * b_hat_tile                                       # (TILE_M, D)
    # sublane orientation (TILE_M, 1): used against closest_negative (accuracy)
    fp_sub = jnp.maximum(1.0 - jnp.sum(ab, axis=-1, keepdims=True), 0.0)
    # lane orientation (1, TILE_M): for the packed stats output
    ones_row = jnp.ones((1, ab.shape[-1]), jnp.float32)
    diag_cos_lane = lax.dot_general(ones_row, ab,
                                    dimension_numbers=(((1,), (1,)), ((), ())),
                                    preferred_element_type=jnp.float32)
    fp_lane = jnp.maximum(1.0 - diag_cos_lane, 0.0)               # (1, TILE_M)
    row_sum_lane = float(N) - lax.dot_general(
        sum_b_scr[...], a_hat,
        dimension_numbers=(((1,), (1,)), ((), ())),
        preferred_element_type=jnp.float32)                       # (1, TILE_M)
    an_lane = (row_sum_lane - fp_lane) / float(N - 1)             # (1, TILE_M)

    # ---- closest negative / accuracy (needs the row min of dists) ----------
    row_ids = lax.broadcasted_iota(jnp.int32, (TILE_M, N), 0) + row0
    col_ids = lax.broadcasted_iota(jnp.int32, (TILE_M, N), 1)
    is_diag = row_ids == col_ids
    neg_mask = dk_ref[...] > safe_radius

    closest_negative = jnp.min(jnp.where(is_diag, 1e5, dists),
                               axis=-1, keepdims=True)            # (TILE_M, 1)
    acc_cnt_scr[...] += jnp.sum(
        ((fp_sub - closest_negative) < 0.0).astype(jnp.float32), keepdims=True)

    # ---- positive branch (fully reduced before the negative branch so that
    #      only one (TILE_M, N) exp result is live at a time) ----------------
    pw = jnp.maximum(dists - pos_margin, 0.0)
    pos_logits = jnp.where(neg_mask, 0.0, log_scale * (dists - pos_margin) * pw)
    pos_e = jnp.exp(pos_logits - pos_shift)                       # one EUP pass
    lse_pos_row = jnp.log(jnp.sum(pos_e, axis=-1, keepdims=True)) + pos_shift
    col_pos_scr[...] += jnp.sum(pos_e, axis=0, keepdims=True)     # (1, N)

    # ---- negative branch ----------------------------------------------------
    nw = jnp.maximum(neg_margin - dists, 0.0)
    neg_logits = jnp.where(neg_mask, log_scale * (neg_margin - dists) * nw, 0.0)
    neg_e = jnp.exp(neg_logits - neg_shift)                       # one EUP pass
    lse_neg_row = jnp.log(jnp.sum(neg_e, axis=-1, keepdims=True)) + neg_shift
    col_neg_scr[...] += jnp.sum(neg_e, axis=0, keepdims=True)     # (1, N)

    loss_col = _softplus(lse_pos_row + lse_neg_row) / log_scale   # (TILE_M, 1)
    loss_col_scr[...] += jnp.sum(loss_col, keepdims=True)         # (1, 1)

    # ---- per-tile lane-dense stats slab (all 8 sublanes, full-lane store) ---
    srow = lax.broadcasted_iota(jnp.int32, (8, TILE_M), 0)
    slab = jnp.where(srow == 0, fp_lane,
           jnp.where(srow == 1, an_lane, 0.0)).astype(jnp.float32)
    stats_ref[:, pl.ds(row0, TILE_M)] = slab

    # ---- finalize on the last tile: column LSE, loss mean, accuracy --------
    @pl.when(t == n_tiles - 1)
    def _():
        lse_pos_col = jnp.log(col_pos_scr[...]) + pos_shift       # (1, N)
        lse_neg_col = jnp.log(col_neg_scr[...]) + neg_shift       # (1, N)
        loss_row = _softplus(lse_pos_col + lse_neg_col) / log_scale
        # mean(loss_col_i + loss_row_i) == (sum(loss_col) + sum(loss_row)) / N
        loss_mean = (loss_col_scr[0, 0] + jnp.sum(loss_row)) / float(N)
        accuracy = acc_cnt_scr[0, 0] * 100.0 / float(N)
        stats_ref[2:3, :] = jnp.full((1, N), loss_mean, jnp.float32)
        stats_ref[3:4, :] = jnp.full((1, N), accuracy, jnp.float32)


def _choose_tile_m(N, vmem_budget_bytes):
    """Largest row tile (N itself, or a 128-multiple divisor of N) fitting VMEM."""
    per_row = 12 * N * 4            # ~live + double-buffered (., N) f32 rows
    max_rows = max(1, vmem_budget_bytes // per_row)
    if N <= 128 or N <= max_rows:
        return N
    best = None
    t = 128
    while t <= N:
        if N % t == 0 and t <= max_rows:
            best = t
        t += 128
    return best if best is not None else N


def circle_loss(anchor, positive, dist_keypts, *,
                log_scale=10.0, safe_radius=0.1,
                pos_margin=0.1, neg_margin=1.4):
    """JAX/Pallas equivalent of CircleLoss(dist_type='cosine').forward."""
    N, D = anchor.shape
    assert positive.shape == (N, D) and dist_keypts.shape == (N, N)

    try:
        vmem_cap = int(pltpu.get_tpu_info().vmem_capacity_bytes)
    except Exception:
        vmem_cap = 64 * 1024 * 1024
    vmem_budget = int(vmem_cap * 0.70)          # leave headroom (v7x: ~45 MiB)

    tile_m = _choose_tile_m(N, vmem_budget)
    grid = (N // tile_m,)

    kernel = functools.partial(
        _circle_loss_kernel,
        log_scale=float(log_scale), safe_radius=float(safe_radius),
        pos_margin=float(pos_margin), neg_margin=float(neg_margin),
        n_total=N, tile_m=tile_m)

    out_shape = (
        jax.ShapeDtypeStruct((N, N), jnp.float32),   # dists (lane-dense)
        jax.ShapeDtypeStruct((8, N), jnp.float32),   # [fp; avg_neg; loss; acc; 0..]
    )
    grid_spec = pltpu.PrefetchScalarGridSpec(
        num_scalar_prefetch=0,
        grid=grid,
        in_specs=[
            pl.BlockSpec((tile_m, D), lambda i: (i, 0)),     # anchor row tile
            pl.BlockSpec((N, D), lambda i: (0, 0)),          # positive (resident)
            pl.BlockSpec((tile_m, N), lambda i: (i, 0)),     # dist_keypts row tile
        ],
        out_specs=(
            pl.BlockSpec((tile_m, N), lambda i: (i, 0)),     # dists row tile
            pl.BlockSpec((8, N), lambda i: (0, 0)),          # stats (resident)
        ),
        scratch_shapes=[
            pltpu.VMEM((N, D), jnp.float32),    # b_hat (normalized once)
            pltpu.VMEM((1, D), jnp.float32),    # sum of b_hat rows
            pltpu.VMEM((1, N), jnp.float32),    # column sum-exp, positive branch
            pltpu.VMEM((1, N), jnp.float32),    # column sum-exp, negative branch
            pltpu.VMEM((1, 1), jnp.float32),    # running sum of loss_col
            pltpu.VMEM((1, 1), jnp.float32),    # running count(diff < 0)
        ],
    )

    dists, stats = pl.pallas_call(
        kernel,
        out_shape=out_shape,
        grid_spec=grid_spec,
        compiler_params=pltpu.CompilerParams(
            dimension_semantics=("arbitrary",),   # column LSE accumulates across tiles
            vmem_limit_bytes=vmem_budget),
    )(anchor, positive, dist_keypts)

    loss = stats[2, 0]
    accuracy = stats[3, 0]
    furthest_positive = stats[0]   # (N,)
    average_negative = stats[1]    # (N,)
    # Mirror the PyTorch return tuple (tolist() replaced by arrays).
    return loss, accuracy, furthest_positive, average_negative, 0, dists


def _circle_loss_reference(anchor, positive, dist_keypts, *, log_scale=10.0,
                           safe_radius=0.1, pos_margin=0.1, neg_margin=1.4):
    """Pure-JAX transcription of the PyTorch reference (for a sanity check)."""
    a = anchor / jnp.linalg.norm(anchor, axis=-1, keepdims=True)
    b = positive / jnp.linalg.norm(positive, axis=-1, keepdims=True)
    dists = 1.0 - a @ b.T
    n = dists.shape[0]
    pos_mask = jnp.eye(n, dtype=jnp.float32)
    neg_mask = (dist_keypts > safe_radius).astype(jnp.float32)
    furthest_positive = jnp.max(dists * pos_mask, axis=1)
    closest_negative = jnp.min(dists + 1e5 * pos_mask, axis=1)
    average_negative = (jnp.sum(dists, axis=-1) - furthest_positive) / (n - 1)
    diff = furthest_positive - closest_negative
    accuracy = jnp.sum(diff < 0) * 100.0 / n
    pos = dists - 1e5 * neg_mask
    pos_w = jnp.maximum(pos - pos_margin, 0.0)
    pos_logits = log_scale * (pos - pos_margin) * pos_w
    neg = dists + 1e5 * (1.0 - neg_mask)
    neg_w = jnp.maximum(neg_margin - neg, 0.0)
    neg_logits = log_scale * (neg_margin - neg) * neg_w
    lse_pr = jax.scipy.special.logsumexp(pos_logits, axis=-1)
    lse_pc = jax.scipy.special.logsumexp(pos_logits, axis=-2)
    lse_nr = jax.scipy.special.logsumexp(neg_logits, axis=-1)
    lse_nc = jax.scipy.special.logsumexp(neg_logits, axis=-2)
    loss_col = jax.nn.softplus(lse_pr + lse_nr) / log_scale
    loss_row = jax.nn.softplus(lse_pc + lse_nc) / log_scale
    return (jnp.mean(loss_col + loss_row), accuracy,
            furthest_positive, average_negative, dists)


if __name__ == "__main__":
    key = jax.random.PRNGKey(0)
    k1, k2, k3 = jax.random.split(key, 3)
    N, D = 128, 32   # N keypoint correspondences, D-dim descriptors
    anchor = jax.random.normal(k1, (N, D), dtype=jnp.float32)
    positive = anchor + 0.05 * jax.random.normal(k2, (N, D), dtype=jnp.float32)
    dist_keypts = jax.random.uniform(k3, (N, N), dtype=jnp.float32,
                                     minval=0.0, maxval=2.0)

    loss, acc, furthest_pos, avg_neg, _zero, dists = circle_loss(
        anchor, positive, dist_keypts)
    jax.block_until_ready((loss, acc, furthest_pos, avg_neg, dists))

    # Light tolerance check against a pure-JAX transcription of the reference.
    r_loss, r_acc, r_fp, r_an, r_dists = _circle_loss_reference(
        anchor, positive, dist_keypts)
    np.testing.assert_allclose(np.asarray(dists), np.asarray(r_dists),
                               rtol=1e-2, atol=1e-2)
    np.testing.assert_allclose(np.asarray(furthest_pos), np.asarray(r_fp),
                               rtol=1e-2, atol=1e-2)
    np.testing.assert_allclose(np.asarray(avg_neg), np.asarray(r_an),
                               rtol=1e-2, atol=1e-2)
    np.testing.assert_allclose(float(loss), float(r_loss), rtol=2e-2, atol=2e-2)
    np.testing.assert_allclose(float(acc), float(r_acc), atol=1.0)

    print("KERNEL_OK")
</pallas_src>

<mosaic_0001>
module attributes {stable_mosaic.version = 11 : i64} {
  func.func @_circle_loss_kernel(%arg0: i32, %arg1: memref<128x32xf32, #tpu.memory_space<vmem>>, %arg2: memref<128x32xf32, #tpu.memory_space<vmem>>, %arg3: memref<128x128xf32, #tpu.memory_space<vmem>>, %arg4: memref<128x128xf32, #tpu.memory_space<vmem>>, %arg5: memref<8x128xf32, #tpu.memory_space<vmem>>, %arg6: memref<128x32xf32, #tpu.memory_space<vmem>>, %arg7: memref<1x32xf32, #tpu.memory_space<vmem>>, %arg8: memref<1x128xf32, #tpu.memory_space<vmem>>, %arg9: memref<1x128xf32, #tpu.memory_space<vmem>>, %arg10: memref<1x1xf32, #tpu.memory_space<vmem>>, %arg11: memref<1x1xf32, #tpu.memory_space<vmem>>) attributes {dimension_semantics = [#tpu.dimension_semantics<arbitrary>], iteration_bounds = array<i64: 1>, scalar_prefetch = 0 : i64, scratch_operands = 6 : i64, tpu.core_type = #tpu.core_type<tc>, window_params = [{transform_indices = @transform_0, window_bounds = array<i64: 128, 32>}, {pipeline_mode = #tpu.pipeline_mode<synchronous>, transform_indices = @transform_1, window_bounds = array<i64: 128, 32>}, {transform_indices = @transform_2, window_bounds = array<i64: 128, 128>}, {transform_indices = @transform_3, window_bounds = array<i64: 128, 128>}, {pipeline_mode = #tpu.pipeline_mode<synchronous>, transform_indices = @transform_4, window_bounds = array<i64: 8, 128>}]} {
    %c0_i32 = arith.constant 0 : i32
    %0 = arith.cmpi eq, %arg0, %c0_i32 : i32
    %1 = arith.extui %0 : i1 to i32
    %c0_i32_0 = arith.constant 0 : i32
    %2 = arith.cmpi ne, %1, %c0_i32_0 : i32
    scf.if %2 {
      %c0_71 = arith.constant 0 : index
      %c0_72 = arith.constant 0 : index
      %148 = vector.load %arg2[%c0_71, %c0_72] : memref<128x32xf32, #tpu.memory_space<vmem>>, vector<128x32xf32>
      %149 = arith.mulf %148, %148 : vector<128x32xf32>
      %cst_73 = arith.constant dense<0.000000e+00> : vector<128xf32>
      %150 = vector.multi_reduction <add>, %149, %cst_73 [1] : vector<128x32xf32> to vector<128xf32>
      %151 = vector.shape_cast %150 : vector<128xf32> to vector<128x1xf32>
      %152 = math.rsqrt %151 : vector<128x1xf32>
      %153 = vector.broadcast %152 : vector<128x1xf32> to vector<128x32xf32>
      %154 = arith.mulf %148, %153 : vector<128x32xf32>
      %c0_74 = arith.constant 0 : index
      %c0_75 = arith.constant 0 : index
      %155 = vector.load %arg6[%c0_74, %c0_75] : memref<128x32xf32, #tpu.memory_space<vmem>>, vector<128x32xf32>
      tpu.vector_store %arg6[%c0_74, %c0_75], %154 {strides = array<i32>} : memref<128x32xf32, #tpu.memory_space<vmem>>, vector<128x32xf32>,
      %cst_76 = arith.constant dense<0.000000e+00> : vector<32xf32>
      %156 = vector.multi_reduction <add>, %154, %cst_76 [0] : vector<128x32xf32> to vector<32xf32>
      %157 = vector.shape_cast %156 : vector<32xf32> to vector<1x32xf32>
      %c0_77 = arith.constant 0 : index
      %c0_78 = arith.constant 0 : index
      %158 = vector.load %arg7[%c0_77, %c0_78] : memref<1x32xf32, #tpu.memory_space<vmem>>, vector<1x32xf32>
      tpu.vector_store %arg7[%c0_77, %c0_78], %157 {strides = array<i32>} : memref<1x32xf32, #tpu.memory_space<vmem>>, vector<1x32xf32>,
      %cst_79 = arith.constant 0.000000e+00 : f32
      %159 = vector.broadcast %cst_79 : f32 to vector<1x128xf32>
      %c0_80 = arith.constant 0 : index
      %c0_81 = arith.constant 0 : index
      %160 = vector.load %arg8[%c0_80, %c0_81] : memref<1x128xf32, #tpu.memory_space<vmem>>, vector<1x128xf32>
      tpu.vector_store %arg8[%c0_80, %c0_81], %159 {strides = array<i32>} : memref<1x128xf32, #tpu.memory_space<vmem>>, vector<1x128xf32>,
      %cst_82 = arith.constant 0.000000e+00 : f32
      %161 = vector.broadcast %cst_82 : f32 to vector<1x128xf32>
      %c0_83 = arith.constant 0 : index
      %c0_84 = arith.constant 0 : index
      %162 = vector.load %arg9[%c0_83, %c0_84] : memref<1x128xf32, #tpu.memory_space<vmem>>, vector<1x128xf32>
      tpu.vector_store %arg9[%c0_83, %c0_84], %161 {strides = array<i32>} : memref<1x128xf32, #tpu.memory_space<vmem>>, vector<1x128xf32>,
      %cst_85 = arith.constant 0.000000e+00 : f32
      %163 = vector.broadcast %cst_85 : f32 to vector<1x1xf32>
      %c0_86 = arith.constant 0 : index
      %c0_87 = arith.constant 0 : index
      %164 = vector.load %arg10[%c0_86, %c0_87] : memref<1x1xf32, #tpu.memory_space<vmem>>, vector<1x1xf32>
      tpu.vector_store %arg10[%c0_86, %c0_87], %163 {strides = array<i32>} : memref<1x1xf32, #tpu.memory_space<vmem>>, vector<1x1xf32>,
      %cst_88 = arith.constant 0.000000e+00 : f32
      %165 = vector.broadcast %cst_88 : f32 to vector<1x1xf32>
      %c0_89 = arith.constant 0 : index
      %c0_90 = arith.constant 0 : index
      %166 = vector.load %arg11[%c0_89, %c0_90] : memref<1x1xf32, #tpu.memory_space<vmem>>, vector<1x1xf32>
      tpu.vector_store %arg11[%c0_89, %c0_90], %165 {strides = array<i32>} : memref<1x1xf32, #tpu.memory_space<vmem>>, vector<1x1xf32>,
    } else {
    }
    %c0 = arith.constant 0 : index
    %c0_1 = arith.constant 0 : index
    %3 = vector.load %arg1[%c0, %c0_1] : memref<128x32xf32, #tpu.memory_space<vmem>>, vector<128x32xf32>
    %4 = arith.mulf %3, %3 : vector<128x32xf32>
    %cst = arith.constant dense<0.000000e+00> : vector<128xf32>
    %5 = vector.multi_reduction <add>, %4, %cst [1] : vector<128x32xf32> to vector<128xf32>
    %6 = vector.shape_cast %5 : vector<128xf32> to vector<128x1xf32>
    %7 = math.rsqrt %6 : vector<128x1xf32>
    %8 = vector.broadcast %7 : vector<128x1xf32> to vector<128x32xf32>
    %9 = arith.mulf %3, %8 : vector<128x32xf32>
    %c0_2 = arith.constant 0 : index
    %c0_3 = arith.constant 0 : index
    %10 = vector.load %arg6[%c0_2, %c0_3] : memref<128x32xf32, #tpu.memory_space<vmem>>, vector<128x32xf32>
    %cst_4 = arith.constant dense<0.000000e+00> : vector<128x128xf32>
    %11 = tpu.matmul %9, %10, %cst_4 {dimension_numbers = #tpu.dot_dimension_numbers<[1], [1], [0], [0], [0, 0, 1, 0], [], []>} : vector<128x32xf32>, vector<128x32xf32>, vector<128x128xf32> -> vector<128x128xf32>
    %cst_5 = arith.constant 1.000000e+00 : f32
    %12 = vector.broadcast %cst_5 : f32 to vector<128x128xf32>
    %13 = arith.subf %12, %11 : vector<128x128xf32>
    %c0_6 = arith.constant 0 : index
    %c0_7 = arith.constant 0 : index
    %14 = vector.load %arg4[%c0_6, %c0_7] : memref<128x128xf32, #tpu.memory_space<vmem>>, vector<128x128xf32>
    tpu.vector_store %arg4[%c0_6, %c0_7], %13 {strides = array<i32>} : memref<128x128xf32, #tpu.memory_space<vmem>>, vector<128x128xf32>,
    %c128_i32 = arith.constant 128 : i32
    %15 = arith.muli %arg0, %c128_i32 : i32
    %16 = tpu.assume_multiple %15, 128 : i32
    %17 = arith.index_cast %16 : i32 to index
    %c0_8 = arith.constant 0 : index
    %18 = vector.load %arg6[%17, %c0_8] : memref<128x32xf32, #tpu.memory_space<vmem>>, vector<128x32xf32>
    %19 = arith.mulf %9, %18 : vector<128x32xf32>
    %cst_9 = arith.constant dense<0.000000e+00> : vector<128xf32>
    %20 = vector.multi_reduction <add>, %19, %cst_9 [1] : vector<128x32xf32> to vector<128xf32>
    %21 = vector.shape_cast %20 : vector<128xf32> to vector<128x1xf32>
    %cst_10 = arith.constant 1.000000e+00 : f32
    %22 = vector.broadcast %cst_10 : f32 to vector<128x1xf32>
    %23 = arith.subf %22, %21 : vector<128x1xf32>
    %cst_11 = arith.constant 0.000000e+00 : f32
    %24 = vector.broadcast %cst_11 : f32 to vector<128x1xf32>
    %25 = arith.maximumf %23, %24 : vector<128x1xf32>
    %cst_12 = arith.constant 1.000000e+00 : f32
    %26 = vector.broadcast %cst_12 : f32 to vector<1x32xf32>
    %cst_13 = arith.constant dense<0.000000e+00> : vector<1x128xf32>
    %27 = tpu.matmul %26, %19, %cst_13 {dimension_numbers = #tpu.dot_dimension_numbers<[1], [1], [0], [0], [0, 0, 1, 0], [], []>} : vector<1x32xf32>, vector<128x32xf32>, vector<1x128xf32> -> vector<1x128xf32>
    %cst_14 = arith.constant 1.000000e+00 : f32
    %28 = vector.broadcast %cst_14 : f32 to vector<1x128xf32>
    %29 = arith.subf %28, %27 : vector<1x128xf32>
    %cst_15 = arith.constant 0.000000e+00 : f32
    %30 = vector.broadcast %cst_15 : f32 to vector<1x128xf32>
    %31 = arith.maximumf %29, %30 : vector<1x128xf32>
    %c0_16 = arith.constant 0 : index
    %c0_17 = arith.constant 0 : index
    %32 = vector.load %arg7[%c0_16, %c0_17] : memref<1x32xf32, #tpu.memory_space<vmem>>, vector<1x32xf32>
    %cst_18 = arith.constant dense<0.000000e+00> : vector<1x128xf32>
    %33 = tpu.matmul %32, %9, %cst_18 {dimension_numbers = #tpu.dot_dimension_numbers<[1], [1], [0], [0], [0, 0, 1, 0], [], []>} : vector<1x32xf32>, vector<128x32xf32>, vector<1x128xf32> -> vector<1x128xf32>
    %cst_19 = arith.constant 1.280000e+02 : f32
    %34 = vector.broadcast %cst_19 : f32 to vector<1x128xf32>
    %35 = arith.subf %34, %33 : vector<1x128xf32>
    %36 = arith.subf %35, %31 : vector<1x128xf32>
    %cst_20 = arith.constant 1.270000e+02 : f32
    %37 = vector.broadcast %cst_20 : f32 to vector<1x128xf32>
    %38 = arith.divf %36, %37 : vector<1x128xf32>
    %39 = tpu.iota {dimensions = array<i32: 0>} : vector<128x128xi32>
    %40 = vector.broadcast %16 : i32 to vector<128x128xi32>
    %41 = arith.addi %39, %40 : vector<128x128xi32>
    %42 = tpu.iota {dimensions = array<i32: 1>} : vector<128x128xi32>
    %43 = arith.cmpi eq, %41, %42 : vector<128x128xi32>
    %c0_21 = arith.constant 0 : index
    %c0_22 = arith.constant 0 : index
    %44 = vector.load %arg3[%c0_21, %c0_22] : memref<128x128xf32, #tpu.memory_space<vmem>>, vector<128x128xf32>
    %cst_23 = arith.constant 1.000000e-01 : f32
    %45 = vector.broadcast %cst_23 : f32 to vector<128x128xf32>
    %46 = arith.cmpf ogt, %44, %45 : vector<128x128xf32>
    %cst_24 = arith.constant 1.000000e+05 : f32
    %47 = vector.broadcast %cst_24 : f32 to vector<128x128xf32>
    %48 = arith.select %43, %47, %13 : vector<128x128xi1>, vector<128x128xf32>
    %cst_25 = arith.constant dense<0x7F800000> : vector<128xf32>
    %49 = vector.multi_reduction <minimumf>, %48, %cst_25 [1] : vector<128x128xf32> to vector<128xf32>
    %50 = vector.shape_cast %49 : vector<128xf32> to vector<128x1xf32>
    %c0_26 = arith.constant 0 : index
    %c0_27 = arith.constant 0 : index
    %51 = vector.load %arg11[%c0_26, %c0_27] : memref<1x1xf32, #tpu.memory_space<vmem>>, vector<1x1xf32>
    %52 = arith.subf %25, %50 : vector<128x1xf32>
    %cst_28 = arith.constant 0.000000e+00 : f32
    %53 = vector.broadcast %cst_28 : f32 to vector<128x1xf32>
    %54 = arith.cmpf olt, %52, %53 : vector<128x1xf32>
    %55 = arith.extui %54 : vector<128x1xi1> to vector<128x1xi32>
    %56 = arith.sitofp %55 : vector<128x1xi32> to vector<128x1xf32>
    %57 = vector.shape_cast %56 : vector<128x1xf32> to vector<1x128x1xf32>
    %cst_29 = arith.constant dense<0.000000e+00> : vector<1xf32>
    %58 = vector.multi_reduction <add>, %57, %cst_29 [1, 2] : vector<1x128x1xf32> to vector<1xf32>
    %59 = vector.shape_cast %58 : vector<1xf32> to vector<1x1x1xf32>
    %60 = vector.extract %59[0, 0, 0] : f32 from vector<1x1x1xf32>
    %61 = vector.broadcast %60 : f32 to vector<1x1xf32>
    %62 = arith.addf %51, %61 : vector<1x1xf32>
    %c0_30 = arith.constant 0 : index
    %c0_31 = arith.constant 0 : index
    %63 = vector.load %arg11[%c0_30, %c0_31] : memref<1x1xf32, #tpu.memory_space<vmem>>, vector<1x1xf32>
    tpu.vector_store %arg11[%c0_30, %c0_31], %62 {strides = array<i32>} : memref<1x1xf32, #tpu.memory_space<vmem>>, vector<1x1xf32>,
    %cst_32 = arith.constant 1.000000e-01 : f32
    %64 = vector.broadcast %cst_32 : f32 to vector<128x128xf32>
    %65 = arith.subf %13, %64 : vector<128x128xf32>
    %cst_33 = arith.constant 0.000000e+00 : f32
    %66 = vector.broadcast %cst_33 : f32 to vector<128x128xf32>
    %67 = arith.maximumf %65, %66 : vector<128x128xf32>
    %cst_34 = arith.constant 1.000000e-01 : f32
    %68 = vector.broadcast %cst_34 : f32 to vector<128x128xf32>
    %69 = arith.subf %13, %68 : vector<128x128xf32>
    %cst_35 = arith.constant 1.000000e+01 : f32
    %70 = vector.broadcast %cst_35 : f32 to vector<128x128xf32>
    %71 = arith.mulf %70, %69 : vector<128x128xf32>
    %72 = arith.mulf %71, %67 : vector<128x128xf32>
    %cst_36 = arith.constant 0.000000e+00 : f32
    %73 = vector.broadcast %cst_36 : f32 to vector<128x128xf32>
    %74 = arith.select %46, %73, %72 : vector<128x128xi1>, vector<128x128xf32>
    %cst_37 = arith.constant 3.610000e+01 : f32
    %75 = vector.broadcast %cst_37 : f32 to vector<128x128xf32>
    %76 = arith.subf %74, %75 : vector<128x128xf32>
    %77 = math.exp %76 : vector<128x128xf32>
    %cst_38 = arith.constant dense<0.000000e+00> : vector<128xf32>
    %78 = vector.multi_reduction <add>, %77, %cst_38 [1] : vector<128x128xf32> to vector<128xf32>
    %79 = vector.shape_cast %78 : vector<128xf32> to vector<128x1xf32>
    %80 = math.log %79 : vector<128x1xf32>
    %cst_39 = arith.constant 3.610000e+01 : f32
    %81 = vector.broadcast %cst_39 : f32 to vector<128x1xf32>
    %82 = arith.addf %80, %81 : vector<128x1xf32>
    %c0_40 = arith.constant 0 : index
    %c0_41 = arith.constant 0 : index
    %83 = vector.load %arg8[%c0_40, %c0_41] : memref<1x128xf32, #tpu.memory_space<vmem>>, vector<1x128xf32>
    %cst_42 = arith.constant dense<0.000000e+00> : vector<128xf32>
    %84 = vector.multi_reduction <add>, %77, %cst_42 [0] : vector<128x128xf32> to vector<128xf32>
    %85 = vector.shape_cast %84 : vector<128xf32> to vector<1x128xf32>
    %86 = arith.addf %83, %85 : vector<1x128xf32>
    %c0_43 = arith.constant 0 : index
    %c0_44 = arith.constant 0 : index
    %87 = vector.load %arg8[%c0_43, %c0_44] : memref<1x128xf32, #tpu.memory_space<vmem>>, vector<1x128xf32>
    tpu.vector_store %arg8[%c0_43, %c0_44], %86 {strides = array<i32>} : memref<1x128xf32, #tpu.memory_space<vmem>>, vector<1x128xf32>,
    %cst_45 = arith.constant 1.400000e+00 : f32
    %88 = vector.broadcast %cst_45 : f32 to vector<128x128xf32>
    %89 = arith.subf %88, %13 : vector<128x128xf32>
    %cst_46 = arith.constant 0.000000e+00 : f32
    %90 = vector.broadcast %cst_46 : f32 to vector<128x128xf32>
    %91 = arith.maximumf %89, %90 : vector<128x128xf32>
    %cst_47 = arith.constant 1.400000e+00 : f32
    %92 = vector.broadcast %cst_47 : f32 to vector<128x128xf32>
    %93 = arith.subf %92, %13 : vector<128x128xf32>
    %cst_48 = arith.constant 1.000000e+01 : f32
    %94 = vector.broadcast %cst_48 : f32 to vector<128x128xf32>
    %95 = arith.mulf %94, %93 : vector<128x128xf32>
    %96 = arith.mulf %95, %91 : vector<128x128xf32>
    %cst_49 = arith.constant 0.000000e+00 : f32
    %97 = vector.broadcast %cst_49 : f32 to vector<128x128xf32>
    %98 = arith.select %46, %96, %97 : vector<128x128xi1>, vector<128x128xf32>
    %cst_50 = arith.constant 1.960000e+01 : f32
    %99 = vector.broadcast %cst_50 : f32 to vector<128x128xf32>
    %100 = arith.subf %98, %99 : vector<128x128xf32>
    %101 = math.exp %100 : vector<128x128xf32>
    %cst_51 = arith.constant dense<0.000000e+00> : vector<128xf32>
    %102 = vector.multi_reduction <add>, %101, %cst_51 [1] : vector<128x128xf32> to vector<128xf32>
    %103 = vector.shape_cast %102 : vector<128xf32> to vector<128x1xf32>
    %104 = math.log %103 : vector<128x1xf32>
    %cst_52 = arith.constant 1.960000e+01 : f32
    %105 = vector.broadcast %cst_52 : f32 to vector<128x1xf32>
    %106 = arith.addf %104, %105 : vector<128x1xf32>
    %c0_53 = arith.constant 0 : index
    %c0_54 = arith.constant 0 : index
    %107 = vector.load %arg9[%c0_53, %c0_54] : memref<1x128xf32, #tpu.memory_space<vmem>>, vector<1x128xf32>
    %cst_55 = arith.constant dense<0.000000e+00> : vector<128xf32>
    %108 = vector.multi_reduction <add>, %101, %cst_55 [0] : vector<128x128xf32> to vector<128xf32>
    %109 = vector.shape_cast %108 : vector<128xf32> to vector<1x128xf32>
    %110 = arith.addf %107, %109 : vector<1x128xf32>
    %c0_56 = arith.constant 0 : index
    %c0_57 = arith.constant 0 : index
    %111 = vector.load %arg9[%c0_56, %c0_57] : memref<1x128xf32, #tpu.memory_space<vmem>>, vector<1x128xf32>
    tpu.vector_store %arg9[%c0_56, %c0_57], %110 {strides = array<i32>} : memref<1x128xf32, #tpu.memory_space<vmem>>, vector<1x128xf32>,
    %112 = arith.addf %82, %106 : vector<128x1xf32>
    %cst_58 = arith.constant 0.000000e+00 : f32
    %113 = vector.broadcast %cst_58 : f32 to vector<128x1xf32>
    %114 = arith.maximumf %112, %113 : vector<128x1xf32>
    %115 = math.absf %112 : vector<128x1xf32>
    %cst_59 = arith.constant 0.000000e+00 : f32
    %116 = vector.broadcast %cst_59 : f32 to vector<128x1xf32>
    %117 = arith.subf %116, %115 : vector<128x1xf32>
    %118 = math.exp %117 : vector<128x1xf32>
    %119 = math.log1p %118 : vector<128x1xf32>
    %120 = arith.addf %114, %119 : vector<128x1xf32>
    %cst_60 = arith.constant 1.000000e+01 : f32
    %121 = vector.broadcast %cst_60 : f32 to vector<128x1xf32>
    %122 = arith.divf %120, %121 : vector<128x1xf32>
    %c0_61 = arith.constant 0 : index
    %c0_62 = arith.constant 0 : index
    %123 = vector.load %arg10[%c0_61, %c0_62] : memref<1x1xf32, #tpu.memory_space<vmem>>, vector<1x1xf32>
    %124 = vector.shape_cast %122 : vector<128x1xf32> to vector<1x128x1xf32>
    %cst_63 = arith.constant dense<0.000000e+00> : vector<1xf32>
    %125 = vector.multi_reduction <add>, %124, %cst_63 [1, 2] : vector<1x128x1xf32> to vector<1xf32>
    %126 = vector.shape_cast %125 : vector<1xf32> to vector<1x1x1xf32>
    %127 = vector.extract %126[0, 0, 0] : f32 from vector<1x1x1xf32>
    %128 = vector.broadcast %127 : f32 to vector<1x1xf32>
    %129 = arith.addf %123, %128 : vector<1x1xf32>
    %c0_64 = arith.constant 0 : index
    %c0_65 = arith.constant 0 : index
    %130 = vector.load %arg10[%c0_64, %c0_65] : memref<1x1xf32, #tpu.memory_space<vmem>>, vector<1x1xf32>
    tpu.vector_store %arg10[%c0_64, %c0_65], %129 {strides = array<i32>} : memref<1x1xf32, #tpu.memory_space<vmem>>, vector<1x1xf32>,
    %131 = tpu.iota {dimensions = array<i32: 0>} : vector<8x128xi32>
    %c0_i32_66 = arith.constant 0 : i32
    %132 = vector.broadcast %c0_i32_66 : i32 to vector<8x128xi32>
    %133 = arith.cmpi eq, %131, %132 : vector<8x128xi32>
    %c1_i32 = arith.constant 1 : i32
    %134 = vector.broadcast %c1_i32 : i32 to vector<8x128xi32>
    %135 = arith.cmpi eq, %131, %134 : vector<8x128xi32>
    %cst_67 = arith.constant 0.000000e+00 : f32
    %136 = vector.shape_cast %38 : vector<1x128xf32> to vector<1x128xf32>
    %137 = vector.broadcast %136 : vector<1x128xf32> to vector<8x128xf32>
    %138 = vector.broadcast %cst_67 : f32 to vector<8x128xf32>
    %139 = arith.select %135, %137, %138 : vector<8x128xi1>, vector<8x128xf32>
    %140 = vector.shape_cast %31 : vector<1x128xf32> to vector<1x128xf32>
    %141 = vector.broadcast %140 : vector<1x128xf32> to vector<8x128xf32>
    %142 = arith.select %133, %141, %139 : vector<8x128xi1>, vector<8x128xf32>
    %c0_68 = arith.constant 0 : index
    %143 = arith.index_cast %16 : i32 to index
    %144 = vector.load %arg5[%c0_68, %143] : memref<8x128xf32, #tpu.memory_space<vmem>>, vector<8x128xf32>
    tpu.vector_store %arg5[%c0_68, %143], %142 {strides = array<i32>} : memref<8x128xf32, #tpu.memory_space<vmem>>, vector<8x128xf32>,
    %c0_i32_69 = arith.constant 0 : i32
    %145 = arith.cmpi eq, %arg0, %c0_i32_69 : i32
    %146 = arith.extui %145 : i1 to i32
    %c0_i32_70 = arith.constant 0 : i32
    %147 = arith.cmpi ne, %146, %c0_i32_70 : i32
    scf.if %147 {
      %c0_71 = arith.constant 0 : index
      %c0_72 = arith.constant 0 : index
      %148 = vector.load %arg8[%c0_71, %c0_72] : memref<1x128xf32, #tpu.memory_space<vmem>>, vector<1x128xf32>
      %149 = math.log %148 : vector<1x128xf32>
      %cst_73 = arith.constant 3.610000e+01 : f32
      %150 = vector.broadcast %cst_73 : f32 to vector<1x128xf32>
      %151 = arith.addf %149, %150 : vector<1x128xf32>
      %c0_74 = arith.constant 0 : index
      %c0_75 = arith.constant 0 : index
      %152 = vector.load %arg9[%c0_74, %c0_75] : memref<1x128xf32, #tpu.memory_space<vmem>>, vector<1x128xf32>
      %153 = math.log %152 : vector<1x128xf32>
      %cst_76 = arith.constant 1.960000e+01 : f32
      %154 = vector.broadcast %cst_76 : f32 to vector<1x128xf32>
      %155 = arith.addf %153, %154 : vector<1x128xf32>
      %156 = arith.addf %151, %155 : vector<1x128xf32>
      %cst_77 = arith.constant 0.000000e+00 : f32
      %157 = vector.broadcast %cst_77 : f32 to vector<1x128xf32>
      %158 = arith.maximumf %156, %157 : vector<1x128xf32>
      %159 = math.absf %156 : vector<1x128xf32>
      %cst_78 = arith.constant 0.000000e+00 : f32
      %160 = vector.broadcast %cst_78 : f32 to vector<1x128xf32>
      %161 = arith.subf %160, %159 : vector<1x128xf32>
      %162 = math.exp %161 : vector<1x128xf32>
      %163 = math.log1p %162 : vector<1x128xf32>
      %164 = arith.addf %158, %163 : vector<1x128xf32>
      %cst_79 = arith.constant 1.000000e+01 : f32
      %165 = vector.broadcast %cst_79 : f32 to vector<1x128xf32>
      %166 = arith.divf %164, %165 : vector<1x128xf32>
      %c0_80 = arith.constant 0 : index
      %c0_81 = arith.constant 0 : index
      %167 = vector.load %arg10[%c0_80, %c0_81] : memref<1x1xf32, #tpu.memory_space<vmem>>, vector<1x1xf32>
      %168 = vector.extract %167[0, 0] : f32 from vector<1x1xf32>
      %169 = vector.shape_cast %166 : vector<1x128xf32> to vector<1x1x128xf32>
      %cst_82 = arith.constant dense<0.000000e+00> : vector<1xf32>
      %170 = vector.multi_reduction <add>, %169, %cst_82 [1, 2] : vector<1x1x128xf32> to vector<1xf32>
      %171 = vector.shape_cast %170 : vector<1xf32> to vector<1x1x1xf32>
      %172 = vector.extract %171[0, 0, 0] : f32 from vector<1x1x1xf32>
      %173 = arith.addf %168, %172 : f32
      %cst_83 = arith.constant 1.280000e+02 : f32
      %174 = arith.divf %173, %cst_83 : f32
      %c0_84 = arith.constant 0 : index
      %c0_85 = arith.constant 0 : index
      %175 = vector.load %arg11[%c0_84, %c0_85] : memref<1x1xf32, #tpu.memory_space<vmem>>, vector<1x1xf32>
      %176 = vector.extract %175[0, 0] : f32 from vector<1x1xf32>
      %cst_86 = arith.constant 1.000000e+02 : f32
      %177 = arith.mulf %176, %cst_86 : f32
      %cst_87 = arith.constant 1.280000e+02 : f32
      %178 = arith.divf %177, %cst_87 : f32
      %179 = vector.broadcast %174 : f32 to vector<1x128xf32>
      %c2 = arith.constant 2 : index
      %c0_88 = arith.constant 0 : index
      %180 = vector.load %arg5[%c2, %c0_88] : memref<8x128xf32, #tpu.memory_space<vmem>>, vector<1x128xf32>
      tpu.vector_store %arg5[%c2, %c0_88], %179 {strides = array<i32>} : memref<8x128xf32, #tpu.memory_space<vmem>>, vector<1x128xf32>,
      %181 = vector.broadcast %178 : f32 to vector<1x128xf32>
      %c3 = arith.constant 3 : index
      %c0_89 = arith.constant 0 : index
      %182 = vector.load %arg5[%c3, %c0_89] : memref<8x128xf32, #tpu.memory_space<vmem>>, vector<1x128xf32>
      tpu.vector_store %arg5[%c3, %c0_89], %181 {strides = array<i32>} : memref<8x128xf32, #tpu.memory_space<vmem>>, vector<1x128xf32>,
    } else {
    }
    return
  }
  func.func @transform_0(%arg0: i32) -> (i32, i32) {
    %c0_i32 = arith.constant 0 : i32
    %c0_i32_0 = arith.constant 0 : i32
    return %arg0, %c0_i32 : i32, i32
  }
  func.func @transform_1(%arg0: i32) -> (i32, i32) {
    %c0_i32 = arith.constant 0 : i32
    %c0_i32_0 = arith.constant 0 : i32
    %c0_i32_1 = arith.constant 0 : i32
    return %c0_i32, %c0_i32_0 : i32, i32
  }
  func.func @transform_2(%arg0: i32) -> (i32, i32) {
    %c0_i32 = arith.constant 0 : i32
    %c0_i32_0 = arith.constant 0 : i32
    return %arg0, %c0_i32 : i32, i32
  }
  func.func @transform_3(%arg0: i32) -> (i32, i32) {
    %c0_i32 = arith.constant 0 : i32
    %c0_i32_0 = arith.constant 0 : i32
    return %arg0, %c0_i32 : i32, i32
  }
  func.func @transform_4(%arg0: i32) -> (i32, i32) {
    %c0_i32 = arith.constant 0 : i32
    %c0_i32_0 = arith.constant 0 : i32
    %c0_i32_1 = arith.constant 0 : i32
    return %c0_i32, %c0_i32_0 : i32, i32
  }
}

</mosaic_0001>

<bundles_post_ra>
// kernel: tpu_custom_call.1
= control target key start
LH: loop header
LB: loop body
LE: loop exit
PB: predicated region body
PF: predicated region fallthrough
CT: control target
= control target key end

     0   :  { %10 = vsyncpa [#allocation9], 0  ;;  %vm54_vm0 = vcmask 261120   ;;  %s4702_s0 = inlined_call_operand.vmem [shape: f32[128,32], index: 0, kind: input, shape index: {}]   ;;  %s4703_s1 = inlined_call_operand.vmem [shape: f32[128,32], index: 1, kind: input, shape index: {}]   ;;  %s4704_s2 = inlined_call_operand.vmem [shape: f32[128,128], index: 2, kind: input, shape index: {}]   ;;  %s4705_s3 = inlined_call_operand.hbm [shape: f32[128,128], index: 3, kind: output, shape index: {0}]   ;;  %s4706_s4 = inlined_call_operand.hbm [shape: f32[8,128], index: 4, kind: output, shape index: {1}]  }
   0x1   :  { %v2703_v0 = vld [vmem:[%s4703_s1 + $0x78] sm:$0xff]  ;;  %v2708_v1 = vld [vmem:[%s4703_s1 + $0x68] sm:$0xff]  ;;  %v2724_v6 = vld [vmem:[%s4703_s1 + $0x70] sm:$0xff] }
   0x2   :  { %v2713_v2 = vld [vmem:[%s4703_s1 + $0x58] sm:$0xff]  ;;  %v53_v3 = vmul.f32 %v2703_v0, %v2703_v0  ;;  %v51_v4 = vmul.f32 %v2708_v1, %v2708_v1  ;;  %v2729_v7 = vld [vmem:[%s4703_s1 + $0x60] sm:$0xff]  ;;  %v2737_v11 = vld [vmem:[%s4703_s1 + $0x50] sm:$0xff]  ;;  %v52_v12 = vmul.f32 %v2724_v6, %v2724_v6 }
   0x3   :  { %v49_v5 = vmul.f32 %v2713_v2, %v2713_v2  ;;  %v50_v13 = vmul.f32 %v2729_v7, %v2729_v7 }
   0x4   :  { %v100_v8 = vsel %vm54_vm0, %v53_v3, 0.0  ;;  %v94_v9 = vsel %vm54_vm0, %v51_v4, 0.0 }
   0x5   :  { %v88_v10 = vsel %vm54_vm0, %v49_v5, 0.0  ;;  %101 = vadd.xlane.f32.xlu0 %v100_v8  ;;  %95 = vadd.xlane.f32.xlu1 %v94_v9 }
   0x6   :  { %89 = vadd.xlane.f32.xlu2 %v88_v10 }
   0x7   :  { %11 = vsyncpa [#allocation11], 0  ;;  %v48_v14 = vmul.f32 %v2737_v11, %v2737_v11  ;;  %v97_v15 = vsel %vm54_vm0, %v52_v12, 0.0  ;;  %v91_v16 = vsel %vm54_vm0, %v50_v13, 0.0  ;;  %v2751_v18 = vld [vmem:[%s4703_s1 + $0x48] sm:$0xff]  ;;  %v2756_v19 = vld [vmem:[%s4703_s1 + $0x40] sm:$0xff] }
   0x8   :  { %v2761_v20 = vld [vmem:[%s4703_s1 + $0x38] sm:$0xff]  ;;  %v47_v21 = vmul.f32 %v2751_v18, %v2751_v18  ;;  %v46_v22 = vmul.f32 %v2756_v19, %v2756_v19  ;;  %v2775_v27 = vld [vmem:[%s4703_s1 + $0x30] sm:$0xff]  ;;  %v2780_v28 = vld [vmem:[%s4703_s1 + $0x28] sm:$0xff]  ;;  %s2138_s23 = sshll.u32 %s4705_s3, 4  ;;  %s2670_s24 = smov [#allocation8]   ;;  %s2139_s23 = int_to_ptr.hbm [resolvable:$true] %s2138_s23 }
   0x9   :  { %v85_v17 = vsel %vm54_vm0, %v48_v14, 0.0  ;;  %v45_v23 = vmul.f32 %v2761_v20, %v2761_v20  ;;  %v2785_v29 = vld [vmem:[%s4703_s1 + $0x20] sm:$0xff]  ;;  %v44_v30 = vmul.f32 %v2775_v27, %v2775_v27  ;;  %v43_v31 = vmul.f32 %v2780_v28, %v2780_v28  ;;  %v2799_v36 = vld [vmem:[%s4703_s1 + $0x18] sm:$0xff]  ;;  %v2804_v37 = vld [vmem:[%s4703_s1 + $0x10] sm:$0xff]  ;;  %s2671_s25 = smov 128   ;;  %s2672_s26 = smov 8  }
   0xa   :  { %v82_v24 = vsel %vm54_vm0, %v47_v21, 0.0  ;;  %v79_v25 = vsel %vm54_vm0, %v46_v22, 0.0  ;;  %v42_v32 = vmul.f32 %v2785_v29, %v2785_v29  ;;  %v2809_v38 = vld [vmem:[%s4703_s1 + $0x8] sm:$0xff]  ;;  %v41_v39 = vmul.f32 %v2799_v36, %v2799_v36  ;;  %v2826_v46 = vld [vmem:[%s4703_s1] sm:$0xff]  ;;  %v2831_v47 = vld [vmem:[%s4702_s0 + $0x30] sm:$0xff]  ;;  %s2136_s1 = sshll.u32 %s2670_s24, 4  ;;  %s2137_s1 = int_to_ptr.vmem [resolvable:$true] %s2136_s1 }
   0xb   :  { %v76_v26 = vsel %vm54_vm0, %v45_v23, 0.0  ;;  %v73_v33 = vsel %vm54_vm0, %v44_v30, 0.0  ;;  %v70_v34 = vsel %vm54_vm0, %v43_v31, 0.0  ;;  %v40_v40 = vmul.f32 %v2804_v37, %v2804_v37  ;;  %v344_v45 = vld [vmem:[%s4702_s0 + $0x28] sm:$0xff]  ;;  %v347_v54 = vld [vmem:[%s4702_s0 + $0x40] sm:$0xff]  ;;  %v346_v55 = vld [vmem:[%s4702_s0 + $0x38] sm:$0xff] }
   0xc   :  { %v67_v35 = vsel %vm54_vm0, %v42_v32, 0.0  ;;  %v39_v41 = vmul.f32 %v2809_v38, %v2809_v38  ;;  %v64_v42 = vsel %vm54_vm0, %v41_v39, 0.0  ;;  %v360_v48 = vmul.f32 %v344_v45, %v344_v45  ;;  %v2849_v56 = vld [vmem:[%s4702_s0] sm:$0xff]  ;;  %v2859_v63 = vld [vmem:[%s4702_s0 + $0x8] sm:$0xff]  ;;  %v349_v4 = vld [vmem:[%s4702_s0 + $0x50] sm:$0xff]  ;;  %s2674_s8 = smov [#allocation10]  }
   0xd   :  { %98 = vadd.xlane.f32.xlu0 %v97_v15  ;;  %92 = vadd.xlane.f32.xlu1 %v91_v16  ;;  %v61_v43 = vsel %vm54_vm0, %v40_v40, 0.0  ;;  %v38_v49 = vmul.f32 %v2826_v46, %v2826_v46  ;;  %v361_v50 = vmul.f32 %v2831_v47, %v2831_v47  ;;  %v363_v57 = vmul.f32 %v347_v54, %v347_v54  ;;  %v348_v3 = vld [vmem:[%s4702_s0 + $0x48] sm:$0xff]  ;;  %v350_v14 = vld [vmem:[%s4702_s0 + $0x58] sm:$0xff]  ;;  %v2878_v15 = vld [vmem:[%s4702_s0 + $0x10] sm:$0xff]  ;;  %s2150_s9 = sshll.u32 %s2674_s8, 4  ;;  %s2152_s13 = sshll.u32 %s4706_s4, 4  ;;  %s2151_s9 = int_to_ptr.vmem [resolvable:$true] %s2150_s9  ;;  %s2153_s13 = int_to_ptr.hbm [resolvable:$true] %s2152_s13 }
   0xe   :  { %86 = vadd.xlane.f32.xlu2 %v85_v17  ;;  %v58_v44 = vsel %vm54_vm0, %v39_v41, 0.0  ;;  %v387_v51 = vsel %vm54_vm0, %v360_v48, 0.0  ;;  %v362_v58 = vmul.f32 %v346_v55, %v346_v55  ;;  %v355_v59 = vmul.f32 %v2849_v56, %v2849_v56  ;;  %v2883_v16 = vld [vmem:[%s4702_s0 + $0x18] sm:$0xff]  ;;  %v351_v30 = vld [vmem:[%s4702_s0 + $0x60] sm:$0xff]  ;;  %v352_v31 = vld [vmem:[%s4702_s0 + $0x68] sm:$0xff] }
   0xf   :  { %v55_v52 = vsel %vm54_vm0, %v38_v49, 0.0  ;;  %v390_v53 = vsel %vm54_vm0, %v361_v50, 0.0  ;;  %v396_v60 = vsel %vm54_vm0, %v363_v57, 0.0  ;;  %v356_v5 = vmul.f32 %v2859_v63, %v2859_v63  ;;  %v354_v41 = vld [vmem:[%s4702_s0 + $0x78] sm:$0xff] }
  0x10   :  { %v393_v61 = vsel %vm54_vm0, %v362_v58, 0.0  ;;  %v372_v62 = vsel %vm54_vm0, %v355_v59, 0.0  ;;  %v364_v8 = vmul.f32 %v348_v3, %v348_v3  ;;  %v365_v9 = vmul.f32 %v349_v4, %v349_v4 }
  0x11   :  { %v375_v10 = vsel %vm54_vm0, %v356_v5, 0.0  ;;  %v366_v17 = vmul.f32 %v350_v14, %v350_v14  ;;  %v357_v21 = vmul.f32 %v2878_v15, %v2878_v15  ;;  %v358_v22 = vmul.f32 %v2883_v16, %v2883_v16 }
  0x12   :  { %v399_v12 = vsel %vm54_vm0, %v364_v8, 0.0  ;;  %v402_v13 = vsel %vm54_vm0, %v365_v9, 0.0 }
  0x13   :  { %v405_v23 = vsel %vm54_vm0, %v366_v17, 0.0 }
  0x15   :  { %83 = vadd.xlane.f32.xlu0 %v82_v24  ;;  %80 = vadd.xlane.f32.xlu1 %v79_v25  ;;  %v378_v24 = vsel %vm54_vm0, %v357_v21, 0.0  ;;  %v381_v25 = vsel %vm54_vm0, %v358_v22, 0.0 }
  0x16   :  { %77 = vadd.xlane.f32.xlu2 %v76_v26  ;;  %v2895_v26 = vld [vmem:[%s4702_s0 + $0x20] sm:$0xff] }
  0x17   :  { %v359_v32 = vmul.f32 %v2895_v26, %v2895_v26 }
  0x1d   :  { %74 = vadd.xlane.f32.xlu0 %v73_v33  ;;  %71 = vadd.xlane.f32.xlu1 %v70_v34  ;;  %v367_v33 = vmul.f32 %v351_v30, %v351_v30  ;;  %v368_v34 = vmul.f32 %v352_v31, %v352_v31 }
  0x1e   :  { %68 = vadd.xlane.f32.xlu2 %v67_v35  ;;  %v384_v35 = vsel %vm54_vm0, %v359_v32, 0.0 }
  0x1f   :  { %v408_v39 = vsel %vm54_vm0, %v367_v33, 0.0  ;;  %v411_v40 = vsel %vm54_vm0, %v368_v34, 0.0 }
  0x25   :  { %65 = vadd.xlane.f32.xlu0 %v64_v42  ;;  %62 = vadd.xlane.f32.xlu1 %v61_v43  ;;  %v353_v42 = vld [vmem:[%s4702_s0 + $0x70] sm:$0xff]  ;;  %v370_v43 = vmul.f32 %v354_v41, %v354_v41 }
  0x26   :  { %59 = vadd.xlane.f32.xlu2 %v58_v44  ;;  %v369_v44 = vmul.f32 %v353_v42, %v353_v42 }
  0x27   :  { %v417_v45 = vsel %vm54_vm0, %v370_v43, 0.0 }
  0x28   :  { %v414_v48 = vsel %vm54_vm0, %v369_v44, 0.0 }
  0x2d   :  { %388 = vadd.xlane.f32.xlu1 %v387_v51  ;;  %56 = vadd.xlane.f32.xlu0 %v55_v52 }
  0x2e   :  { %391 = vadd.xlane.f32.xlu2 %v390_v53 }
  0x35   :  { %397 = vadd.xlane.f32.xlu1 %v396_v60  ;;  %394 = vadd.xlane.f32.xlu0 %v393_v61 }
  0x36   :  { %373 = vadd.xlane.f32.xlu2 %v372_v62 }
  0x3d   :  { %376 = vadd.xlane.f32.xlu1 %v375_v10  ;;  %400 = vadd.xlane.f32.xlu0 %v399_v12 }
  0x3e   :  { %403 = vadd.xlane.f32.xlu2 %v402_v13 }
  0x45   :  { %406 = vadd.xlane.f32.xlu1 %v405_v23  ;;  %379 = vadd.xlane.f32.xlu0 %v378_v24 }
  0x46   :  { %382 = vadd.xlane.f32.xlu2 %v381_v25 }
  0x4d   :  { %385 = vadd.xlane.f32.xlu1 %v384_v35  ;;  %409 = vadd.xlane.f32.xlu0 %v408_v39 }
  0x4e   :  { %412 = vadd.xlane.f32.xlu2 %v411_v40 }
  0x55   :  { %418 = vadd.xlane.f32.xlu1 %v417_v45  ;;  %415 = vadd.xlane.f32.xlu0 %v414_v48 }
  0x78   :  { %v102_v49 = vpop.xlane.xlu0 %101  ;;  %v96_v50 = vpop.xlane.xlu1 %95 }
  0x79   :  { %2334 = vrsqrt.f32 %v102_v49  ;;  %v90_v51 = vpop.xlane.xlu2 %89  ;;  %vm259_vm4 = vweird.f32 %v102_v49  ;;  %vm239_vm5 = vweird.f32 %v96_v50 }
  0x7a   :  { %2336 = vrsqrt.f32 %v96_v50  ;;  %vm219_vm2 = vweird.f32 %v90_v51 }
  0x7b   :  { %2338 = vrsqrt.f32 %v90_v51 }
  0x7f   :  { %v2335_v52 = vpop.eup %2334 }
  0x80   :  { %v2337_v53 = vpop.eup %2336  ;;  %v254_v54 = vmul.f32 %v2335_v52, %v102_v49  ;;  %v2916_v55 = vpop.xlane.xlu0 %98  ;;  %vm260_vm1 = vweird.f32 %v2335_v52 }
  0x81   :  { %v2918_v57 = vpop.xlane.xlu1 %92  ;;  %v2339_v58 = vpop.eup %2338  ;;  %v234_v59 = vmul.f32 %v2337_v53, %v96_v50  ;;  %2340 = vrsqrt.f32 %v2916_v55  ;;  %vm240_vm6 = vweird.f32 %v2337_v53  ;;  %vm2927_vm7 = vmor %vm259_vm4, %vm260_vm1  ;;  %vm249_vm10 = vweird.f32 %v2916_v55 }
  0x82   :  { %v2921_v60 = vpop.xlane.xlu2 %86  ;;  %v255_v61 = vmul.f32 %v2335_v52, %v254_v54  ;;  %v214_v62 = vmul.f32 %v2339_v58, %v90_v51  ;;  %2342 = vrsqrt.f32 %v2918_v57  ;;  %vm220_vm3 = vweird.f32 %v2339_v58  ;;  %vm241_vm9 = vmor %vm239_vm5, %vm240_vm6 }
  0x83   :  { %v235_v3 = vmul.f32 %v2337_v53, %v234_v59  ;;  %2344 = vrsqrt.f32 %v2921_v60  ;;  %vm2939_vm8 = vmor %vm219_vm2, %vm220_vm3  ;;  %vm209_vm12 = vweird.f32 %v2921_v60  ;;  %vm229_vm14 = vweird.f32 %v2918_v57 }
  0x84   :  { %v256_v4 = vmul.f32 0.5, %v255_v61  ;;  %v215_v5 = vmul.f32 %v2339_v58, %v214_v62 }
  0x85   :  { %v236_v8 = vmul.f32 0.5, %v235_v3 }
  0x86   :  { %v257_v9 = vsub.f32 1.5, %v256_v4  ;;  %v216_v10 = vmul.f32 0.5, %v215_v5 }
  0x87   :  { %v2925_v12 = vpop.eup %2340  ;;  %v237_v13 = vsub.f32 1.5, %v236_v8 }
  0x88   :  { %v2343_v14 = vpop.eup %2342  ;;  %v258_v17 = vmul.f32 %v2335_v52, %v257_v9  ;;  %v217_v22 = vsub.f32 1.5, %v216_v10  ;;  %v244_v23 = vmul.f32 %v2925_v12, %v2916_v55  ;;  %v2933_v24 = vpop.xlane.xlu0 %83  ;;  %vm250_vm11 = vweird.f32 %v2925_v12 }
  0x89   :  { %v2935_v25 = vpop.xlane.xlu1 %80  ;;  %v2345_v30 = vpop.eup %2344  ;;  %v238_v31 = vmul.f32 %v2337_v53, %v237_v13  ;;  %v224_v33 = vmul.f32 %v2343_v14, %v2918_v57  ;;  %2346 = vrsqrt.f32 %v2933_v24  ;;  %vm230_vm15 = vweird.f32 %v2343_v14  ;;  %vm251_vm1 = vmor %vm249_vm10, %vm250_vm11 }
  0x8a   :  { %v2945_v34 = vpop.xlane.xlu2 %77  ;;  %v262_v35 = vsel %vm2927_vm7, %v2335_v52, %v258_v17  ;;  %v218_v39 = vmul.f32 %v2339_v58, %v217_v22  ;;  %v245_v40 = vmul.f32 %v2925_v12, %v244_v23  ;;  %v204_v41 = vmul.f32 %v2345_v30, %v2921_v60  ;;  %vm231_vm3 = vmor %vm229_vm14, %vm230_vm15 }
  0x8b   :  { %v2954_v42 = vmul.f32 %v262_v35, %v2703_v0  ;;  %v242_v43 = vsel %vm241_vm9, %v2337_v53, %v238_v31  ;;  %v225_v44 = vmul.f32 %v2343_v14, %v224_v33  ;;  %vm210_vm13 = vweird.f32 %v2345_v30 }
  0x8c   :  { %v2958_v45 = vmul.f32 %v242_v43, %v2708_v1  ;;  %v222_v48 = vsel %vm2939_vm8, %v2339_v58, %v218_v39  ;;  %v246_v49 = vmul.f32 0.5, %v245_v40  ;;  %v205_v50 = vmul.f32 %v2345_v30, %v204_v41  ;;  %vm2992_vm2 = vmor %vm209_vm12, %vm210_vm13 }
  0x8d   :  { %294 = vst.msk [vmem:[#allocation2 + $0x78] sm:$0xff] %vm54_vm0, %v2954_v42  ;;  %v2965_v51 = vmul.f32 %v222_v48, %v2713_v2  ;;  %v226_v0 = vmul.f32 0.5, %v225_v44  ;;  %2348 = vrsqrt.f32 %v2935_v25  ;;  %vm199_vm4 = vweird.f32 %v2933_v24 }
  0x8e   :  { %292 = vst.msk [vmem:[#allocation2 + $0x68] sm:$0xff] %vm54_vm0, %v2958_v45  ;;  %v247_v1 = vsub.f32 1.5, %v246_v49  ;;  %v206_v52 = vmul.f32 0.5, %v205_v50  ;;  %2350 = vrsqrt.f32 %v2945_v34  ;;  %vm189_vm6 = vweird.f32 %v2935_v25 }
  0x8f   :  { %v2972_v53 = vpop.eup %2346  ;;  %290 = vst.msk [vmem:[#allocation2 + $0x58] sm:$0xff] %vm54_vm0, %v2965_v51  ;;  %v227_v2 = vsub.f32 1.5, %v226_v0  ;;  %vm179_vm7 = vweird.f32 %v2945_v34 }
  0x90   :  { %v248_v54 = vmul.f32 %v2925_v12, %v247_v1  ;;  %v207_v58 = vsub.f32 1.5, %v206_v52  ;;  %v194_v59 = vmul.f32 %v2972_v53, %v2933_v24  ;;  %v2985_v61 = vpop.xlane.xlu0 %74  ;;  %vm200_vm5 = vweird.f32 %v2972_v53 }
  0x91   :  { %v2987_v62 = vpop.xlane.xlu1 %71  ;;  %v228_v3 = vmul.f32 %v2343_v14, %v227_v2  ;;  %2352 = vrsqrt.f32 %v2985_v61  ;;  %vm169_vm8 = vweird.f32 %v2985_v61  ;;  %vm201_vm11 = vmor %vm199_vm4, %vm200_vm5 }
  0x92   :  { %v2997_v55 = vpop.xlane.xlu2 %68  ;;  %v252_v4 = vsel %vm251_vm1, %v2925_v12, %v248_v54  ;;  %v208_v5 = vmul.f32 %v2345_v30, %v207_v58  ;;  %v195_v8 = vmul.f32 %v2972_v53, %v194_v59  ;;  %2354 = vrsqrt.f32 %v2987_v62 }
  0x93   :  { %v3003_v9 = vmul.f32 %v252_v4, %v2724_v6  ;;  %v232_v60 = vsel %vm231_vm3, %v2343_v14, %v228_v3  ;;  %2356 = vrsqrt.f32 %v2997_v55  ;;  %v3006_v10 = vpop.eup %2348  ;;  %vm159_vm9 = vweird.f32 %v2987_v62 }
  0x94   :  { %v3009_v13 = vmul.f32 %v232_v60, %v2729_v7  ;;  %v212_v12 = vsel %vm2992_vm2, %v2345_v30, %v208_v5  ;;  %v196_v17 = vmul.f32 0.5, %v195_v8  ;;  %v3013_v21 = vld [vmem:[#allocation2 + $0x78] sm:$0xff]  ;;  %v3015_v22 = vpop.eup %2350  ;;  %v184_v7 = vmul.f32 %v3006_v10, %v2935_v25 }
  0x95   :  { %293 = vst.msk [vmem:[#allocation2 + $0x70] sm:$0xff] %vm54_vm0, %v3003_v9  ;;  %v3020_v6 = vmul.f32 %v212_v12, %v2737_v11  ;;  %2167 = vmatpush.xpose.msk.msra.mxu0 %vm54_vm0, %v3013_v21  ;;  %2297 = vmatpush.xpose.msk.msra.mxu3 %vm54_vm0, %v3013_v21  ;;  %v174_v11 = vmul.f32 %v3015_v22, %v2945_v34  ;;  %vm190_vm10 = vweird.f32 %v3006_v10  ;;  %vm180_vm12 = vweird.f32 %v3015_v22 }
  0x96   :  { %291 = vst.msk [vmem:[#allocation2 + $0x60] sm:$0xff] %vm54_vm0, %v3009_v13  ;;  %v197_v14 = vsub.f32 1.5, %v196_v17  ;;  %v185_v30 = vmul.f32 %v3006_v10, %v184_v7  ;;  %vm149_vm13 = vweird.f32 %v2997_v55  ;;  %vm3079_vm14 = vmor %vm189_vm6, %vm190_vm10  ;;  %v3222_v25 = vld [vmem:[#allocation2 + $0x58] sm:$0xff] }
  0x97   :  { %v3035_v23 = vpop.eup %2352  ;;  %289 = vst.msk [vmem:[#allocation2 + $0x50] sm:$0xff] %vm54_vm0, %v3020_v6  ;;  %v175_v33 = vmul.f32 %v3015_v22, %v174_v11  ;;  %vm3094_vm1 = vmor %vm179_vm7, %vm180_vm12 }
  0x98   :  { %v3043_v31 = vpop.eup %2354  ;;  %v198_v32 = vmul.f32 %v2972_v53, %v197_v14  ;;  %v164_v35 = vmul.f32 %v3035_v23, %v2985_v61  ;;  %v3050_v39 = vpop.xlane.xlu0 %65  ;;  %v186_v43 = vmul.f32 0.5, %v185_v30  ;;  %vm170_vm15 = vweird.f32 %v3035_v23  ;;  %4733 = vst [vmem:[#allocation16_spill] sm:$0xff] %v3222_v25 }
  0x99   :  { %v3052_v40 = vpop.xlane.xlu1 %62  ;;  %v3054_v41 = vpop.eup %2356  ;;  %v154_v44 = vmul.f32 %v3043_v31, %v2987_v62  ;;  %2358 = vrsqrt.f32 %v3050_v39  ;;  %v176_v50 = vmul.f32 0.5, %v175_v33  ;;  %vm160_vm2 = vweird.f32 %v3043_v31  ;;  %vm3115_vm4 = vmor %vm169_vm8, %vm170_vm15 }
  0x9a   :  { %v3064_v48 = vpop.xlane.xlu2 %59  ;;  %v202_v49 = vsel %vm201_vm11, %v2972_v53, %v198_v32  ;;  %v165_v0 = vmul.f32 %v3035_v23, %v164_v35  ;;  %v144_v1 = vmul.f32 %v3054_v41, %v2997_v55  ;;  %v187_v52 = vsub.f32 1.5, %v186_v43  ;;  %vm3131_vm5 = vmor %vm159_vm9, %vm160_vm2 }
  0x9b   :  { %v3071_v24 = vmul.f32 %v202_v49, %v2751_v18  ;;  %v155_v2 = vmul.f32 %v3043_v31, %v154_v44  ;;  %v177_v54 = vsub.f32 1.5, %v176_v50  ;;  %2360 = vrsqrt.f32 %v3052_v40 }
  0x9c   :  { %v166_v58 = vmul.f32 0.5, %v165_v0  ;;  %v145_v18 = vmul.f32 %v3054_v41, %v144_v1  ;;  %v3085_v59 = vld [vmem:[#allocation2 + $0x70] sm:$0xff]  ;;  %v188_v3 = vmul.f32 %v3006_v10, %v187_v52  ;;  %vm150_vm3 = vweird.f32 %v3054_v41 }
  0x9d   :  { %288 = vst.msk [vmem:[#allocation2 + $0x48] sm:$0xff] %vm54_vm0, %v3071_v24  ;;  %v156_v57 = vmul.f32 0.5, %v155_v2  ;;  %2168 = vmatpush.xpose.msk.msra.mxu0 %vm54_vm0, %v3085_v59  ;;  %2298 = vmatpush.xpose.msk.msra.mxu3 %vm54_vm0, %v3085_v59  ;;  %v178_v4 = vmul.f32 %v3015_v22, %v177_v54  ;;  %2362 = vrsqrt.f32 %v3064_v48  ;;  %vm3149_vm6 = vmor %vm149_vm13, %vm150_vm3  ;;  %vm139_vm7 = vweird.f32 %v3050_v39 }
  0x9e   :  { %v167_v5 = vsub.f32 1.5, %v166_v58  ;;  %v146_v8 = vmul.f32 0.5, %v145_v18  ;;  %v192_v60 = vsel %vm3079_vm14, %v3006_v10, %v188_v3  ;;  %vm129_vm9 = vweird.f32 %v3052_v40 }
  0x9f   :  { %v3106_v34 = vpop.eup %2358  ;;  %v157_v17 = vsub.f32 1.5, %v156_v57  ;;  %v3121_v7 = vmul.f32 %v192_v60, %v2756_v19  ;;  %v182_v14 = vsel %vm3094_vm1, %v3015_v22, %v178_v4  ;;  %v3139_v19 = vld [vmem:[#allocation2 + $0x68] sm:$0xff]  ;;  %vm119_vm12 = vweird.f32 %v3064_v48 }
  0xa0   :  { %v168_v10 = vmul.f32 %v3035_v23, %v167_v5  ;;  %v147_v11 = vsub.f32 1.5, %v146_v8  ;;  %v3137_v32 = vpop.xlane.xlu0 %56  ;;  %4727 = vst [vmem:[#allocation14_spill] sm:$0xff] %v3139_v19  ;;  %v3142_v33 = vmul.f32 %v182_v14, %v2761_v20  ;;  %v134_v35 = vmul.f32 %v3106_v34, %v3050_v39 }
  0xa1   :  { %v3135_v30 = vpop.xlane.xlu1 %388  ;;  %v158_v22 = vmul.f32 %v3043_v31, %v157_v17  ;;  %2169 = vmatpush.xpose.msk.msra.mxu0 %vm54_vm0, %v3139_v19  ;;  %2299 = vmatpush.xpose.msk.msra.mxu3 %vm54_vm0, %v3139_v19  ;;  %287 = vst.msk [vmem:[#allocation2 + $0x40] sm:$0xff] %vm54_vm0, %v3121_v7  ;;  %v3167_v44 = vpop.eup %2360  ;;  %vm140_vm8 = vweird.f32 %v3106_v34  ;;  %v3273_v62 = vsel %vm54_vm0, %v2954_v42, 0.0  ;;  %v3291_v42 = vsel %vm54_vm0, %v2965_v51, 0.0 }
  0xa2   :  { %v3155_v43 = vpop.xlane.xlu2 %391  ;;  %v172_v20 = vsel %vm3115_vm4, %v3035_v23, %v168_v10  ;;  %v148_v55 = vmul.f32 %v3054_v41, %v147_v11  ;;  %286 = vst.msk [vmem:[#allocation2 + $0x38] sm:$0xff] %vm54_vm0, %v3142_v33  ;;  %v135_v0 = vmul.f32 %v3106_v34, %v134_v35  ;;  %v124_v52 = vmul.f32 %v3167_v44, %v3052_v40  ;;  %vm3211_vm10 = vmor %vm139_vm7, %vm140_vm8  ;;  %v3253_v11 = vld [vmem:[#allocation2 + $0x50] sm:$0xff] }
  0xa3   :  { %v3172_v49 = vmul.f32 %v172_v20, %v2775_v27  ;;  %v162_v50 = vsel %vm3131_vm5, %v3043_v31, %v158_v22  ;;  %2364 = vrsqrt.f32 %v3135_v30  ;;  %v3187_v27 = vld [vmem:[#allocation2 + $0x60] sm:$0xff]  ;;  %v3189_v2 = vpop.eup %2362  ;;  %vm130_vm11 = vweird.f32 %v3167_v44  ;;  %4736 = vst [vmem:[#allocation17_spill] sm:$0xff] %v3253_v11 }
  0xa4   :  { %v3179_v1 = vmul.f32 %v162_v50, %v2780_v28  ;;  %v152_v23 = vsel %vm3149_vm6, %v3054_v41, %v148_v55  ;;  %4730 = vst [vmem:[#allocation15_spill] sm:$0xff] %v3187_v27  ;;  %v136_v28 = vmul.f32 0.5, %v135_v0  ;;  %v125_v41 = vmul.f32 %v3167_v44, %v124_v52  ;;  %vm3244_vm14 = vmor %vm129_vm9, %vm130_vm11 }
  0xa5   :  { %285 = vst.msk [vmem:[#allocation2 + $0x30] sm:$0xff] %vm54_vm0, %v3172_v49  ;;  %v3194_v31 = vmul.f32 %v152_v23, %v2785_v29  ;;  %2170 = vmatpush.xpose.msk.msra.mxu0 %vm54_vm0, %v3187_v27  ;;  %2300 = vmatpush.xpose.msk.msra.mxu3 %vm54_vm0, %v3187_v27  ;;  %v114_v29 = vmul.f32 %v3189_v2, %v3064_v48  ;;  %2366 = vrsqrt.f32 %v3155_v43  ;;  %vm120_vm13 = vweird.f32 %v3189_v2 }
  0xa6   :  { %284 = vst.msk [vmem:[#allocation2 + $0x28] sm:$0xff] %vm54_vm0, %v3179_v1  ;;  %v137_v39 = vsub.f32 1.5, %v136_v28  ;;  %v126_v54 = vmul.f32 0.5, %v125_v41  ;;  %2368 = vrsqrt.f32 %v3137_v32  ;;  %vm3259_vm15 = vmor %vm119_vm12, %vm120_vm13  ;;  %v3287_v50 = vsel %vm54_vm0, %v2958_v45, 0.0 }
  0xa7   :  { %283 = vst.msk [vmem:[#allocation2 + $0x20] sm:$0xff] %vm54_vm0, %v3194_v31  ;;  %v115_v58 = vmul.f32 %v3189_v2, %v114_v29  ;;  %v3300_v52 = vsel %vm54_vm0, %v3003_v9, 0.0  ;;  %v3312_v29 = vld [vmem:[#allocation2 + $0x48] sm:$0xff]  ;;  %v3318_v9 = vsel %vm54_vm0, %v3009_v13, 0.0  ;;  %v3334_v13 = vsel %vm54_vm0, %v3071_v24, 0.0 }
  0xa8   :  { %v3220_v3 = vpop.xlane.xlu0 %394  ;;  %v138_v57 = vmul.f32 %v3106_v34, %v137_v39  ;;  %v127_v8 = vsub.f32 1.5, %v126_v54  ;;  %vm109_vm1 = vweird.f32 %v3137_v32  ;;  %v3347_v24 = vsel %vm54_vm0, %v3121_v7, 0.0 }
  0xa9   :  { %v3218_v18 = vpop.xlane.xlu1 %397  ;;  %2171 = vmatpush.xpose.msk.msra.mxu0 %vm54_vm0, %v3222_v25  ;;  %2301 = vmatpush.xpose.msk.msra.mxu3 %vm54_vm0, %v3222_v25  ;;  %v3233_v5 = vpop.eup %2364  ;;  %v116_v60 = vmul.f32 0.5, %v115_v58  ;;  %v3363_v7 = vsel %vm54_vm0, %v3172_v49, 0.0  ;;  %vm486_vm4 = vweird.f32 %v3155_v43  ;;  %vm496_vm6 = vweird.f32 %v3220_v3 }
  0xaa   :  { %2370 = vrsqrt.f32 %v3218_v18  ;;  %v3227_v4 = vpop.xlane.xlu2 %373  ;;  %v142_v12 = vsel %vm3211_vm10, %v3106_v34, %v138_v57  ;;  %v128_v10 = vmul.f32 %v3167_v44, %v127_v8  ;;  %v471_v34 = vmul.f32 %v3233_v5, %v3135_v30 }
  0xab   :  { %2372 = vrsqrt.f32 %v3227_v4  ;;  %v3250_v14 = vmul.f32 %v142_v12, %v2799_v36  ;;  %v117_v61 = vsub.f32 1.5, %v116_v60  ;;  %v3255_v22 = vpop.eup %2366  ;;  %v3330_v57 = vsel %vm54_vm0, %v3020_v6, 0.0 }
  0xac   :  { %2374 = vrsqrt.f32 %v3220_v3  ;;  %v3269_v36 = vpop.eup %2368  ;;  %v132_v48 = vsel %vm3244_vm14, %v3167_v44, %v128_v10  ;;  %v481_v20 = vmul.f32 %v3255_v22, %v3155_v43  ;;  %v472_v53 = vmul.f32 %v3233_v5, %v471_v34 }
  0xad   :  { %2172 = vmatpush.xpose.msk.msra.mxu0 %vm54_vm0, %v3253_v11  ;;  %2302 = vmatpush.xpose.msk.msra.mxu3 %vm54_vm0, %v3253_v11  ;;  %282 = vst.msk [vmem:[#allocation2 + $0x18] sm:$0xff] %vm54_vm0, %v3250_v14  ;;  %v118_v35 = vmul.f32 %v3189_v2, %v117_v61  ;;  %v265_v0 = vmul.f32 %v132_v48, %v2804_v37  ;;  %vm110_vm2 = vweird.f32 %v3269_v36  ;;  %v3351_v12 = vsel %vm54_vm0, %v3142_v33, 0.0  ;;  %v3355_v61 = vld [vmem:[#allocation2 + $0x40] sm:$0xff] }
  0xae   :  { %v104_v44 = vmul.f32 %v3269_v36, %v3137_v32  ;;  %v482_v28 = vmul.f32 %v3255_v22, %v481_v20  ;;  %v473_v40 = vmul.f32 0.5, %v472_v53  ;;  %v3367_v33 = vsel %vm54_vm0, %v3179_v1, 0.0  ;;  %vm3377_vm3 = vmor %vm109_vm1, %vm110_vm2 }
  0xaf   :  { %v122_v45 = vsel %vm3259_vm15, %v3189_v2, %v118_v35  ;;  %281 = vst.msk [vmem:[#allocation2 + $0x10] sm:$0xff] %vm54_vm0, %v265_v0  ;;  %v3371_v35 = vsel %vm54_vm0, %v3194_v31, 0.0  ;;  %vm426_vm5 = vweird.f32 %v3227_v4  ;;  %vm487_vm7 = vweird.f32 %v3255_v22 }
  0xb0   :  { %v3283_v55 = vpop.eup %2370  ;;  %v3310_v37 = vpop.xlane.xlu0 %400  ;;  %v264_v2 = vmul.f32 %v122_v45, %v2809_v38  ;;  %v105_v54 = vmul.f32 %v3269_v36, %v104_v44  ;;  %v483_v8 = vmul.f32 0.5, %v482_v28  ;;  %v474_v53 = vsub.f32 1.5, %v473_v40  ;;  %vm3421_vm10 = vmor %vm486_vm4, %vm487_vm7 }
  0xb1   :  { %v3296_v23 = vpop.eup %2372  ;;  %v501_v51 = vmul.f32 %v3283_v55, %v3218_v18  ;;  %v3308_v41 = vpop.xlane.xlu1 %376  ;;  %2173 = vmatpush.xpose.msk.msra.mxu0 %vm54_vm0, %v3312_v29  ;;  %2303 = vmatpush.xpose.msk.msra.mxu3 %vm54_vm0, %v3312_v29  ;;  %vm476_vm8 = vweird.f32 %v3135_v30  ;;  %vm477_vm9 = vweird.f32 %v3233_v5  ;;  %v300_v43 = vsel %vm54_vm0, %v3250_v14, 0.0 }
  0xb2   :  { %v3314_v39 = vpop.eup %2374  ;;  %v3324_v58 = vpop.xlane.xlu2 %403  ;;  %v421_v38 = vmul.f32 %v3296_v23, %v3227_v4  ;;  %280 = vst.msk [vmem:[#allocation2 + $0x8] sm:$0xff] %vm54_vm0, %v264_v2  ;;  %v106_v60 = vmul.f32 0.5, %v105_v54  ;;  %2376 = vrsqrt.f32 %v3308_v41  ;;  %v484_v20 = vsub.f32 1.5, %v483_v8 }
  0xb3   :  { %v491_v6 = vmul.f32 %v3314_v39, %v3220_v3  ;;  %v502_v17 = vmul.f32 %v3283_v55, %v501_v51  ;;  %2378 = vrsqrt.f32 %v3310_v37  ;;  %v3392_v51 = vld [vmem:[#allocation2 + $0x38] sm:$0xff]  ;;  %vm427_vm11 = vweird.f32 %v3296_v23 }
  0xb4   :  { %v422_v10 = vmul.f32 %v3296_v23, %v421_v38  ;;  %v107_v34 = vsub.f32 1.5, %v106_v60  ;;  %2380 = vrsqrt.f32 %v3324_v58  ;;  %v298_v38 = vsel %vm54_vm0, %v265_v0, 0.0  ;;  %vm3460_vm14 = vmor %vm426_vm5, %vm427_vm11 }
  0xb5   :  { %v492_v48 = vmul.f32 %v3314_v39, %v491_v6  ;;  %2174 = vmatpush.xpose.msk.msra.mxu0 %vm54_vm0, %v3355_v61  ;;  %2304 = vmatpush.xpose.msk.msra.mxu3 %vm54_vm0, %v3355_v61  ;;  %v503_v31 = vmul.f32 0.5, %v502_v17  ;;  %v296_v60 = vsel %vm54_vm0, %v264_v2, 0.0  ;;  %vm497_vm12 = vweird.f32 %v3314_v39 }
  0xb6   :  { %v108_v49 = vmul.f32 %v3269_v36, %v107_v34  ;;  %v423_v1 = vmul.f32 0.5, %v422_v10  ;;  %vm436_vm13 = vweird.f32 %v3308_v41  ;;  %vm3476_vm15 = vmor %vm496_vm6, %vm497_vm12  ;;  %vm516_vm1 = vweird.f32 %v3310_v37 }
  0xb7   :  { %v493_v45 = vmul.f32 0.5, %v492_v48  ;;  %v504_v2 = vsub.f32 1.5, %v503_v31  ;;  %v3430_v48 = vld [vmem:[#allocation2 + $0x30] sm:$0xff] }
  0xb8   :  { %v3390_v28 = vpop.xlane.xlu0 %379  ;;  %v112_v54 = vsel %vm3377_vm3, %v3269_v36, %v108_v49  ;;  %v3409_v17 = vpop.eup %2376  ;;  %v3412_v36 = vmul.f32 %v3255_v22, %v484_v20  ;;  %v424_v10 = vsub.f32 1.5, %v423_v1  ;;  %v3441_v49 = vmul.f32 %v3233_v5, %v474_v53 }
  0xb9   :  { %v3388_v32 = vpop.xlane.xlu1 %406  ;;  %2175 = vmatpush.xpose.msk.msra.mxu0 %vm54_vm0, %v3392_v51  ;;  %v263_v6 = vmul.f32 %v112_v54, %v2826_v46  ;;  %2305 = vmatpush.xpose.msk.msra.mxu3 %vm54_vm0, %v3392_v51  ;;  %v494_v40 = vsub.f32 1.5, %v493_v45  ;;  %v431_v34 = vmul.f32 %v3409_v17, %v3308_v41  ;;  %v3432_v20 = vpop.eup %2378  ;;  %vm437_vm2 = vweird.f32 %v3409_v17 }
  0xba   :  { %v3399_v8 = vpop.xlane.xlu2 %382  ;;  %v511_v45 = vmul.f32 %v3432_v20, %v3310_v37  ;;  %v3449_v14 = vpop.eup %2380  ;;  %v489_v31 = vsel %vm3421_vm10, %v3255_v22, %v3412_v36  ;;  %v425_v53 = vmul.f32 %v3296_v23, %v424_v10  ;;  %vm446_vm4 = vweird.f32 %v3390_v28  ;;  %vm3517_vm5 = vmor %vm436_vm13, %vm437_vm2  ;;  %v2608_v22 = vld [vmem:[%s4702_s0 + $0x70] sm:$0xff] }
  0xbb   :  { %2382 = vrsqrt.f32 %v3399_v8  ;;  %279 = vst.msk [vmem:[#allocation2] sm:$0xff] %vm54_vm0, %v263_v6  ;;  %v295_v0 = vsel %vm54_vm0, %v263_v6, 0.0  ;;  %v432_v1 = vmul.f32 %v3409_v17, %v431_v34  ;;  %v3465_v6 = vmul.f32 %v3314_v39, %v494_v40  ;;  %v3486_v40 = vld [vmem:[#allocation2 + $0x28] sm:$0xff]  ;;  %vm3545_vm10 = vmor %vm476_vm8, %vm477_vm9 }
  0xbc   :  { %2384 = vrsqrt.f32 %v3390_v28  ;;  %v297_v44 = vadd.f32 %v296_v60, %v295_v0  ;;  %v3470_v34 = vmul.f32 %v3283_v55, %v504_v2  ;;  %vm456_vm3 = vweird.f32 %v3399_v8  ;;  %v3527_v60 = vld [vmem:[#allocation2 + $0x20] sm:$0xff] }
  0xbd   :  { %2386 = vrsqrt.f32 %v3388_v32  ;;  %2176 = vmatpush.xpose.msk.msra.mxu0 %vm54_vm0, %v3430_v48  ;;  %2306 = vmatpush.xpose.msk.msra.mxu3 %vm54_vm0, %v3430_v48  ;;  %v433_v4 = vmul.f32 0.5, %v432_v1  ;;  %v429_v11 = vsel %vm3460_vm14, %v3296_v23, %v425_v53  ;;  %v521_v23 = vmul.f32 %v3449_v14, %v3324_v58 }
  0xbe   :  { %v299_v54 = vadd.f32 %v298_v38, %v297_v44  ;;  %v512_v38 = vmul.f32 %v3432_v20, %v511_v45  ;;  %vm517_vm6 = vweird.f32 %v3432_v20  ;;  %vm506_vm13 = vweird.f32 %v3218_v18 }
  0xbf   :  { %v434_v44 = vsub.f32 1.5, %v433_v4  ;;  %vm3586_vm9 = vmor %vm516_vm1, %vm517_vm6  ;;  %vm507_vm14 = vweird.f32 %v3283_v55 }
  0xc0   :  { %v3484_v10 = vpop.xlane.xlu0 %409  ;;  %v301_v2 = vadd.f32 %v300_v43, %v299_v54  ;;  %v513_v1 = vmul.f32 0.5, %v512_v38 }
  0xc1   :  { %v3467_v0 = vpop.eup %2382  ;;  %v3482_v36 = vpop.xlane.xlu1 %385  ;;  %2177 = vmatpush.xpose.msk.msra.mxu0 %vm54_vm0, %v3486_v40  ;;  %2307 = vmatpush.xpose.msk.msra.mxu3 %vm54_vm0, %v3486_v40  ;;  %v435_v25 = vmul.f32 %v3409_v17, %v434_v44 }
  0xc2   :  { %v3488_v46 = vpop.eup %2384  ;;  %v451_v3 = vmul.f32 %v3467_v0, %v3399_v8  ;;  %v303_v54 = vadd.f32 %v3371_v35, %v301_v2  ;;  %v3525_v53 = vpop.xlane.xlu2 %412  ;;  %2388 = vrsqrt.f32 %v3482_v36  ;;  %vm457_vm7 = vweird.f32 %v3467_v0 }
  0xc3   :  { %v441_v45 = vmul.f32 %v3488_v46, %v3390_v28  ;;  %v3501_v43 = vpop.eup %2386  ;;  %2390 = vrsqrt.f32 %v3525_v53  ;;  %vm447_vm11 = vweird.f32 %v3488_v46  ;;  %vm3576_vm8 = vmor %vm456_vm3, %vm457_vm7  ;;  %vm466_vm1 = vweird.f32 %v3482_v36 }
  0xc4   :  { %v452_v38 = vmul.f32 %v3467_v0, %v451_v3  ;;  %v305_v2 = vadd.f32 %v3367_v33, %v303_v54  ;;  %v514_v3 = vsub.f32 1.5, %v513_v1  ;;  %v531_v41 = vmul.f32 %v3501_v43, %v3388_v32  ;;  %vm3610_vm12 = vmor %vm446_vm4, %vm447_vm11 }
  0xc5   :  { %v442_v35 = vmul.f32 %v3488_v46, %v441_v45  ;;  %2178 = vmatpush.xpose.msk.msra.mxu0 %vm54_vm0, %v3527_v60  ;;  %2308 = vmatpush.xpose.msk.msra.mxu3 %vm54_vm0, %v3527_v60  ;;  %v3539_v45 = vmul.f32 %v429_v11, %v2849_v56  ;;  %v439_v54 = vsel %vm3517_vm5, %v3409_v17, %v435_v25  ;;  %2392 = vrsqrt.f32 %v3484_v10  ;;  %vm3727_vm11 = vmor %vm506_vm13, %vm507_vm14 }
  0xc6   :  { %v453_v44 = vmul.f32 0.5, %v452_v38  ;;  %v307_v1 = vadd.f32 %v3363_v7, %v305_v2  ;;  %v3555_v56 = vmul.f32 %v3449_v14, %v521_v23  ;;  %v599_v7 = vld [vmem:[#allocation2 + $0x18] sm:$0xff]  ;;  %v3565_v2 = vmul.f32 %v489_v31, %v2831_v47 }
  0xc7   :  { %v443_v4 = vmul.f32 0.5, %v442_v35  ;;  %v3560_v35 = vld [vmem:[#allocation2] sm:$0xff]  ;;  %v3569_v25 = vmul.f32 %v3432_v20, %v514_v3  ;;  %v3593_v8 = vmul.f32 %v439_v54, %v2859_v63  ;;  %v3604_v3 = vmul.f32 %v3501_v43, %v531_v41  ;;  %v598_v54 = vld [vmem:[#allocation2 + $0x10] sm:$0xff] }
  0xc8   :  { %v454_v38 = vsub.f32 1.5, %v453_v44  ;;  %v3562_v19 = vpop.xlane.xlu0 %415  ;;  %v309_v27 = vadd.f32 %v3351_v12, %v307_v1  ;;  %v3600_v23 = vpop.eup %2388  ;;  %v808_v44 = vld [vmem:[#allocation2 + $0x8] sm:$0xff]  ;;  %v3616_v1 = vmul.f32 %v3560_v35, %v3539_v45  ;;  %vm546_vm14 = vweird.f32 %v3484_v10 }
  0xc9   :  { %v444_v11 = vsub.f32 1.5, %v443_v4  ;;  %v3558_v30 = vpop.xlane.xlu1 %418  ;;  %2179 = vmatpush.xpose.msk.msra.mxu0 %vm54_vm0, %v599_v7  ;;  %2309 = vmatpush.xpose.msk.msra.mxu3 %vm54_vm0, %v599_v7  ;;  %v461_v28 = vmul.f32 %v3600_v23, %v3482_v36  ;;  %v3628_v41 = vmul.f32 %v808_v44, %v3593_v8  ;;  %vm467_vm3 = vweird.f32 %v3600_v23 }
  0xca   :  { %v455_v17 = vmul.f32 %v3467_v0, %v454_v38  ;;  %2394 = vrsqrt.f32 %v3558_v30  ;;  %v311_v37 = vadd.f32 %v3347_v24, %v309_v27  ;;  %4757 = vst [vmem:[#allocation18_spill] sm:$0xff] %v3616_v1  ;;  %v3630_v38 = vpop.eup %2390  ;;  %vm576_vm2 = vweird.f32 %v3558_v30  ;;  %vm3688_vm5 = vmor %vm466_vm1, %vm467_vm3 }
  0xcb   :  { %v445_v12 = vmul.f32 %v3488_v46, %v444_v11  ;;  %2396 = vrsqrt.f32 %v3562_v19  ;;  %4758 = vst [vmem:[#allocation19_spill] sm:$0xff] %v3628_v41  ;;  %v462_v4 = vmul.f32 %v3600_v23, %v461_v28  ;;  %v3650_v27 = vpop.eup %2392  ;;  %vm566_vm4 = vweird.f32 %v3562_v19 }
  0xcc   :  { %v459_v24 = vsel %vm3576_vm8, %v3467_v0, %v455_v17  ;;  %v313_v11 = vadd.f32 %v3334_v13, %v311_v37  ;;  %v839_v0 = vsel %vm54_vm0, %v3616_v1, 0.0  ;;  %v551_v13 = vmul.f32 %v3630_v38, %v3525_v53 }
  0xcd   :  { %2180 = vmatpush.xpose.msk.msra.mxu0 %vm54_vm0, %v598_v54  ;;  %v449_v17 = vsel %vm3610_vm12, %v3488_v46, %v445_v12  ;;  %v842_v37 = vsel %vm54_vm0, %v3628_v41, 0.0  ;;  %840 = vadd.xlane.f32.xlu1 %v839_v0  ;;  %v3656_v46 = vmul.f32 %v3430_v48, %v3565_v2  ;;  %v3659_v12 = vmul.f32 %v459_v24, %v2883_v16 }
  0xce   :  { %2310 = vmatpush.xpose.msk.msra.mxu3 %vm54_vm0, %v598_v54  ;;  %v315_v31 = vadd.f32 %v3330_v57, %v313_v11  ;;  %843 = vadd.xlane.f32.xlu2 %v842_v37  ;;  %v463_v28 = vmul.f32 0.5, %v462_v4  ;;  %v552_v0 = vmul.f32 %v3630_v38, %v551_v13  ;;  %v541_v1 = vmul.f32 %v3650_v27, %v3484_v10 }
  0xcf   :  { %v3673_v16 = vmul.f32 %v599_v7, %v3659_v12  ;;  %v3676_v24 = vmul.f32 %v449_v17, %v2878_v15  ;;  %vm557_vm12 = vweird.f32 %v3630_v38  ;;  %vm547_vm1 = vweird.f32 %v3650_v27 }
  0xd0   :  { %v3661_v63 = vpop.eup %2394  ;;  %v317_v11 = vadd.f32 %v3291_v42, %v315_v31  ;;  %v464_v4 = vsub.f32 1.5, %v463_v28  ;;  %v553_v13 = vmul.f32 0.5, %v552_v0  ;;  %v542_v37 = vmul.f32 %v3650_v27, %v541_v1 }
  0xd1   :  { %v3667_v57 = vpop.eup %2396  ;;  %v571_v48 = vmul.f32 %v3661_v63, %v3558_v30  ;;  %2181 = vmatpush.xpose.msk.msra.mxu0 %vm54_vm0, %v808_v44  ;;  %v857_v31 = vsel %vm54_vm0, %v3656_v46, 0.0  ;;  %v848_v1 = vsel %vm54_vm0, %v3673_v16, 0.0  ;;  %vm577_vm6 = vweird.f32 %v3661_v63 }
  0xd2   :  { %v561_v41 = vmul.f32 %v3667_v57, %v3562_v19  ;;  %2311 = vmatpush.xpose.msk.msra.mxu3 %vm54_vm0, %v808_v44  ;;  %v319_v42 = vadd.f32 %v3318_v9, %v317_v11  ;;  %v465_v44 = vmul.f32 %v3600_v23, %v464_v4  ;;  %vm567_vm7 = vweird.f32 %v3667_v57  ;;  %vm3742_vm8 = vmor %vm576_vm2, %vm577_vm6 }
  0xd3   :  { %v572_v7 = vmul.f32 %v3661_v63, %v571_v48  ;;  %v554_v17 = vsub.f32 1.5, %v553_v13  ;;  %v3703_v0 = vmul.f32 %v598_v54, %v3676_v24  ;;  %v543_v48 = vmul.f32 0.5, %v542_v37  ;;  %vm3765_vm13 = vmor %vm566_vm4, %vm567_vm7 }
  0xd4   :  { %v562_v9 = vmul.f32 %v3667_v57, %v561_v41  ;;  %v321_v36 = vadd.f32 %v3287_v50, %v319_v42  ;;  %v469_v11 = vsel %vm3688_vm5, %v3600_v23, %v465_v44  ;;  %v2604_v50 = vld [vmem:[%s4702_s0 + $0x28] sm:$0xff]  ;;  %v4761_v41 = vsel %vm3545_vm10, %v3233_v5, %v3441_v49 }
  0xd5   :  { %v573_v28 = vmul.f32 0.5, %v572_v7  ;;  %2182 = vmatpush.xpose.msk.msra.mxu0 %vm54_vm0, %v3560_v35  ;;  %849 = vadd.xlane.f32.xlu1 %v848_v1  ;;  %v3720_v54 = vmul.f32 %v2604_v50, %v4761_v41  ;;  %v845_v33 = vsel %vm54_vm0, %v3703_v0, 0.0  ;;  %v3734_v37 = vmul.f32 %v469_v11, %v2895_v26  ;;  %v2605_v26 = vld [vmem:[%s4702_s0 + $0x48] sm:$0xff]  ;;  %v2609_v11 = vld [vmem:[%s4702_s0 + $0x40] sm:$0xff] }
  0xd6   :  { %v563_v4 = vmul.f32 0.5, %v562_v9  ;;  %2312 = vmatpush.xpose.msk.msra.mxu3 %vm54_vm0, %v3560_v35  ;;  %v323_v13 = vadd.f32 %v3300_v52, %v321_v36  ;;  %858 = vadd.xlane.f32.xlu2 %v857_v31  ;;  %v533_v5 = vmul.f32 0.5, %v3604_v3  ;;  %vm556_vm10 = vweird.f32 %v3525_v53  ;;  %v2607_v53 = vld [vmem:[%s4702_s0 + $0x38] sm:$0xff]  ;;  %v2610_v23 = vld [vmem:[%s4702_s0 + $0x68] sm:$0xff] }
  0xd7   :  { %v574_v35 = vsub.f32 1.5, %v573_v28  ;;  %846 = vadd.xlane.f32.xlu0 %v845_v33  ;;  %v4766_v49 = vsel %vm3586_vm9, %v3432_v20, %v3569_v25  ;;  %v3771_v47 = vmul.f32 %v3527_v60, %v3734_v37  ;;  %v544_v20 = vsub.f32 1.5, %v543_v48  ;;  %vm3799_vm9 = vmor %vm556_vm10, %vm557_vm12 }
  0xd8   :  { %v564_v52 = vsub.f32 1.5, %v563_v4  ;;  %2183 = vmatmul.msk.f32.vlgmr.msra.gmra.mxu0 %vm54_vm0, %v3539_v45  ;;  %v3756_v3 = vmul.f32 %v2605_v26, %v4766_v49  ;;  %v325_v30 = vadd.f32 %v3273_v62, %v323_v13  ;;  %v555_v62 = vmul.f32 %v3630_v38, %v554_v17  ;;  %v2611_v26 = vld [vmem:[%s4702_s0 + $0x60] sm:$0xff] }
  0xd9   :  { %v575_v42 = vmul.f32 %v3661_v63, %v574_v35  ;;  %2188 = vmatmul.msk.f32.vlgmr.msra.gmra.mxu3 %vm54_vm0, %v3720_v54  ;;  %v851_v31 = vsel %vm54_vm0, %v3771_v47, 0.0  ;;  %v3785_v60 = vmul.f32 %v3486_v40, %v3720_v54  ;;  %v509_v44 = vsel %vm3727_vm11, %v3283_v55, %v3470_v34  ;;  %v2606_v40 = vld [vmem:[%s4702_s0 + $0x78] sm:$0xff] }
  0xda   :  { %v565_v25 = vmul.f32 %v3667_v57, %v564_v52  ;;  %v3779_v7 = vmul.f32 %v3312_v29, %v3756_v3  ;;  %v326_v19 = vrot.slane %v325_v30, 4  ;;  %v523_v29 = vmul.f32 0.5, %v3555_v56 }
  0xdb   :  { %v579_v1 = vsel %vm3742_vm8, %v3661_v63, %v575_v42  ;;  %v534_v34 = vsub.f32 1.5, %v533_v5  ;;  %v4771_v56 = vsel %vm3476_vm15, %v3314_v39, %v3465_v6  ;;  %v545_v17 = vmul.f32 %v3650_v27, %v544_v20  ;;  %vm3851_vm15 = vmor %vm546_vm14, %vm547_vm1 }
  0xdc   :  { %v3806_v63 = vmul.f32 %v2606_v40, %v579_v1  ;;  %v569_v55 = vsel %vm3765_vm13, %v3667_v57, %v565_v25  ;;  %v3821_v36 = vmul.f32 %v2607_v53, %v4771_v56  ;;  %v866_v57 = vsel %vm54_vm0, %v3779_v7, 0.0 }
  0xdd   :  { %852 = vadd.xlane.f32.xlu1 %v851_v31  ;;  %v3835_v39 = vmul.f32 %v2608_v22, %v569_v55  ;;  %v854_v6 = vsel %vm54_vm0, %v3785_v60, 0.0  ;;  %v3842_v48 = vmul.f32 %v2609_v11, %v509_v44  ;;  %v327_v4 = vadd.f32 %v326_v19, %v325_v30  ;;  %v4778_v31 = vld [vmem:[#allocation16_spill] sm:$0xff]  ;;  %v2613_v44 = vld [vmem:[%s4702_s0 + $0x50] sm:$0xff]  ;;  %v1083_v22 = vld [vmem:[%s4704_s2 + $0x28] sm:$0xff] }
  0xde   :  { %2216 = vmatpush.xpose.msk.msra.mxu2 %vm54_vm0, %v3806_v63  ;;  %v3830_v28 = vmul.f32 %v3013_v21, %v3806_v63  ;;  %867 = vadd.xlane.f32.xlu2 %v866_v57  ;;  %v559_v21 = vsel %vm3799_vm9, %v3630_v38, %v555_v62  ;;  %vm536_vm2 = vweird.f32 %v3388_v32  ;;  %vm537_vm3 = vweird.f32 %v3501_v43  ;;  %v4776_v32 = vld [vmem:[#allocation14_spill] sm:$0xff]  ;;  %v4777_v62 = vld [vmem:[#allocation15_spill] sm:$0xff] }
  0xdf   :  { %855 = vadd.xlane.f32.xlu0 %v854_v6  ;;  %v830_v10 = vmul.f32 %v3392_v51, %v3821_v36  ;;  %v328_v38 = vrot.slane %v327_v4, 2  ;;  %v524_v41 = vsub.f32 1.5, %v523_v29  ;;  %v3869_v13 = vmul.f32 %v3085_v59, %v3835_v39  ;;  %vm3884_vm4 = vmor %vm536_vm2, %vm537_vm3 }
  0xe0   :  { %2199 = vmatpush.xpose.msk.msra.mxu1 %vm54_vm0, %v3830_v28  ;;  %2184 = vmatmul.msk.f32.gmra.mxu0 %vm54_vm0, %v3593_v8  ;;  %v3874_v35 = vmul.f32 %v2610_v23, %v559_v21  ;;  %v535_v33 = vmul.f32 %v3501_v43, %v534_v34  ;;  %v831_v51 = vmul.f32 %v3355_v61, %v3842_v48  ;;  %vm526_vm5 = vweird.f32 %v3324_v58 }
  0xe1   :  { %2189 = vmatmul.msk.f32.gmra.mxu3 %vm54_vm0, %v3565_v2  ;;  %v549_v5 = vsel %vm3851_vm15, %v3650_v27, %v545_v17  ;;  %v329_v18 = vadd.f32 %v328_v38, %v327_v4  ;;  %vm527_vm6 = vweird.f32 %v3449_v14  ;;  %v860_v61 = vsel %vm54_vm0, %v830_v10, 0.0 }
  0xe2   :  { %2217 = vmatpush.xpose.msk.msra.mxu2 %vm54_vm0, %v3835_v39  ;;  %v3897_v27 = vmul.f32 %v4776_v32, %v3874_v35  ;;  %v592_v49 = vmul.f32 %v2611_v26, %v549_v5  ;;  %vm332_vm7 = vcmask 253952   ;;  %v525_v58 = vmul.f32 %v3449_v14, %v524_v41  ;;  %vm528_vm11 = vmor %vm526_vm5, %vm527_vm6 }
  0xe3   :  { %v330_v52 = vrot.slane %v329_v18, 1  ;;  %v863_v30 = vsel %vm54_vm0, %v831_v51, 0.0  ;;  %v539_v42 = vsel %vm3884_vm4, %v3501_v43, %v535_v33  ;;  %v2612_v43 = vld [vmem:[%s4702_s0 + $0x58] sm:$0xff]  ;;  %vm1099_vm9 = vcmp.gt.f32.partialorder %v1083_v22, 0.1 }
  0xe4   :  { %2200 = vmatpush.xpose.msk.msra.mxu1 %vm54_vm0, %v3869_v13  ;;  %v3915_v20 = vmul.f32 %v4777_v62, %v592_v49  ;;  %v591_v25 = vmul.f32 %v2612_v43, %v539_v42  ;;  %v529_v19 = vsel %vm528_vm11, %v3449_v14, %v525_v58  ;;  %v4779_v14 = vld [vmem:[#allocation17_spill] sm:$0xff] }
  0xe5   :  { %861 = vadd.xlane.f32.xlu1 %v860_v61  ;;  %v331_v15 = vadd.f32 %v330_v52, %v329_v18  ;;  %v590_v29 = vmul.f32 %v2613_v44, %v529_v19  ;;  %v1079_v61 = vld [vmem:[%s4704_s2 + $0x8] sm:$0xff] }
  0xe6   :  { %2218 = vmatpush.xpose.msk.msra.mxu2 %vm54_vm0, %v3874_v35  ;;  %v3925_v1 = vmul.f32 %v4778_v31, %v591_v25  ;;  %vm1095_vm15 = vcmp.gt.f32.partialorder %v1079_v61, 0.1 }
  0xe7   :  { %864 = vadd.xlane.f32.xlu0 %v863_v30  ;;  %333 = vst.msk [vmem:[#allocation3] sm:$0x1] %vm332_vm7, %v331_v15  ;;  %v3938_v9 = vmul.f32 %v4779_v14, %v590_v29 }
  0xe8   :  { %2201 = vmatpush.xpose.msk.msra.mxu1 %vm54_vm0, %v3897_v27  ;;  %2185 = vmatmul.msk.f32.gmra.mxu0 %vm54_vm0, %v3676_v24 }
  0xe9   :  { %2190 = vmatmul.msk.f32.gmra.mxu3 %vm54_vm0, %v3821_v36 }
  0xea   :  { %2219 = vmatpush.xpose.msk.msra.mxu2 %vm54_vm0, %v592_v49 }
  0xec   :  { %2202 = vmatpush.xpose.msk.msra.mxu1 %vm54_vm0, %v3915_v20 }
  0xee   :  { %2220 = vmatpush.xpose.msk.msra.mxu2 %vm54_vm0, %v591_v25 }
  0xf0   :  { %2203 = vmatpush.xpose.msk.msra.mxu1 %vm54_vm0, %v3925_v1  ;;  %2186 = vmatmul.msk.f32.gmra.mxu0 %vm54_vm0, %v3659_v12 }
  0xf1   :  { %2191 = vmatmul.msk.f32.gmra.mxu3 %vm54_vm0, %v3842_v48 }
  0xf2   :  { %2221 = vmatpush.xpose.msk.msra.mxu2 %vm54_vm0, %v590_v29 }
  0xf4   :  { %2204 = vmatpush.xpose.msk.msra.mxu1 %vm54_vm0, %v3938_v9 }
  0xf6   :  { %2222 = vmatpush.xpose.msk.msra.mxu2 %vm54_vm0, %v3756_v3 }
  0xf8   :  { %2205 = vmatpush.xpose.msk.msra.mxu1 %vm54_vm0, %v3779_v7  ;;  %2187 = vmatmul.msk.f32.gmra.mxu0 %vm54_vm0, %v3734_v37 }
  0xf9   :  { %2192 = vmatmul.msk.f32.gmra.mxu3 %vm54_vm0, %v3756_v3 }
  0xfa   :  { %2223 = vmatpush.xpose.msk.msra.mxu2 %vm54_vm0, %v3842_v48 }
  0xfc   :  { %2206 = vmatpush.xpose.msk.msra.mxu1 %vm54_vm0, %v831_v51 }
  0xfe   :  { %2224 = vmatpush.xpose.msk.msra.mxu2 %vm54_vm0, %v3821_v36 }
 0x100   :  { %2207 = vmatpush.xpose.msk.msra.mxu1 %vm54_vm0, %v830_v10 }
 0x101   :  { %2193 = vmatmul.msk.f32.gmra.mxu3 %vm54_vm0, %v590_v29 }
 0x102   :  { %2225 = vmatpush.xpose.msk.msra.mxu2 %vm54_vm0, %v3565_v2  ;;  %v4780_v2 = vld [vmem:[#allocation19_spill] sm:$0xff] }
 0x104   :  { %2208 = vmatpush.xpose.msk.msra.mxu1 %vm54_vm0, %v3656_v46  ;;  %v4781_v46 = vld [vmem:[#allocation18_spill] sm:$0xff] }
 0x106   :  { %2226 = vmatpush.xpose.msk.msra.mxu2 %vm54_vm0, %v3720_v54 }
 0x108   :  { %2209 = vmatpush.xpose.msk.msra.mxu1 %vm54_vm0, %v3785_v60 }
 0x109   :  { %2194 = vmatmul.msk.f32.gmra.mxu3 %vm54_vm0, %v591_v25 }
 0x10a   :  { %2227 = vmatpush.xpose.msk.msra.mxu2 %vm54_vm0, %v3734_v37  ;;  %v1078_v37 = vld [vmem:[%s4704_s2] sm:$0xff] }
 0x10b   :  { %vm1094_vm8 = vcmp.gt.f32.partialorder %v1078_v37, 0.1 }
 0x10c   :  { %2210 = vmatpush.xpose.msk.msra.mxu1 %vm54_vm0, %v3771_v47 }
 0x10e   :  { %2228 = vmatpush.xpose.msk.msra.mxu2 %vm54_vm0, %v3659_v12  ;;  %v992_v12 = vld [vmem:[#allocation3] sm:$0x1] }
 0x110   :  { %2211 = vmatpush.xpose.msk.msra.mxu1 %vm54_vm0, %v3673_v16  ;;  %v2666_v16 = vmov 1.0  }
 0x111   :  { %2195 = vmatmul.msk.f32.gmra.mxu3 %vm54_vm0, %v592_v49 }
 0x112   :  { %2229 = vmatpush.xpose.msk.msra.mxu2 %vm54_vm0, %v3676_v24 }
 0x114   :  { %2212 = vmatpush.xpose.msk.msra.mxu1 %vm54_vm0, %v3703_v0 }
 0x116   :  { %2230 = vmatpush.xpose.msk.msra.mxu2 %vm54_vm0, %v3593_v8  ;;  %v1026_v8 = vlaneseq }
 0x118   :  { %2213 = vmatpush.xpose.msk.msra.mxu1 %vm54_vm0, %v4780_v2  ;;  %v3995_v24 = vshrl.u32 %v1026_v8, 7  ;;  %v3997_v0 = vand.u32 127, %v1026_v8 }
 0x119   :  { %2196 = vmatmul.msk.f32.gmra.mxu3 %vm54_vm0, %v3874_v35 }
 0x11a   :  { %2231 = vmatpush.xpose.msk.msra.mxu2 %vm54_vm0, %v3539_v45  ;;  %vm1062_vm10 = vcmp.eq.s32.totalorder %v3995_v24, %v3997_v0  ;;  %v1032_v60 = vadd.s32 40, %v3995_v24  ;;  %v1028_v53 = vadd.s32 8, %v3995_v24  ;;  %v1033_v6 = vadd.s32 48, %v3995_v24 }
 0x11b   :  { %v1029_v11 = vadd.s32 16, %v3995_v24 }
 0x11c   :  { %2214 = vmatpush.xpose.msk.msra.mxu1 %vm54_vm0, %v4781_v46  ;;  %vm1067_vm12 = vcmp.eq.s32.totalorder %v1032_v60, %v3997_v0  ;;  %vm1063_vm13 = vcmp.eq.s32.totalorder %v1028_v53, %v3997_v0  ;;  %vm1068_vm14 = vcmp.eq.s32.totalorder %v1033_v6, %v3997_v0  ;;  %v1084_v53 = vld [vmem:[%s4704_s2 + $0x30] sm:$0xff] }
 0x11d   :  { %2232 = vmatmul.msk.f32.vlgmr.msra.gmra.mxu2 %vm54_vm0, %v992_v12  ;;  %vm1064_vm1 = vcmp.eq.s32.totalorder %v1029_v11, %v3997_v0  ;;  %vm1100_vm2 = vcmp.gt.f32.partialorder %v1084_v53, 0.1 }
 0x11f   :  { %2215 = vmatmul.msk.f32.vlgmr.msra.gmra.mxu1 %vm54_vm0, %v2666_v16 }
 0x121   :  { %2197 = vmatmul.msk.f32.gmra.mxu3 %vm54_vm0, %v3835_v39 }
 0x129   :  { %2198 = vmatmul.msk.f32.gmra.mxu3 %vm54_vm0, %v3806_v63 }
 0x155   :  { %v725_v45 = vpop.f32.mrf.mxu0 }
 0x156   :  { %v773_v54 = vsub.f32 1.0, %v725_v45 }
 0x158   :  { %789 = vst [vmem:[#allocation8] sm:$0xff] %v773_v54  ;;  %v2249_v3 = vadd.f32 -0.1, %v773_v54  ;;  %v1500_v47 = vsub.f32 1.4, %v773_v54  ;;  %v1110_v7 = vsel %vm1062_vm10, 100000.0, %v773_v54 }
 0x159   :  { %1126 = vmin.xlane.f32.xlu2 %v1110_v7 }
 0x15a   :  { %v1284_v40 = vmax.f32 %v2249_v3, 0.0  ;;  %v1300_v63 = vmul.f32 10.0, %v2249_v3  ;;  %v1516_v55 = vmax.f32 %v1500_v47, 0.0  ;;  %v1532_v34 = vmul.f32 10.0, %v1500_v47 }
 0x15c   :  { %v740_v56 = vpop.f32.mrf.mxu3  ;;  %v1316_v36 = vmul.f32 %v1300_v63, %v1284_v40  ;;  %v1548_v57 = vmul.f32 %v1532_v34, %v1516_v55 }
 0x15d   :  { %v778_v17 = vsub.f32 1.0, %v740_v56  ;;  %v728_v39 = vpop.f32.mrf.mxu0 }
 0x15e   :  { %v1332_v48 = vsel %vm1094_vm8, 0.0, %v1316_v36  ;;  %v774_v50 = vsub.f32 1.0, %v728_v39  ;;  %v1564_v38 = vsel %vm1094_vm8, %v1548_v57, 0.0 }
 0x15f   :  { %794 = vst [vmem:[#allocation8 + $0x28] sm:$0xff] %v778_v17  ;;  %v2254_v21 = vadd.f32 -0.1, %v778_v17  ;;  %v1505_v4 = vsub.f32 1.4, %v778_v17  ;;  %v1115_v10 = vsel %vm1067_vm12, 100000.0, %v778_v17 }
 0x160   :  { %v2265_v41 = vadd.f32 -36.1, %v1332_v48  ;;  %790 = vst [vmem:[#allocation8 + $0x8] sm:$0xff] %v774_v50  ;;  %v2250_v5 = vadd.f32 -0.1, %v774_v50  ;;  %v1111_v59 = vsel %vm1063_vm13, 100000.0, %v774_v50 }
 0x161   :  { %v1289_v23 = vmax.f32 %v2254_v21, 0.0  ;;  %v1305_v35 = vmul.f32 10.0, %v2254_v21  ;;  %v1521_v33 = vmax.f32 %v1505_v4, 0.0  ;;  %v1537_v51 = vmul.f32 10.0, %v1505_v4  ;;  %1136 = vmin.xlane.f32.xlu2 %v1115_v10  ;;  %1128 = vmin.xlane.f32.xlu0 %v1111_v59 }
 0x162   :  { %v1501_v18 = vsub.f32 1.4, %v774_v50  ;;  %v2281_v52 = vadd.f32 -19.6, %v1564_v38  ;;  %v1285_v49 = vmax.f32 %v2250_v5, 0.0  ;;  %v1301_v58 = vmul.f32 10.0, %v2250_v5 }
 0x163   :  { %v1321_v32 = vmul.f32 %v1305_v35, %v1289_v23  ;;  %v1553_v26 = vmul.f32 %v1537_v51, %v1521_v33  ;;  %v1364_v44 = vmul.f32 1.442695, %v2265_v41  ;;  %v4042_v38 = vld [vmem:[%s4704_s2 + $0x10] sm:$0xff] }
 0x164   :  { %v1517_v30 = vmax.f32 %v1501_v18, 0.0  ;;  %v1533_v42 = vmul.f32 10.0, %v1501_v18  ;;  %v743_v15 = vpop.f32.mrf.mxu3  ;;  %v1596_v43 = vmul.f32 1.442695, %v2281_v52  ;;  %v1317_v14 = vmul.f32 %v1301_v58, %v1285_v49 }
 0x165   :  { %v779_v62 = vsub.f32 1.0, %v743_v15  ;;  %v1337_v25 = vsel %vm1099_vm9, 0.0, %v1321_v32  ;;  %v731_v19 = vpop.f32.mrf.mxu0  ;;  %v1569_v29 = vsel %vm1099_vm9, %v1553_v26, 0.0  ;;  %vm1096_vm3 = vcmp.gt.f32.partialorder %v4042_v38, 0.1  ;;  %v1085_v26 = vld [vmem:[%s4704_s2 + $0x38] sm:$0xff] }
 0x166   :  { %v2270_v31 = vadd.f32 -36.1, %v1337_v25  ;;  %v775_v12 = vsub.f32 1.0, %v731_v19  ;;  %v1549_v16 = vmul.f32 %v1533_v42, %v1517_v30  ;;  %v2286_v54 = vadd.f32 -19.6, %v1569_v29 }
 0x167   :  { %795 = vst [vmem:[#allocation8 + $0x30] sm:$0xff] %v779_v62  ;;  %v2255_v2 = vadd.f32 -0.1, %v779_v62  ;;  %v1506_v46 = vsub.f32 1.4, %v779_v62  ;;  %v1116_v8 = vsel %vm1068_vm14, 100000.0, %v779_v62  ;;  %2398 = vpow2.f32 %v1596_v43 }
 0x168   :  { %v1374_v45 = vmul.f32 1.442695, %v2270_v31  ;;  %v1333_v37 = vsel %vm1095_vm15, 0.0, %v1317_v14  ;;  %791 = vst [vmem:[#allocation8 + $0x10] sm:$0xff] %v775_v12  ;;  %1138 = vmin.xlane.f32.xlu1 %v1116_v8  ;;  %v1502_v40 = vsub.f32 1.4, %v775_v12 }
 0x169   :  { %v1290_v3 = vmax.f32 %v2255_v2, 0.0  ;;  %v1306_v47 = vmul.f32 10.0, %v2255_v2  ;;  %v1522_v7 = vmax.f32 %v1506_v46, 0.0  ;;  %v1538_v60 = vmul.f32 10.0, %v1506_v46 }
 0x16a   :  { %v1112_v63 = vsel %vm1064_vm1, 100000.0, %v775_v12  ;;  %2400 = vpow2.f32 %v1374_v45  ;;  %v2266_v55 = vadd.f32 -36.1, %v1333_v37  ;;  %v1565_v34 = vsel %vm1095_vm15, %v1549_v16, 0.0 }
 0x16b   :  { %1130 = vmin.xlane.f32.xlu2 %v1112_v63  ;;  %2402 = vpow2.f32 %v1364_v44  ;;  %v1606_v36 = vmul.f32 1.442695, %v2286_v54  ;;  %v1518_v17 = vmax.f32 %v1502_v40, 0.0  ;;  %v1534_v57 = vmul.f32 10.0, %v1502_v40  ;;  %v1081_v63 = vld [vmem:[%s4704_s2 + $0x18] sm:$0xff] }
 0x16c   :  { %v746_v56 = vpop.f32.mrf.mxu3  ;;  %v2282_v39 = vadd.f32 -19.6, %v1565_v34  ;;  %v1366_v11 = vmul.f32 1.442695, %v2266_v55  ;;  %v1554_v48 = vmul.f32 %v1538_v60, %v1522_v7  ;;  %v1322_v21 = vmul.f32 %v1306_v47, %v1290_v3 }
 0x16d   :  { %v4031_v22 = vsub.f32 1.0, %v746_v56  ;;  %v734_v6 = vpop.f32.mrf.mxu0  ;;  %v4033_v4 = vpop.eup %2398  ;;  %2404 = vpow2.f32 %v1606_v36  ;;  %v1550_v5 = vmul.f32 %v1534_v57, %v1518_v17  ;;  %v2251_v52 = vadd.f32 -0.1, %v775_v12 }
 0x16e   :  { %v4037_v10 = vsub.f32 1.0, %v734_v6  ;;  %v1598_v23 = vmul.f32 1.442695, %v2282_v39  ;;  %v1570_v35 = vsel %vm1100_vm2, %v1554_v48, 0.0  ;;  %v1338_v51 = vsel %vm1100_vm2, 0.0, %v1322_v21 }
 0x16f   :  { %796 = vst [vmem:[#allocation8 + $0x38] sm:$0xff] %v4031_v22  ;;  %v1507_v50 = vsub.f32 1.4, %v4031_v22  ;;  %v2256_v33 = vadd.f32 -0.1, %v4031_v22  ;;  %2406 = vpow2.f32 %v1366_v11  ;;  %v1566_v62 = vsel %vm1096_vm3, %v1550_v5, 0.0 }
 0x170   :  { %v4044_v41 = vpop.eup %2400  ;;  %792 = vst [vmem:[#allocation8 + $0x18] sm:$0xff] %v4037_v10  ;;  %1628 = vadd.xlane.f32.xlu1 %v4033_v4  ;;  %v2287_v32 = vadd.f32 -19.6, %v1570_v35  ;;  %2408 = vpow2.f32 %v1598_v23  ;;  %v2271_v58 = vadd.f32 -36.1, %v1338_v51  ;;  %v1286_v29 = vmax.f32 %v2251_v52, 0.0 }
 0x171   :  { %1406 = vadd.xlane.f32.xlu0 %v4044_v41  ;;  %v4052_v18 = vpop.eup %2402  ;;  %v1523_v59 = vmax.f32 %v1507_v50, 0.0  ;;  %v1539_v61 = vmul.f32 10.0, %v1507_v50  ;;  %v1291_v30 = vmax.f32 %v2256_v33, 0.0  ;;  %v1307_v42 = vmul.f32 10.0, %v2256_v33  ;;  %v4102_v5 = vld [vmem:[%s4704_s2 + $0x40] sm:$0xff] }
 0x172   :  { %v2252_v43 = vadd.f32 -0.1, %v4037_v10  ;;  %v1608_v19 = vmul.f32 1.442695, %v2287_v32  ;;  %vm1101_vm4 = vcmp.gt.f32.partialorder %v1085_v26, 0.1 }
 0x173   :  { %1396 = vadd.xlane.f32.xlu2 %v4052_v18  ;;  %v1555_v31 = vmul.f32 %v1539_v61, %v1523_v59  ;;  %v4064_v44 = vpop.eup %2404  ;;  %v1302_v14 = vmul.f32 10.0, %v2251_v52  ;;  %v1030_v12 = vadd.s32 24, %v3995_v24  ;;  %v1376_v16 = vmul.f32 1.442695, %v2271_v58 }
 0x174   :  { %v749_v49 = vpop.f32.mrf.mxu3  ;;  %v2283_v8 = vadd.f32 -19.6, %v1566_v62  ;;  %v1287_v3 = vmax.f32 %v2252_v43, 0.0  ;;  %v1303_v47 = vmul.f32 10.0, %v2252_v43  ;;  %2410 = vpow2.f32 %v1608_v19  ;;  %v1082_v62 = vld [vmem:[%s4704_s2 + $0x20] sm:$0xff] }
 0x175   :  { %v4059_v15 = vsub.f32 1.0, %v749_v49  ;;  %v737_v25 = vpop.f32.mrf.mxu0  ;;  %v4069_v46 = vpop.eup %2406  ;;  %v1571_v54 = vsel %vm1101_vm4, %v1555_v31, 0.0  ;;  %v1323_v7 = vmul.f32 %v1307_v42, %v1291_v30  ;;  %v1503_v60 = vsub.f32 1.4, %v4037_v10 }
 0x176   :  { %v4067_v2 = vsub.f32 1.0, %v737_v25  ;;  %v4077_v37 = vpop.eup %2408  ;;  %v1318_v40 = vmul.f32 %v1302_v14, %v1286_v29  ;;  %vm1065_vm5 = vcmp.eq.s32.totalorder %v1030_v12, %v3997_v0  ;;  %2412 = vpow2.f32 %v1376_v16 }
 0x177   :  { %797 = vst [vmem:[#allocation8 + $0x40] sm:$0xff] %v4059_v15  ;;  %v1508_v45 = vsub.f32 1.4, %v4059_v15  ;;  %v1600_v34 = vmul.f32 1.442695, %v2283_v8  ;;  %v1339_v6 = vsel %vm1101_vm4, 0.0, %v1323_v7  ;;  %v1319_v11 = vmul.f32 %v1303_v47, %v1287_v3 }
 0x178   :  { %793 = vst [vmem:[#allocation8 + $0x20] sm:$0xff] %v4067_v2  ;;  %1638 = vadd.xlane.f32.xlu1 %v4064_v44  ;;  %v2288_v53 = vadd.f32 -19.6, %v1571_v54  ;;  %v1504_v17 = vsub.f32 1.4, %v4067_v2  ;;  %v1519_v48 = vmax.f32 %v1503_v60, 0.0 }
 0x179   :  { %1398 = vadd.xlane.f32.xlu0 %v4069_v46  ;;  %v1524_v56 = vmax.f32 %v1508_v45, 0.0  ;;  %v1540_v36 = vmul.f32 10.0, %v1508_v45  ;;  %v2253_v39 = vadd.f32 -0.1, %v4067_v2  ;;  %vm1097_vm6 = vcmp.gt.f32.partialorder %v1081_v63, 0.1 }
 0x17a   :  { %v1535_v21 = vmul.f32 10.0, %v1503_v60  ;;  %v1334_v50 = vsel %vm1096_vm3, 0.0, %v1318_v40  ;;  %v4093_v23 = vpop.eup %2410  ;;  %v1113_v35 = vsel %vm1065_vm5, 100000.0, %v4037_v10  ;;  %2414 = vpow2.f32 %v1600_v34 }
 0x17b   :  { %1630 = vadd.xlane.f32.xlu2 %v4077_v37  ;;  %v1031_v33 = vadd.s32 32, %v3995_v24  ;;  %v1610_v51 = vmul.f32 1.442695, %v2288_v53  ;;  %v1520_v59 = vmax.f32 %v1504_v17, 0.0  ;;  %v1536_v61 = vmul.f32 10.0, %v1504_v17 }
 0x17c   :  { %v752_v55 = vpop.f32.mrf.mxu3  ;;  %v2272_v38 = vadd.f32 -36.1, %v1339_v6  ;;  %v1335_v52 = vsel %vm1097_vm6, 0.0, %v1319_v11  ;;  %v4106_v32 = vpop.eup %2412  ;;  %v1288_v10 = vmax.f32 %v2253_v39, 0.0  ;;  %v1304_v26 = vmul.f32 10.0, %v2253_v39 }
 0x17d   :  { %v4086_v57 = vsub.f32 1.0, %v752_v55  ;;  %v2267_v49 = vadd.f32 -36.1, %v1334_v50  ;;  %v1556_v58 = vmul.f32 %v1540_v36, %v1524_v56  ;;  %v2257_v30 = vadd.f32 -0.1, %v4059_v15 }
 0x17e   :  { %vm1102_vm7 = vcmp.gt.f32.partialorder %v4102_v5, 0.1  ;;  %v1551_v42 = vmul.f32 %v1535_v21, %v1519_v48  ;;  %2416 = vpow2.f32 %v1610_v51  ;;  %v2268_v19 = vadd.f32 -36.1, %v1335_v52  ;;  %v1087_v21 = vld [vmem:[%s4704_s2 + $0x48] sm:$0xff] }
 0x17f   :  { %798 = vst [vmem:[#allocation8 + $0x48] sm:$0xff] %v4086_v57  ;;  %v2258_v43 = vadd.f32 -0.1, %v4086_v57  ;;  %vm1066_vm11 = vcmp.eq.s32.totalorder %v1031_v33, %v3997_v0  ;;  %v1378_v29 = vmul.f32 1.442695, %v2272_v38  ;;  %v1552_v14 = vmul.f32 %v1536_v61, %v1520_v59 }
 0x180   :  { %1132 = vmin.xlane.f32.xlu1 %v1113_v35  ;;  %v4118_v12 = vpop.eup %2414  ;;  %v1368_v16 = vmul.f32 1.442695, %v2267_v49  ;;  %v1572_v8 = vsel %vm1102_vm7, %v1556_v58, 0.0  ;;  %vm1098_vm10 = vcmp.gt.f32.partialorder %v1082_v62, 0.1  ;;  %v1320_v45 = vmul.f32 %v1304_v26, %v1288_v10  ;;  %v1088_v10 = vld [vmem:[%s4704_s2 + $0x50] sm:$0xff] }
 0x181   :  { %1640 = vadd.xlane.f32.xlu0 %v4093_v23  ;;  %v1292_v54 = vmax.f32 %v2257_v30, 0.0  ;;  %v1308_v3 = vmul.f32 10.0, %v2257_v30  ;;  %v1567_v7 = vsel %vm1097_vm6, %v1551_v42, 0.0  ;;  %v1293_v60 = vmax.f32 %v2258_v43, 0.0 }
 0x182   :  { %v1509_v40 = vsub.f32 1.4, %v4086_v57  ;;  %v1114_v55 = vsel %vm1066_vm11, 100000.0, %v4067_v2  ;;  %v1370_v34 = vmul.f32 1.442695, %v2268_v19  ;;  %v1309_v53 = vmul.f32 10.0, %v2258_v43 }
 0x183   :  { %1408 = vadd.xlane.f32.xlu2 %v4106_v32  ;;  %2418 = vpow2.f32 %v1378_v29  ;;  %v2289_v56 = vadd.f32 -19.6, %v1572_v8  ;;  %v1568_v36 = vsel %vm1098_vm10, %v1552_v14, 0.0  ;;  %v2284_v63 = vadd.f32 -19.6, %v1567_v7 }
 0x184   :  { %v755_v25 = vpop.f32.mrf.mxu3  ;;  %v4129_v17 = vpop.eup %2416  ;;  %2420 = vpow2.f32 %v1368_v16  ;;  %v1336_v6 = vsel %vm1098_vm10, 0.0, %v1320_v45  ;;  %v1324_v2 = vmul.f32 %v1308_v3, %v1292_v54  ;;  %v1525_v50 = vmax.f32 %v1509_v40, 0.0 }
 0x185   :  { %v4115_v31 = vsub.f32 1.0, %v755_v25  ;;  %v1541_v35 = vmul.f32 10.0, %v1509_v40  ;;  %2422 = vpow2.f32 %v1370_v34  ;;  %v2285_v51 = vadd.f32 -19.6, %v1568_v36  ;;  %v1089_v34 = vld [vmem:[%s4704_s2 + $0x58] sm:$0xff] }
 0x186   :  { %v1612_v61 = vmul.f32 1.442695, %v2289_v56  ;;  %v2269_v38 = vadd.f32 -36.1, %v1336_v6  ;;  %v1325_v52 = vmul.f32 %v1309_v53, %v1293_v60  ;;  %v1602_v58 = vmul.f32 1.442695, %v2284_v63 }
 0x187   :  { %799 = vst [vmem:[#allocation8 + $0x50] sm:$0xff] %v4115_v31  ;;  %v2259_v47 = vadd.f32 -0.1, %v4115_v31  ;;  %v1510_v39 = vsub.f32 1.4, %v4115_v31  ;;  %v1340_v62 = vsel %vm1102_vm7, 0.0, %v1324_v2  ;;  %v1557_v45 = vmul.f32 %v1541_v35, %v1525_v50 }
 0x188   :  { %1632 = vadd.xlane.f32.xlu1 %v4118_v12  ;;  %vm1103_vm8 = vcmp.gt.f32.partialorder %v1087_v21, 0.1  ;;  %v1604_v19 = vmul.f32 1.442695, %v2285_v51  ;;  %vm1104_vm12 = vcmp.gt.f32.partialorder %v1088_v10, 0.1  ;;  %2424 = vpow2.f32 %v1612_v61 }
 0x189   :  { %1134 = vmin.xlane.f32.xlu0 %v1114_v55  ;;  %v1294_v11 = vmax.f32 %v2259_v47, 0.0  ;;  %v1310_v48 = vmul.f32 10.0, %v2259_v47  ;;  %v1526_v26 = vmax.f32 %v1510_v39, 0.0  ;;  %v1542_v49 = vmul.f32 10.0, %v1510_v39  ;;  %v4142_v30 = vpop.eup %2418 }
 0x18a   :  { %v2421_v25 = vpop.eup %2420  ;;  %v1372_v29 = vmul.f32 1.442695, %v2269_v38  ;;  %v1341_v14 = vsel %vm1103_vm8, 0.0, %v1325_v52  ;;  %2426 = vpow2.f32 %v1602_v58  ;;  %v2273_v8 = vadd.f32 -36.1, %v1340_v62 }
 0x18b   :  { %1642 = vadd.xlane.f32.xlu2 %v4129_v17  ;;  %v1326_v43 = vmul.f32 %v1310_v48, %v1294_v11  ;;  %v2423_v16 = vpop.eup %2422  ;;  %v1558_v54 = vmul.f32 %v1542_v49, %v1526_v26  ;;  %2428 = vpow2.f32 %v1604_v19  ;;  %v2274_v40 = vadd.f32 -36.1, %v1341_v14  ;;  %v1090_v49 = vld [vmem:[%s4704_s2 + $0x60] sm:$0xff] }
 0x18c   :  { %v758_v33 = vpop.f32.mrf.mxu3  ;;  %2430 = vpow2.f32 %v1372_v29  ;;  %v1380_v53 = vmul.f32 1.442695, %v2273_v8  ;;  %v1573_v36 = vsel %vm1103_vm8, %v1557_v45, 0.0  ;;  %vm1105_vm13 = vcmp.gt.f32.partialorder %v1089_v34, 0.1 }
 0x18d   :  { %v4137_v59 = vsub.f32 1.0, %v758_v33  ;;  %v1342_v7 = vsel %vm1104_vm12, 0.0, %v1326_v43  ;;  %v1574_v39 = vsel %vm1104_vm12, %v1558_v54, 0.0  ;;  %v1382_v33 = vmul.f32 1.442695, %v2274_v40 }
 0x18e   :  { %v2275_v56 = vadd.f32 -36.1, %v1342_v7  ;;  %v4159_v63 = vpop.eup %2424  ;;  %v1477_v21 = vadd.f32 %v4069_v46, %v4052_v18  ;;  %v1709_v51 = vadd.f32 %v4077_v37, %v4033_v4  ;;  %2432 = vpow2.f32 %v1380_v53 }
 0x18f   :  { %800 = vst [vmem:[#allocation8 + $0x58] sm:$0xff] %v4137_v59  ;;  %v1511_v42 = vsub.f32 1.4, %v4137_v59  ;;  %v2260_v3 = vadd.f32 -0.1, %v4137_v59  ;;  %2434 = vpow2.f32 %v1382_v33  ;;  %v2667_v45 = vmov 127.0  }
 0x190   :  { %1410 = vadd.xlane.f32.xlu1 %v4142_v30  ;;  %v2427_v50 = vpop.eup %2426  ;;  %v2290_v10 = vadd.f32 -19.6, %v1573_v36  ;;  %v2291_v26 = vadd.f32 -19.6, %v1574_v39  ;;  %v1384_v18 = vmul.f32 1.442695, %v2275_v56  ;;  %v1710_v29 = vadd.f32 %v4118_v12, %v1709_v51 }
 0x191   :  { %1400 = vadd.xlane.f32.xlu0 %v2421_v25  ;;  %v1527_v5 = vmax.f32 %v1511_v42, 0.0  ;;  %v1543_v47 = vmul.f32 10.0, %v1511_v42  ;;  %v1295_v6 = vmax.f32 %v2260_v3, 0.0  ;;  %v1311_v11 = vmul.f32 10.0, %v2260_v3  ;;  %v2429_v52 = vpop.eup %2428 }
 0x192   :  { %v2431_v58 = vpop.eup %2430  ;;  %v1478_v42 = vadd.f32 %v2421_v25, %v1477_v21  ;;  %vm1106_vm9 = vcmp.gt.f32.partialorder %v1090_v49, 0.1  ;;  %2436 = vrcp.f32 %v2667_v45  ;;  %v1614_v54 = vmul.f32 1.442695, %v2290_v10 }
 0x193   :  { %1402 = vadd.xlane.f32.xlu2 %v2423_v16  ;;  %v1559_v2 = vmul.f32 %v1543_v47, %v1527_v5  ;;  %v1327_v4 = vmul.f32 %v1311_v11, %v1295_v6  ;;  %v1616_v25 = vmul.f32 1.442695, %v2291_v26  ;;  %v1711_v12 = vadd.f32 %v2427_v50, %v1710_v29  ;;  %v1091_v11 = vld [vmem:[%s4704_s2 + $0x68] sm:$0xff] }
 0x194   :  { %v761_v60 = vpop.f32.mrf.mxu3  ;;  %v1479_v14 = vadd.f32 %v2423_v16, %v1478_v42  ;;  %v4180_v40 = vpop.eup %2432  ;;  %2438 = vpow2.f32 %v1384_v18  ;;  %vm1107_vm14 = vcmp.gt.f32.partialorder %v1091_v11, 0.1  ;;  %v1092_v42 = vld [vmem:[%s4704_s2 + $0x70] sm:$0xff]  ;;  %v2668_v18 = vmov 0.0  }
 0x195   :  { %v4152_v55 = vsub.f32 1.0, %v761_v60  ;;  %v1575_v46 = vsel %vm1105_vm13, %v1559_v2, 0.0  ;;  %v1343_v60 = vsel %vm1105_vm13, 0.0, %v1327_v4  ;;  %v4187_v34 = vpop.eup %2434  ;;  %2440 = vpow2.f32 %v1614_v54  ;;  %334 = vst [vmem:[#allocation4] sm:$0x1] %v2668_v18 }
 0x196   :  { %v2292_v3 = vadd.f32 -19.6, %v1575_v46  ;;  %v1480_v7 = vadd.f32 %v2431_v58, %v1479_v14  ;;  %v2276_v2 = vadd.f32 -36.1, %v1343_v60  ;;  %2442 = vpow2.f32 %v1616_v25  ;;  %335 = vst [vmem:[#allocation5] sm:$0x1] %v2668_v18 }
 0x197   :  { %801 = vst [vmem:[#allocation8 + $0x60] sm:$0xff] %v4152_v55  ;;  %v2261_v48 = vadd.f32 -0.1, %v4152_v55  ;;  %v1512_v35 = vsub.f32 1.4, %v4152_v55  ;;  %vm2056_vm3 = vcmp.eq.s32.totalorder %v3995_v24, 1 }
 0x198   :  { %1644 = vadd.xlane.f32.xlu1 %v4159_v63  ;;  %v4191_v21 = vpop.eup %2436  ;;  %vm1108_vm1 = vcmp.gt.f32.partialorder %v1092_v42, 0.1  ;;  %vm2055_vm5 = vcmp.eq.s32.totalorder %v3995_v24, 0  ;;  %vm1223_vm8 = vcmask 7168  }
 0x199   :  { %v1296_v61 = vmax.f32 %v2261_v48, 0.0  ;;  %v1312_v38 = vmul.f32 10.0, %v2261_v48  ;;  %1634 = vadd.xlane.f32.xlu0 %v2427_v50  ;;  %v1528_v37 = vmax.f32 %v1512_v35, 0.0  ;;  %v1544_v62 = vmul.f32 10.0, %v1512_v35 }
 0x19a   :  { %v1712_v48 = vadd.f32 %v2429_v52, %v1711_v12  ;;  %v1481_v50 = vadd.f32 %v4044_v41, %v1480_v7  ;;  %v1618_v35 = vmul.f32 1.442695, %v2292_v3  ;;  %v1386_v41 = vmul.f32 1.442695, %v2276_v2 }
 0x19b   :  { %1636 = vadd.xlane.f32.xlu2 %v2429_v52  ;;  %v1328_v19 = vmul.f32 %v1312_v38, %v1296_v61  ;;  %v1560_v53 = vmul.f32 %v1544_v62, %v1528_v37  ;;  %v4196_v52 = vpop.eup %2438  ;;  %vm1023_vm2 = vweird.f32 %v4191_v21 }
 0x19c   :  { %v764_v43 = vpop.f32.mrf.mxu3  ;;  %v1482_v46 = vadd.f32 %v4106_v32, %v1481_v50  ;;  %v4208_v62 = vpop.eup %2440  ;;  %2444 = vpow2.f32 %v1618_v35  ;;  %v1093_v35 = vld [vmem:[%s4704_s2 + $0x78] sm:$0xff] }
 0x19d   :  { %v4174_v8 = vsub.f32 1.0, %v764_v43  ;;  %v1344_v16 = vsel %vm1106_vm9, 0.0, %v1328_v19  ;;  %v1576_v26 = vsel %vm1106_vm9, %v1560_v53, 0.0  ;;  %v4211_v29 = vpop.eup %2442  ;;  %2446 = vpow2.f32 %v1386_v41 }
 0x19e   :  { %v2277_v61 = vadd.f32 -36.1, %v1344_v16  ;;  %v2293_v43 = vadd.f32 -19.6, %v1576_v26  ;;  %v1483_v60 = vadd.f32 %v4142_v30, %v1482_v46  ;;  %vm1109_vm15 = vcmp.gt.f32.partialorder %v1093_v35, 0.1 }
 0x19f   :  { %802 = vst [vmem:[#allocation8 + $0x68] sm:$0xff] %v4174_v8  ;;  %v2262_v5 = vadd.f32 -0.1, %v4174_v8  ;;  %v1513_v47 = vsub.f32 1.4, %v4174_v8 }
 0x1a0   :  { %1404 = vadd.xlane.f32.xlu1 %v2431_v58  ;;  %v1713_v58 = vadd.f32 %v4064_v44, %v1712_v48  ;;  %v1388_v44 = vmul.f32 1.442695, %v2277_v61  ;;  %v1620_v16 = vmul.f32 1.442695, %v2293_v43  ;;  %v987_v61 = vpop.f32.mrf.mxu1 }
 0x1a1   :  { %v1297_v56 = vmax.f32 %v2262_v5, 0.0  ;;  %v1313_v36 = vmul.f32 10.0, %v2262_v5  ;;  %v1529_v39 = vmax.f32 %v1513_v47, 0.0  ;;  %v1545_v6 = vmul.f32 10.0, %v1513_v47  ;;  %1412 = vadd.xlane.f32.xlu0 %v4180_v40 }
 0x1a2   :  { %v1714_v25 = vadd.f32 %v4093_v23, %v1713_v58  ;;  %v1019_v5 = vmul.f32 127.0, %v4191_v21  ;;  %2448 = vpow2.f32 %v1388_v44  ;;  %v2445_v23 = vpop.eup %2444  ;;  %v990_v44 = vsub.f32 1.0, %v987_v61 }
 0x1a3   :  { %1414 = vadd.xlane.f32.xlu2 %v4187_v34  ;;  %v1329_v33 = vmul.f32 %v1313_v36, %v1297_v56  ;;  %v1561_v38 = vmul.f32 %v1545_v6, %v1529_v39  ;;  %2450 = vpow2.f32 %v1620_v16 }
 0x1a4   :  { %v767_v51 = vpop.f32.mrf.mxu3  ;;  %v1715_v6 = vadd.f32 %v4129_v17, %v1714_v25  ;;  %v1484_v17 = vadd.f32 %v4180_v40, %v1483_v60  ;;  %v1013_v40 = vpop.f32.mrf.mxu2  ;;  %v4238_v60 = vmax.f32 %v990_v44, 0.0  ;;  %v1035_v44 = vadd.s32 64, %v3995_v24 }
 0x1a5   :  { %v4193_v10 = vsub.f32 1.0, %v767_v51  ;;  %v1345_v37 = vsel %vm1107_vm14, 0.0, %v1329_v33  ;;  %v1577_v19 = vsel %vm1107_vm14, %v1561_v38, 0.0  ;;  %v2447_v33 = vpop.eup %2446  ;;  %v4229_v51 = vpop.xlane.xlu2 %843  ;;  %v1020_v38 = vsub.f32 1.0, %v1019_v5 }
 0x1a6   :  { %v2278_v3 = vadd.f32 -36.1, %v1345_v37  ;;  %v2294_v53 = vadd.f32 -19.6, %v1577_v19  ;;  %v4235_v5 = vpop.xlane.xlu1 %840  ;;  %vm1070_vm4 = vcmp.eq.s32.totalorder %v1035_v44, %v3997_v0  ;;  %v872_v44 = vsel %vm54_vm0, %v3925_v1, 0.0 }
 0x1a7   :  { %803 = vst [vmem:[#allocation8 + $0x70] sm:$0xff] %v4193_v10  ;;  %v2263_v4 = vadd.f32 -0.1, %v4193_v10  ;;  %v1514_v49 = vsub.f32 1.4, %v4193_v10 }
 0x1a8   :  { %1416 = vadd.xlane.f32.xlu1 %v4196_v52  ;;  %v1390_v11 = vmul.f32 1.442695, %v2278_v3  ;;  %v1622_v26 = vmul.f32 1.442695, %v2294_v53  ;;  %v1016_v53 = vsub.f32 128.0, %v1013_v40 }
 0x1a9   :  { %v1298_v14 = vmax.f32 %v2263_v4, 0.0  ;;  %v1314_v45 = vmul.f32 10.0, %v2263_v4  ;;  %v1530_v32 = vmax.f32 %v1514_v49, 0.0  ;;  %v1546_v54 = vmul.f32 10.0, %v1514_v49  ;;  %1646 = vadd.xlane.f32.xlu0 %v4208_v62  ;;  %v2449_v4 = vpop.eup %2448 }
 0x1aa   :  { %v1716_v49 = vadd.f32 %v4159_v63, %v1715_v6  ;;  %2452 = vpow2.f32 %v1390_v11  ;;  %v2451_v3 = vpop.eup %2450 }
 0x1ab   :  { %1648 = vadd.xlane.f32.xlu2 %v4211_v29  ;;  %v1562_v47 = vmul.f32 %v1546_v54, %v1530_v32  ;;  %v1330_v7 = vmul.f32 %v1314_v45, %v1298_v14  ;;  %2454 = vpow2.f32 %v1622_v26  ;;  %v1021_v45 = vmul.f32 %v4191_v21, %v1020_v38 }
 0x1ac   :  { %v770_v12 = vpop.f32.mrf.mxu3  ;;  %v1485_v32 = vadd.f32 %v4187_v34, %v1484_v17  ;;  %v1717_v63 = vadd.f32 %v4208_v62, %v1716_v49 }
 0x1ad   :  { %v4220_v56 = vsub.f32 1.0, %v770_v12  ;;  %v1578_v36 = vsel %vm1108_vm1, %v1562_v47, 0.0  ;;  %v1346_v39 = vsel %vm1108_vm1, 0.0, %v1330_v7  ;;  %v1022_v6 = vadd.f32 %v4191_v21, %v1021_v45 }
 0x1ae   :  { %v2295_v48 = vadd.f32 -19.6, %v1578_v36  ;;  %v2279_v2 = vadd.f32 -36.1, %v1346_v39  ;;  %v1486_v12 = vadd.f32 %v4196_v52, %v1485_v32  ;;  %v1718_v36 = vadd.f32 %v4211_v29, %v1717_v63 }
 0x1af   :  { %804 = vst [vmem:[#allocation8 + $0x78] sm:$0xff] %v4220_v56  ;;  %v2264_v50 = vadd.f32 -0.1, %v4220_v56  ;;  %v1515_v30 = vsub.f32 1.4, %v4220_v56  ;;  %v887_v32 = vsub.f32 1.0, %v4235_v5 }
 0x1b0   :  { %1650 = vadd.xlane.f32.xlu1 %v2445_v23  ;;  %v1392_v37 = vmul.f32 1.442695, %v2279_v2  ;;  %v1624_v43 = vmul.f32 1.442695, %v2295_v48  ;;  %v2453_v16 = vpop.eup %2452  ;;  %v1487_v11 = vadd.f32 %v2447_v33, %v1486_v12  ;;  %v4243_v48 = vpop.xlane.xlu2 %858  ;;  %v1719_v52 = vadd.f32 %v2445_v23, %v1718_v36  ;;  %2144 = dma.vmem_to_hbm [thread:$0]  %s2137_s1, 2048, %s2139_s23, [#allocation9], %s2671_s25, %s2671_s25, %s2672_s26  }
 0x1b1   :  { %v1299_v58 = vmax.f32 %v2264_v50, 0.0  ;;  %v1315_v41 = vmul.f32 10.0, %v2264_v50  ;;  %v1531_v42 = vmax.f32 %v1515_v30, 0.0  ;;  %v1547_v46 = vmul.f32 10.0, %v1515_v30  ;;  %1418 = vadd.xlane.f32.xlu0 %v2447_v33  ;;  %v2455_v62 = vpop.eup %2454  ;;  %v4245_v2 = vpop.xlane.xlu0 %846 }
 0x1b2   :  { %2456 = vpow2.f32 %v1392_v37  ;;  %v1488_v50 = vadd.f32 %v2449_v4, %v1487_v11  ;;  %v1017_v30 = vsub.f32 %v1016_v53, %v4238_v60  ;;  %v1720_v35 = vadd.f32 %v2451_v3, %v1719_v52  ;;  %v1708_v52 = vld [vmem:[#allocation5] sm:$0x1] }
 0x1b3   :  { %1420 = vadd.xlane.f32.xlu2 %v2449_v4  ;;  %v1331_v19 = vmul.f32 %v1315_v41, %v1299_v58  ;;  %v1563_v14 = vmul.f32 %v1547_v46, %v1531_v42  ;;  %2458 = vpow2.f32 %v1624_v43  ;;  %v1024_v33 = vsel %vm1023_vm2, %v4191_v21, %v1022_v6  ;;  %v4250_v41 = vpop.xlane.xlu1 %849 }
 0x1b4   :  { %v1489_v38 = vadd.f32 %v2453_v16, %v1488_v50  ;;  %v1721_v17 = vadd.f32 %v2455_v62, %v1720_v35  ;;  %v1025_v42 = vmul.f32 %v1024_v33, %v1017_v30  ;;  %v869_v63 = vsel %vm54_vm0, %v3938_v9, 0.0  ;;  %v1476_v9 = vld [vmem:[#allocation4] sm:$0x1] }
 0x1b5   :  { %v1347_v54 = vsel %vm1109_vm15, 0.0, %v1331_v19  ;;  %v1579_v25 = vsel %vm1109_vm15, %v1563_v14, 0.0  ;;  %v1036_v12 = vadd.s32 72, %v3995_v24  ;;  %v903_v36 = vmax.f32 %v887_v32, 0.0 }
 0x1b6   :  { %v2280_v47 = vadd.f32 -36.1, %v1347_v54  ;;  %v2296_v7 = vadd.f32 -19.6, %v1579_v25  ;;  %v2057_v19 = vperm.slane %v1025_v42, 0  ;;  %v2059_v54 = vperm.slane %v4238_v60, 0 }
 0x1b7   :  { %v1118_v60 = vsel %vm1070_vm4, 100000.0, %v4059_v15  ;;  %vm1071_vm6 = vcmp.eq.s32.totalorder %v1036_v12, %v3997_v0  ;;  %v1038_v42 = vadd.s32 88, %v3995_v24 }
 0x1b8   :  { %v1394_v34 = vmul.f32 1.442695, %v2280_v47  ;;  %v1626_v39 = vmul.f32 1.442695, %v2296_v7  ;;  %1422 = vadd.xlane.f32.xlu1 %v2453_v16  ;;  %v2457_v29 = vpop.eup %2456  ;;  %v4253_v43 = vpop.xlane.xlu2 %867  ;;  %v1034_v16 = vadd.s32 56, %v3995_v24  ;;  %v1119_v33 = vsel %vm1071_vm6, 100000.0, %v4086_v57 }
 0x1b9   :  { %1652 = vadd.xlane.f32.xlu0 %v2451_v3  ;;  %v2459_v61 = vpop.eup %2458  ;;  %v1490_v26 = vadd.f32 %v2457_v29, %v1489_v38  ;;  %v856_v21 = vpop.xlane.xlu0 %855  ;;  %v2058_v3 = vsel %vm2056_vm3, %v2057_v19, 0.0  ;;  %vm1073_vm10 = vcmp.eq.s32.totalorder %v1038_v42, %v3997_v0  ;;  %v1039_v19 = vadd.s32 96, %v3995_v24 }
 0x1ba   :  { %2460 = vpow2.f32 %v1394_v34  ;;  %v1722_v46 = vadd.f32 %v2459_v61, %v1721_v17  ;;  %vm1069_vm7 = vcmp.eq.s32.totalorder %v1034_v16, %v3997_v0  ;;  %v892_v30 = vsub.f32 1.0, %v856_v21 }
 0x1bb   :  { %1654 = vadd.xlane.f32.xlu2 %v2455_v62  ;;  %2462 = vpow2.f32 %v1626_v39  ;;  %v4263_v53 = vpop.xlane.xlu1 %852  ;;  %v2060_v39 = vsel %vm2055_vm5, %v2059_v54, %v2058_v3  ;;  %v1117_v38 = vsel %vm1069_vm7, 100000.0, %v4031_v22  ;;  %v888_v17 = vsub.f32 1.0, %v4229_v51 }
 0x1bc   :  { %2064 = vst [vmem:[#allocation10] sm:$0xff] %v2060_v39  ;;  %v889_v21 = vsub.f32 1.0, %v4245_v2  ;;  %vm1074_vm13 = vcmp.eq.s32.totalorder %v1039_v19, %v3997_v0  ;;  %v884_v16 = vsel %vm54_vm0, %v3830_v28, 0.0  ;;  %v1040_v28 = vadd.s32 104, %v3995_v24 }
 0x1bd   :  { %v904_v57 = vmax.f32 %v888_v17, 0.0 }
 0x1be   :  { %v905_v54 = vmax.f32 %v889_v21, 0.0  ;;  %vm1075_vm2 = vcmp.eq.s32.totalorder %v1040_v28, %v3997_v0 }
 0x1c0   :  { %v2461_v58 = vpop.eup %2460  ;;  %1656 = vadd.xlane.f32.xlu1 %v2459_v61 }
 0x1c1   :  { %v2463_v23 = vpop.eup %2462  ;;  %1424 = vadd.xlane.f32.xlu0 %v2457_v29  ;;  %v1491_v4 = vadd.f32 %v2461_v58, %v1490_v26  ;;  %v4269_v29 = vpop.xlane.xlu0 %864  ;;  %v875_v26 = vsel %vm54_vm0, %v3915_v20, 0.0 }
 0x1c2   :  { %v1723_v49 = vadd.f32 %v2463_v23, %v1722_v46 }
 0x1c3   :  { %1426 = vadd.xlane.f32.xlu2 %v2461_v58  ;;  %v1492_v37 = vrot.slane %v1491_v4, 4  ;;  %v4276_v58 = vmax.f32 %v892_v30, 0.0  ;;  %v4279_v46 = vpop.xlane.xlu1 %861 }
 0x1c4   :  { %v1724_v14 = vrot.slane %v1723_v49, 4 }
 0x1c5   :  { %v1493_v40 = vadd.f32 %v1492_v37, %v1491_v4  ;;  %v893_v4 = vsub.f32 1.0, %v4243_v48  ;;  %v878_v37 = vsel %vm54_vm0, %v3897_v27, 0.0  ;;  %v1037_v48 = vadd.s32 80, %v3995_v24 }
 0x1c6   :  { %v1725_v45 = vadd.f32 %v1724_v14, %v1723_v49 }
 0x1c7   :  { %v1494_v25 = vrot.slane %v1493_v40, 2  ;;  %vm1072_vm9 = vcmp.eq.s32.totalorder %v1037_v48, %v3997_v0 }
 0x1c8   :  { %v1726_v47 = vrot.slane %v1725_v45, 2  ;;  %870 = vadd.xlane.f32.xlu1 %v869_v63  ;;  %v1122_v63 = vsel %vm1074_vm13, 100000.0, %v4152_v55  ;;  %v881_v55 = vsel %vm54_vm0, %v3869_v13, 0.0 }
 0x1c9   :  { %v1495_v7 = vadd.f32 %v1494_v25, %v1493_v40  ;;  %1658 = vadd.xlane.f32.xlu0 %v2463_v23  ;;  %v1121_v40 = vsel %vm1073_vm10, 100000.0, %v4137_v59 }
 0x1ca   :  { %v1727_v5 = vadd.f32 %v1726_v47, %v1725_v45  ;;  %v4297_v45 = vmax.f32 %v893_v4, 0.0  ;;  %v1120_v47 = vsel %vm1072_vm9, 100000.0, %v4115_v31 }
 0x1cb   :  { %v1496_v34 = vrot.slane %v1495_v7, 1  ;;  %1142 = vmin.xlane.f32.xlu2 %v1118_v60  ;;  %v1042_v60 = vadd.s32 120, %v3995_v24 }
 0x1cc   :  { %v1728_v6 = vrot.slane %v1727_v5, 1  ;;  %v1127_v11 = vpop.xlane.xlu2 %1126 }
 0x1cd   :  { %v1497_v62 = vadd.f32 %v1496_v34, %v1495_v7  ;;  %v1159_v50 = vsub.f32 %v903_v36, %v1127_v11  ;;  %v1041_v7 = vadd.s32 112, %v3995_v24  ;;  %vm1077_vm15 = vcmp.eq.s32.totalorder %v1042_v60, %v3997_v0 }
 0x1ce   :  { %v1729_v15 = vadd.f32 %v1728_v6, %v1727_v5  ;;  %v1125_v39 = vsel %vm1077_vm15, 100000.0, %v4220_v56  ;;  %v1123_v6 = vsel %vm1075_vm2, 100000.0, %v4174_v8 }
 0x1cf   :  { %v1498_v35 = vadd.f32 %v1497_v62, %v1476_v9  ;;  %vm1175_vm11 = vcmp.lt.f32.partialorder %v1159_v50, 0.0  ;;  %vm1076_vm1 = vcmp.eq.s32.totalorder %v1041_v7, %v3997_v0 }
 0x1d0   :  { %v1730_v61 = vadd.f32 %v1729_v15, %v1708_v52  ;;  %1144 = vmin.xlane.f32.xlu1 %v1119_v33  ;;  %v2233_v20 = vsel %vm1175_vm11, 1.0, %v2668_v18  ;;  %v1124_v31 = vsel %vm1076_vm1, 100000.0, %v4193_v10  ;;  %vm2095_vm11 = vcmask 1040384  }
 0x1d1   :  { %1499 = vst [vmem:[#allocation4] sm:$0x1] %v1498_v35  ;;  %1140 = vmin.xlane.f32.xlu0 %v1117_v38  ;;  %v1224_v27 = vsel %vm1223_vm8, %v2233_v20, 0.0 }
 0x1d2   :  { %1731 = vst [vmem:[#allocation5] sm:$0x1] %v1730_v61 }
 0x1d3   :  { %876 = vadd.xlane.f32.xlu2 %v875_v26 }
 0x1d4   :  { %v4281_v23 = vpop.xlane.xlu2 %1136  ;;  %v1129_v51 = vpop.xlane.xlu0 %1128 }
 0x1d5   :  { %v1164_v22 = vsub.f32 %v4276_v58, %v4281_v23  ;;  %v1160_v49 = vsub.f32 %v904_v57, %v1129_v51  ;;  %v890_v51 = vsub.f32 1.0, %v4250_v41 }
 0x1d7   :  { %vm1176_vm12 = vcmp.lt.f32.partialorder %v1160_v49, 0.0  ;;  %vm1180_vm3 = vcmp.lt.f32.partialorder %v1164_v22, 0.0 }
 0x1d8   :  { %879 = vadd.xlane.f32.xlu1 %v878_v37  ;;  %v2234_v14 = vsel %vm1176_vm12, 1.0, %v2668_v18  ;;  %v2068_v24 = vld [vmem:[#allocation4] sm:$0x1] }
 0x1d9   :  { %873 = vadd.xlane.f32.xlu0 %v872_v44  ;;  %v1225_v32 = vsel %vm1223_vm8, %v2234_v14, 0.0  ;;  %v2072_v15 = vld [vmem:[#allocation5] sm:$0x1]  ;;  %v906_v14 = vmax.f32 %v890_v51, 0.0  ;;  %v2238_v51 = vsel %vm1180_vm3, 1.0, %v2668_v18 }
 0x1da   :  { %v1226_v1 = vadd.f32 %v1225_v32, %v1224_v27 }
 0x1db   :  { %1148 = vmin.xlane.f32.xlu2 %v1121_v40  ;;  %v4301_v2 = vpop.xlane.xlu1 %1138 }
 0x1dc   :  { %v1165_v25 = vsub.f32 %v4297_v45, %v4301_v2 }
 0x1de   :  { %v1131_v3 = vpop.xlane.xlu2 %1130  ;;  %vm1181_vm5 = vcmp.lt.f32.partialorder %v1165_v25, 0.0 }
 0x1df   :  { %v1161_v59 = vsub.f32 %v905_v54, %v1131_v3 }
 0x1e0   :  { %1150 = vmin.xlane.f32.xlu1 %v1122_v63 }
 0x1e1   :  { %vm1177_vm14 = vcmp.lt.f32.partialorder %v1161_v59, 0.0  ;;  %1146 = vmin.xlane.f32.xlu0 %v1120_v47 }
 0x1e2   :  { %v2235_v12 = vsel %vm1177_vm14, 1.0, %v2668_v18 }
 0x1e3   :  { %v1227_v5 = vsel %vm1223_vm8, %v2235_v12, 0.0  ;;  %885 = vadd.xlane.f32.xlu2 %v884_v16  ;;  %v1629_v34 = vpop.xlane.xlu1 %1628 }
 0x1e4   :  { %v4315_v36 = vadd.f32 %v1227_v5, %v1226_v1  ;;  %v1407_v10 = vpop.xlane.xlu0 %1406 }
 0x1e6   :  { %v1397_v9 = vpop.xlane.xlu2 %1396 }
 0x1e7   :  { %2464 = vlog2.f32 %v1397_v9  ;;  %v891_v9 = vsub.f32 1.0, %v4263_v53 }
 0x1e8   :  { %1154 = vmin.xlane.f32.xlu1 %v1124_v31  ;;  %2466 = vlog2.f32 %v1629_v34 }
 0x1e9   :  { %882 = vadd.xlane.f32.xlu0 %v881_v55  ;;  %v2669_v55 = vmov 10.0  }
 0x1eb   :  { %1156 = vmin.xlane.f32.xlu2 %v1125_v39  ;;  %v1639_v62 = vpop.xlane.xlu1 %1638 }
 0x1ec   :  { %2468 = vlog2.f32 %v1639_v62  ;;  %v1399_v30 = vpop.xlane.xlu0 %1398 }
 0x1ed   :  { %v2465_v11 = vpop.eup %2464  ;;  %2470 = vlog2.f32 %v1407_v10 }
 0x1ee   :  { %v2467_v13 = vpop.eup %2466  ;;  %v1429_v52 = vmul.f32 0.6931472, %v2465_v11  ;;  %2472 = vlog2.f32 %v2068_v24  ;;  %v1631_v61 = vpop.xlane.xlu2 %1630 }
 0x1ef   :  { %v1661_v50 = vmul.f32 0.6931472, %v2467_v13  ;;  %2474 = vlog2.f32 %v2072_v15 }
 0x1f0   :  { %v1460_v56 = vadd.f32 36.1, %v1429_v52  ;;  %2476 = vlog2.f32 %v1399_v30 }
 0x1f1   :  { %1152 = vmin.xlane.f32.xlu0 %v1123_v6  ;;  %v1692_v35 = vadd.f32 19.6, %v1661_v50  ;;  %2478 = vlog2.f32 %v1631_v61 }
 0x1f2   :  { %v2469_v0 = vpop.eup %2468 }
 0x1f3   :  { %v2471_v33 = vpop.eup %2470  ;;  %v4326_v8 = vadd.f32 %v1692_v35, %v1460_v56  ;;  %v1671_v38 = vmul.f32 0.6931472, %v2469_v0  ;;  %v1133_v3 = vpop.xlane.xlu1 %1132  ;;  %v907_v56 = vmax.f32 %v891_v9, 0.0 }
 0x1f4   :  { %v2473_v17 = vpop.eup %2472  ;;  %v1439_v42 = vmul.f32 0.6931472, %v2471_v33  ;;  %v1641_v59 = vpop.xlane.xlu0 %1640  ;;  %v1162_v41 = vsub.f32 %v906_v14, %v1133_v3 }
 0x1f5   :  { %v2475_v26 = vpop.eup %2474  ;;  %v2070_v57 = vmul.f32 0.6931472, %v2473_v17  ;;  %v1764_v4 = vand.u32 2147483647, %v4326_v8  ;;  %v1697_v49 = vadd.f32 19.6, %v1671_v38  ;;  %2480 = vlog2.f32 %v1641_v59 }
 0x1f6   :  { %v2074_v37 = vmul.f32 0.6931472, %v2475_v26  ;;  %v2477_v44 = vpop.eup %2476  ;;  %v1465_v19 = vadd.f32 36.1, %v1439_v42  ;;  %v1409_v63 = vpop.xlane.xlu2 %1408  ;;  %vm1178_vm0 = vcmp.lt.f32.partialorder %v1162_v41, 0.0 }
 0x1f7   :  { %v2071_v20 = vadd.f32 36.1, %v2070_v57  ;;  %v2479_v21 = vpop.eup %2478  ;;  %v1780_v40 = vsub.f32 0.0, %v1764_v4  ;;  %v1431_v1 = vmul.f32 0.6931472, %v2477_v44  ;;  %2482 = vlog2.f32 %v1409_v63 }
 0x1f8   :  { %v2075_v48 = vadd.f32 19.6, %v2074_v37  ;;  %v4330_v27 = vadd.f32 %v1697_v49, %v1465_v19  ;;  %v1663_v54 = vmul.f32 0.6931472, %v2479_v21  ;;  %v2236_v31 = vsel %vm1178_vm0, 1.0, %v2668_v18 }
 0x1f9   :  { %v1796_v7 = vmul.f32 1.442695, %v1780_v40  ;;  %v1461_v16 = vadd.f32 36.1, %v1431_v1  ;;  %2484 = vrcp.f32 %v2669_v55  ;;  %v1229_v28 = vsel %vm1223_vm8, %v2236_v31, 0.0 }
 0x1fa   :  { %v4332_v32 = vadd.f32 %v2075_v48, %v2071_v20  ;;  %v1769_v12 = vand.u32 2147483647, %v4330_v27  ;;  %v1693_v5 = vadd.f32 19.6, %v1663_v54  ;;  %v1230_v6 = vadd.f32 %v1229_v28, %v4315_v36 }
 0x1fb   :  { %v2481_v39 = vpop.eup %2480  ;;  %2486 = vpow2.f32 %v1796_v7  ;;  %v1633_v53 = vpop.xlane.xlu1 %1632  ;;  %v1233_v19 = vsel %vm1223_vm8, %v2238_v51, 0.0  ;;  %v2239_v7 = vsel %vm1181_vm5, 1.0, %v2668_v18 }
 0x1fc   :  { %v2078_v47 = vand.u32 2147483647, %v4332_v32  ;;  %v1785_v11 = vsub.f32 0.0, %v1769_v12  ;;  %v4340_v62 = vadd.f32 %v1693_v5, %v1461_v16  ;;  %v1673_v13 = vmul.f32 0.6931472, %v2481_v39  ;;  %v1135_v36 = vpop.xlane.xlu0 %1134 }
 0x1fd   :  { %v2483_v10 = vpop.eup %2482  ;;  %v1163_v33 = vsub.f32 %v907_v56, %v1135_v36  ;;  %v1235_v55 = vsel %vm1223_vm8, %v2239_v7, 0.0  ;;  %v2077_v28 = vmax.f32 %v4332_v32, 0.0  ;;  %v896_v36 = vsub.f32 1.0, %v4253_v43 }
 0x1fe   :  { %v2079_v60 = vsub.f32 0.0, %v2078_v47  ;;  %v1441_v52 = vmul.f32 0.6931472, %v2483_v10  ;;  %v1698_v50 = vadd.f32 19.6, %v1673_v13  ;;  %v1643_v57 = vpop.xlane.xlu2 %1642 }
 0x1ff   :  { %v4342_v15 = vpop.eup %2484  ;;  %v1806_v30 = vmul.f32 1.442695, %v1785_v11  ;;  %v1765_v0 = vand.u32 2147483647, %v4340_v62  ;;  %vm1179_vm4 = vcmp.lt.f32.partialorder %v1163_v33, 0.0 }
 0x200   :  { %v2080_v34 = vmul.f32 1.442695, %v2079_v60  ;;  %v1466_v24 = vadd.f32 36.1, %v1441_v52  ;;  %v1989_v17 = vmul.f32 10.0, %v4342_v15  ;;  %v2237_v20 = vsel %vm1179_vm4, 1.0, %v2668_v18 }
 0x201   :  { %v4347_v61 = vpop.eup %2486  ;;  %v1781_v26 = vsub.f32 0.0, %v1765_v0  ;;  %v1231_v23 = vsel %vm1223_vm8, %v2237_v20, 0.0  ;;  %vm1993_vm6 = vweird.f32 %v4342_v15 }
 0x202   :  { %2488 = vpow2.f32 %v2080_v34  ;;  %v4345_v35 = vadd.f32 %v1698_v50, %v1466_v24  ;;  %v1828_v4 = vadd.f32 1.0, %v4347_v61  ;;  %v1990_v58 = vsub.f32 1.0, %v1989_v17 }
 0x203   :  { %2490 = vpow2.f32 %v1806_v30  ;;  %v1798_v22 = vmul.f32 1.442695, %v1781_v26  ;;  %v1232_v44 = vadd.f32 %v1231_v23, %v1230_v6  ;;  %v1411_v48 = vpop.xlane.xlu1 %1410  ;;  %v1831_v16 = vmul.f32 -0.5, %v4347_v61 }
 0x204   :  { %v1770_v42 = vand.u32 2147483647, %v4345_v35  ;;  %2492 = vlog2.f32 %v1643_v57  ;;  %v1991_v54 = vmul.f32 %v4342_v15, %v1990_v58  ;;  %v1401_v60 = vpop.xlane.xlu0 %1400  ;;  %v1834_v50 = vand.u32 2147483647, %v4347_v61 }
 0x205   :  { %v1234_v1 = vadd.f32 %v1233_v19, %v1232_v44  ;;  %v1832_v52 = vadd.f32 1.0, %v1831_v16  ;;  %v894_v26 = vsub.f32 1.0, %v4279_v46 }
 0x206   :  { %v1786_v49 = vsub.f32 0.0, %v1770_v42  ;;  %v1992_v12 = vadd.f32 %v4342_v15, %v1991_v54  ;;  %v1403_v34 = vpop.xlane.xlu2 %1402  ;;  %vm4393_vm10 = vcmp.lt.f32.partialorder %v1834_v50, 0.0004427343 }
 0x207   :  { %v4374_v10 = vadd.f32 %v1235_v55, %v1234_v1  ;;  %v1833_v42 = vmul.f32 %v4347_v61, %v1832_v52  ;;  %v895_v1 = vsub.f32 1.0, %v4269_v29 }
 0x208   :  { %v2489_v38 = vpop.eup %2488  ;;  %v1808_v40 = vmul.f32 1.442695, %v1786_v49  ;;  %v4379_v13 = vsel %vm1993_vm6, %v4342_v15, %v1992_v12 }
 0x209   :  { %v2082_v37 = vadd.f32 1.0, %v2489_v38  ;;  %v2085_v21 = vmul.f32 -0.5, %v2489_v38  ;;  %v4359_v14 = vpop.eup %2490  ;;  %v2088_v63 = vand.u32 2147483647, %v2489_v38 }
 0x20a   :  { %v2493_v59 = vpop.eup %2492  ;;  %v1873_v41 = vadd.f32 1.0, %v4359_v14  ;;  %v1876_v32 = vmul.f32 -0.5, %v4359_v14  ;;  %v1879_v61 = vand.u32 2147483647, %v4359_v14 }
 0x20b   :  { %2494 = vlog2.f32 %v2082_v37  ;;  %v2086_v3 = vadd.f32 1.0, %v2085_v21  ;;  %v1675_v25 = vmul.f32 0.6931472, %v2493_v59  ;;  %vm2089_vm7 = vcmp.lt.f32.partialorder %v2088_v63, 0.0004427343 }
 0x20c   :  { %2496 = vlog2.f32 %v1828_v4  ;;  %v1645_v4 = vpop.xlane.xlu1 %1644  ;;  %v1877_v43 = vadd.f32 1.0, %v1876_v32  ;;  %v1635_v23 = vpop.xlane.xlu0 %1634  ;;  %v1748_v21 = vmax.f32 %v4326_v8, 0.0  ;;  %vm4405_vm12 = vcmp.lt.f32.partialorder %v1879_v61, 0.0004427343 }
 0x20d   :  { %2498 = vlog2.f32 %v1411_v48  ;;  %v2087_v5 = vmul.f32 %v2489_v38, %v2086_v3  ;;  %v1699_v56 = vadd.f32 19.6, %v1675_v25 }
 0x20e   :  { %2500 = vpow2.f32 %v1798_v22  ;;  %v1637_v44 = vpop.xlane.xlu2 %1636 }
 0x20f   :  { %2502 = vlog2.f32 %v1633_v53 }
 0x210   :  { %2504 = vpow2.f32 %v1808_v40 }
 0x211   :  { %v2495_v47 = vpop.eup %2494  ;;  %2506 = vlog2.f32 %v1873_v41  ;;  %v1878_v41 = vmul.f32 %v4359_v14, %v1877_v43  ;;  %v4416_v14 = vmax.f32 %v894_v26, 0.0 }
 0x212   :  { %v2084_v45 = vmul.f32 0.6931472, %v2495_v47  ;;  %v2497_v2 = vpop.eup %2496  ;;  %2508 = vlog2.f32 %v1401_v60 }
 0x213   :  { %v2499_v31 = vpop.eup %2498  ;;  %v1830_v53 = vmul.f32 0.6931472, %v2497_v2  ;;  %2510 = vlog2.f32 %v1403_v34  ;;  %v1753_v2 = vmax.f32 %v4330_v27, 0.0 }
 0x214   :  { %v4372_v39 = vpop.eup %2500  ;;  %v1443_v9 = vmul.f32 0.6931472, %v2499_v31  ;;  %v2090_v6 = vsel %vm2089_vm7, %v2087_v5, %v2084_v45  ;;  %2512 = vlog2.f32 %v1635_v23  ;;  %v4414_v45 = vmax.f32 %v896_v36, 0.0  ;;  %v1405_v5 = vpop.xlane.xlu1 %1404 }
 0x215   :  { %v2503_v11 = vpop.eup %2502  ;;  %v2091_v0 = vadd.f32 %v2090_v6, %v2077_v28  ;;  %v1837_v33 = vadd.f32 1.0, %v4372_v39  ;;  %v1836_v46 = vsel %vm4393_vm10, %v1833_v42, %v1830_v53  ;;  %v1840_v8 = vmul.f32 -0.5, %v4372_v39  ;;  %v1413_v34 = vpop.xlane.xlu0 %1412 }
 0x216   :  { %v4382_v24 = vpop.eup %2504  ;;  %v1467_v30 = vadd.f32 36.1, %v1443_v9  ;;  %v1665_v51 = vmul.f32 0.6931472, %v2503_v11  ;;  %v1972_v59 = vadd.f32 %v1836_v46, %v1748_v21  ;;  %v4422_v6 = vmax.f32 %v895_v1, 0.0  ;;  %v1415_v32 = vpop.xlane.xlu2 %1414 }
 0x217   :  { %v2092_v15 = vmul.f32 %v2091_v0, %v4379_v13  ;;  %v2507_v17 = vpop.eup %2506  ;;  %v1882_v57 = vadd.f32 1.0, %v4382_v24  ;;  %2514 = vlog2.f32 %v1837_v33  ;;  %v1885_v55 = vmul.f32 -0.5, %v4382_v24 }
 0x218   :  { %v4387_v38 = vadd.f32 %v1699_v56, %v1467_v30  ;;  %v2509_v49 = vpop.eup %2508  ;;  %v1875_v19 = vmul.f32 0.6931472, %v2507_v17  ;;  %v1694_v54 = vadd.f32 19.6, %v1665_v51  ;;  %v1995_v31 = vmul.f32 %v4379_v13, %v1972_v59 }
 0x219   :  { %v2096_v58 = vsel %vm2095_vm11, %v2092_v15, 0.0  ;;  %v1433_v22 = vmul.f32 0.6931472, %v2509_v49  ;;  %v2511_v40 = vpop.eup %2510  ;;  %2516 = vlog2.f32 %v1882_v57  ;;  %v1841_v52 = vadd.f32 1.0, %v1840_v8 }
 0x21a   :  { %v1771_v37 = vand.u32 2147483647, %v4387_v38  ;;  %2097 = vadd.xlane.f32.xlu2 %v2096_v58  ;;  %2518 = vlog2.f32 %v1637_v44  ;;  %v1881_v29 = vsel %vm4405_vm12, %v1878_v41, %v1875_v19  ;;  %v1435_v12 = vmul.f32 0.6931472, %v2511_v40  ;;  %v2513_v16 = vpop.eup %2512 }
 0x21b   :  { %v1462_v3 = vadd.f32 36.1, %v1433_v22  ;;  %2520 = vlog2.f32 %v1645_v4  ;;  %v1667_v28 = vmul.f32 0.6931472, %v2513_v16  ;;  %v1977_v11 = vadd.f32 %v1881_v29, %v1753_v2 }
 0x21c   :  { %v1787_v48 = vsub.f32 0.0, %v1771_v37  ;;  %v1843_v27 = vand.u32 2147483647, %v4372_v39  ;;  %v1463_v30 = vadd.f32 36.1, %v1435_v12  ;;  %v1749_v36 = vmax.f32 %v4340_v62, 0.0  ;;  %v1417_v22 = vpop.xlane.xlu1 %1416 }
 0x21d   :  { %v4410_v7 = vadd.f32 %v1694_v54, %v1462_v3  ;;  %v2515_v60 = vpop.eup %2514  ;;  %v1695_v0 = vadd.f32 19.6, %v1667_v28  ;;  %v4429_v26 = vsel %vm1223_vm8, %v1995_v31, 0.0  ;;  %v1886_v42 = vadd.f32 1.0, %v1885_v55  ;;  %v1647_v40 = vpop.xlane.xlu0 %1646 }
 0x21e   :  { %v1810_v63 = vmul.f32 1.442695, %v1787_v48  ;;  %v1839_v33 = vmul.f32 0.6931472, %v2515_v60  ;;  %v1888_v57 = vand.u32 2147483647, %v4382_v24  ;;  %v1842_v4 = vmul.f32 %v4372_v39, %v1841_v52  ;;  %v1649_v41 = vpop.xlane.xlu2 %1648 }
 0x21f   :  { %v1766_v25 = vand.u32 2147483647, %v4410_v7  ;;  %v2517_v9 = vpop.eup %2516  ;;  %v4432_v51 = vadd.f32 %v1695_v0, %v1463_v30  ;;  %v2000_v43 = vmul.f32 %v4379_v13, %v1977_v11  ;;  %vm4437_vm13 = vcmp.lt.f32.partialorder %v1843_v27, 0.0004427343 }
 0x220   :  { %2522 = vpow2.f32 %v1810_v63  ;;  %v2519_v56 = vpop.eup %2518  ;;  %v1884_v58 = vmul.f32 0.6931472, %v2517_v9  ;;  %v1845_v46 = vsel %vm4437_vm13, %v1842_v4, %v1839_v33  ;;  %v1887_v21 = vmul.f32 %v4382_v24, %v1886_v42 }
 0x221   :  { %2524 = vlog2.f32 %v1405_v5  ;;  %v1782_v50 = vsub.f32 0.0, %v1766_v25  ;;  %v2521_v53 = vpop.eup %2520  ;;  %v1669_v20 = vmul.f32 0.6931472, %v2519_v56  ;;  %v1767_v23 = vand.u32 2147483647, %v4432_v51 }
 0x222   :  { %2526 = vlog2.f32 %v1413_v34  ;;  %v1677_v61 = vmul.f32 0.6931472, %v2521_v53  ;;  %vm4445_vm9 = vcmp.lt.f32.partialorder %v1888_v57, 0.0004427343  ;;  %v1973_v63 = vadd.f32 %v1845_v46, %v1749_v36 }
 0x223   :  { %v1800_v15 = vmul.f32 1.442695, %v1782_v50  ;;  %2528 = vlog2.f32 %v1415_v32  ;;  %v1783_v48 = vsub.f32 0.0, %v1767_v23  ;;  %v1696_v54 = vadd.f32 19.6, %v1669_v20 }
 0x224   :  { %v1890_v47 = vsel %vm4445_vm9, %v1887_v21, %v1884_v58  ;;  %v1700_v12 = vadd.f32 19.6, %v1677_v61  ;;  %v1754_v25 = vmax.f32 %v4345_v35, 0.0  ;;  %v4456_v55 = vsel %vm1223_vm8, %v2000_v43, 0.0  ;;  %v1651_v53 = vpop.xlane.xlu1 %1650 }
 0x225   :  { %2530 = vpow2.f32 %v1800_v15  ;;  %v1802_v8 = vmul.f32 1.442695, %v1783_v48  ;;  %v1996_v52 = vmul.f32 %v4379_v13, %v1973_v63  ;;  %v1755_v32 = vmax.f32 %v4387_v38, 0.0  ;;  %v1419_v57 = vpop.xlane.xlu0 %1418 }
 0x226   :  { %v4426_v17 = vpop.eup %2522  ;;  %v1978_v50 = vadd.f32 %v1890_v47, %v1754_v25  ;;  %v1421_v38 = vpop.xlane.xlu2 %1420  ;;  %v1750_v25 = vmax.f32 %v4410_v7, 0.0 }
 0x227   :  { %v1891_v49 = vadd.f32 1.0, %v4426_v17  ;;  %v2525_v62 = vpop.eup %2524  ;;  %v1894_v29 = vmul.f32 -0.5, %v4426_v17  ;;  %v1897_v27 = vand.u32 2147483647, %v4426_v17 }
 0x228   :  { %v1437_v39 = vmul.f32 0.6931472, %v2525_v62  ;;  %v2527_v44 = vpop.eup %2526 }
 0x229   :  { %2532 = vlog2.f32 %v1891_v49  ;;  %v2529_v1 = vpop.eup %2528  ;;  %v1445_v59 = vmul.f32 0.6931472, %v2527_v44  ;;  %v1895_v56 = vadd.f32 1.0, %v1894_v29  ;;  %vm4466_vm14 = vcmp.lt.f32.partialorder %v1897_v27, 0.0004427343 }
 0x22a   :  { %2534 = vlog2.f32 %v1417_v22  ;;  %v1464_v3 = vadd.f32 36.1, %v1437_v39  ;;  %v1447_v60 = vmul.f32 0.6931472, %v2529_v1 }
 0x22b   :  { %2536 = vlog2.f32 %v1647_v40  ;;  %v2531_v24 = vpop.eup %2530  ;;  %v1468_v2 = vadd.f32 36.1, %v1445_v59  ;;  %v1896_v46 = vmul.f32 %v4426_v17, %v1895_v56 }
 0x22c   :  { %2538 = vlog2.f32 %v1649_v41  ;;  %v4452_v16 = vadd.f32 %v1696_v54, %v1464_v3  ;;  %v1846_v5 = vadd.f32 1.0, %v2531_v24  ;;  %v1849_v28 = vmul.f32 -0.5, %v2531_v24  ;;  %v1423_v29 = vpop.xlane.xlu1 %1422 }
 0x22d   :  { %2540 = vpow2.f32 %v1802_v8  ;;  %v4459_v9 = vadd.f32 %v1700_v12, %v1468_v2  ;;  %v1852_v33 = vand.u32 2147483647, %v2531_v24  ;;  %v1469_v15 = vadd.f32 36.1, %v1447_v60  ;;  %v1653_v60 = vpop.xlane.xlu0 %1652 }
 0x22e   :  { %v1768_v34 = vand.u32 2147483647, %v4452_v16  ;;  %2542 = vlog2.f32 %v1846_v5  ;;  %v1850_v4 = vadd.f32 1.0, %v1849_v28  ;;  %v2013_v2 = vsel %vm1223_vm8, %v1996_v52, 0.0 }
 0x22f   :  { %v2533_v31 = vpop.eup %2532  ;;  %v1772_v0 = vand.u32 2147483647, %v4459_v9  ;;  %2544 = vlog2.f32 %v1651_v53  ;;  %vm4474_vm1 = vcmp.lt.f32.partialorder %v1852_v33, 0.0004427343 }
 0x230   :  { %v2535_v11 = vpop.eup %2534  ;;  %v1784_v30 = vsub.f32 0.0, %v1768_v34  ;;  %v1893_v37 = vmul.f32 0.6931472, %v2533_v31  ;;  %2546 = vlog2.f32 %v1419_v57  ;;  %v1851_v1 = vmul.f32 %v2531_v24, %v1850_v4 }
 0x231   :  { %v2537_v35 = vpop.eup %2536  ;;  %v1788_v20 = vsub.f32 0.0, %v1772_v0  ;;  %v1449_v62 = vmul.f32 0.6931472, %v2535_v11  ;;  %v2001_v31 = vmul.f32 %v4379_v13, %v1978_v50  ;;  %v1751_v4 = vmax.f32 %v4432_v51, 0.0 }
 0x232   :  { %v2539_v36 = vpop.eup %2538  ;;  %v1679_v42 = vmul.f32 0.6931472, %v2537_v35  ;;  %v1804_v49 = vmul.f32 1.442695, %v1784_v30  ;;  %v1899_v17 = vsel %vm4466_vm14, %v1896_v46, %v1893_v37  ;;  %v4487_v35 = vpop.xlane.xlu2 %1654 }
 0x233   :  { %v2541_v43 = vpop.eup %2540  ;;  %v1681_v23 = vmul.f32 0.6931472, %v2539_v36  ;;  %v1812_v21 = vmul.f32 1.442695, %v1788_v20  ;;  %v1470_v54 = vadd.f32 36.1, %v1449_v62  ;;  %v1979_v28 = vadd.f32 %v1899_v17, %v1755_v32 }
 0x234   :  { %v1701_v58 = vadd.f32 19.6, %v1679_v42  ;;  %v1855_v39 = vadd.f32 1.0, %v2541_v43  ;;  %v1858_v22 = vmul.f32 -0.5, %v2541_v43  ;;  %v2543_v44 = vpop.eup %2542  ;;  %2548 = vpow2.f32 %v1804_v49  ;;  %v1657_v46 = vpop.xlane.xlu1 %1656 }
 0x235   :  { %v1702_v48 = vadd.f32 19.6, %v1681_v23  ;;  %v1848_v40 = vmul.f32 0.6931472, %v2543_v44  ;;  %v2545_v3 = vpop.eup %2544  ;;  %v1861_v34 = vand.u32 2147483647, %v2541_v43  ;;  %v2002_v57 = vmul.f32 %v4379_v13, %v1979_v28  ;;  %v1425_v44 = vpop.xlane.xlu0 %1424 }
 0x236   :  { %v4470_v19 = vadd.f32 %v1701_v58, %v1469_v15  ;;  %2550 = vlog2.f32 %v1855_v39  ;;  %v1859_v47 = vadd.f32 1.0, %v1858_v22  ;;  %v1683_v24 = vmul.f32 0.6931472, %v2545_v3  ;;  %v2547_v12 = vpop.eup %2546 }
 0x237   :  { %2552 = vpow2.f32 %v1812_v21  ;;  %v1854_v63 = vsel %vm4474_vm1, %v1851_v1, %v1848_v40  ;;  %v4481_v8 = vadd.f32 %v1702_v48, %v1470_v54  ;;  %v1451_v0 = vmul.f32 0.6931472, %v2547_v12 }
 0x238   :  { %v1773_v41 = vand.u32 2147483647, %v4470_v19  ;;  %2554 = vlog2.f32 %v1421_v38  ;;  %v1974_v27 = vadd.f32 %v1854_v63, %v1750_v25  ;;  %v1860_v52 = vmul.f32 %v2541_v43, %v1859_v47 }
 0x239   :  { %v1774_v11 = vand.u32 2147483647, %v4481_v8  ;;  %2556 = vlog2.f32 %v1653_v60  ;;  %v1703_v33 = vadd.f32 19.6, %v1683_v24  ;;  %v1471_v32 = vadd.f32 36.1, %v1451_v0 }
 0x23a   :  { %v1789_v5 = vsub.f32 0.0, %v1773_v41  ;;  %v2549_v56 = vpop.eup %2548  ;;  %vm1862_vm15 = vcmp.lt.f32.partialorder %v1861_v34, 0.0004427343  ;;  %v1997_v20 = vmul.f32 %v4379_v13, %v1974_v27  ;;  %v2014_v39 = vadd.f32 %v2013_v2, %v4429_v26  ;;  %v4503_v1 = vpop.xlane.xlu2 %1426 }
 0x23b   :  { %v1864_v36 = vadd.f32 1.0, %v2549_v56  ;;  %v1790_v7 = vsub.f32 0.0, %v1774_v11  ;;  %v1867_v50 = vmul.f32 -0.5, %v2549_v56  ;;  %v1870_v37 = vand.u32 2147483647, %v2549_v56 }
 0x23c   :  { %v1814_v30 = vmul.f32 1.442695, %v1789_v5  ;;  %v2551_v53 = vpop.eup %2550  ;;  %v4495_v23 = vadd.f32 %v1703_v33, %v1471_v32  ;;  %v4499_v51 = vsel %vm1223_vm8, %v2001_v31, 0.0  ;;  %v1752_v21 = vmax.f32 %v4452_v16, 0.0 }
 0x23d   :  { %v4489_v15 = vpop.eup %2552  ;;  %v1857_v42 = vmul.f32 0.6931472, %v2551_v53  ;;  %v1816_v58 = vmul.f32 1.442695, %v1790_v7  ;;  %v1868_v22 = vadd.f32 1.0, %v1867_v50  ;;  %v4506_v3 = vsel %vm1223_vm8, %v2002_v57, 0.0  ;;  %v1659_v50 = vpop.xlane.xlu0 %1658 }
 0x23e   :  { %2558 = vpow2.f32 %v1814_v30  ;;  %v2555_v49 = vpop.eup %2554  ;;  %v1900_v38 = vadd.f32 1.0, %v4489_v15  ;;  %v1775_v48 = vand.u32 2147483647, %v4495_v23  ;;  %v1756_v26 = vmax.f32 %v4459_v9, 0.0 }
 0x23f   :  { %2560 = vlog2.f32 %v1864_v36  ;;  %v1863_v62 = vsel %vm1862_vm15, %v1860_v52, %v1857_v42  ;;  %v2557_v61 = vpop.eup %2556  ;;  %v1453_v40 = vmul.f32 0.6931472, %v2555_v49  ;;  %v1903_v17 = vmul.f32 -0.5, %v4489_v15  ;;  %v4525_v36 = vpop.xlane.xlu1 %870 }
 0x240   :  { %2562 = vlog2.f32 %v1423_v29  ;;  %v1975_v43 = vadd.f32 %v1863_v62, %v1751_v4  ;;  %v1685_v59 = vmul.f32 0.6931472, %v2557_v61  ;;  %v2015_v63 = vsel %vm1223_vm8, %v1997_v20, 0.0 }
 0x241   :  { %2564 = vlog2.f32 %v1900_v38  ;;  %vm4512_vm2 = vcmp.lt.f32.partialorder %v1870_v37, 0.0004427343  ;;  %v1869_v2 = vmul.f32 %v2549_v56, %v1868_v22  ;;  %v1791_v5 = vsub.f32 0.0, %v1775_v48 }
 0x242   :  { %2566 = vpow2.f32 %v1816_v58  ;;  %v1998_v16 = vmul.f32 %v4379_v13, %v1975_v43  ;;  %v1906_v9 = vand.u32 2147483647, %v4489_v15  ;;  %v1472_v60 = vadd.f32 36.1, %v1453_v40  ;;  %v4534_v49 = vpop.xlane.xlu2 %1142 }
 0x243   :  { %v1704_v31 = vadd.f32 19.6, %v1685_v59  ;;  %v1904_v11 = vadd.f32 1.0, %v1903_v17  ;;  %v1818_v27 = vmul.f32 1.442695, %v1791_v5  ;;  %v2016_v0 = vadd.f32 %v2015_v63, %v2014_v39 }
 0x244   :  { %v2559_v54 = vpop.eup %2558  ;;  %v2017_v56 = vsel %vm1223_vm8, %v1998_v16, 0.0  ;;  %vm4529_vm0 = vcmp.lt.f32.partialorder %v1906_v9, 0.0004427343 }
 0x245   :  { %v2561_v41 = vpop.eup %2560  ;;  %v1909_v24 = vadd.f32 1.0, %v2559_v54  ;;  %v1912_v25 = vmul.f32 -0.5, %v2559_v54  ;;  %v4523_v52 = vadd.f32 %v1704_v31, %v1472_v60  ;;  %v1915_v57 = vand.u32 2147483647, %v2559_v54 }
 0x246   :  { %v2563_v29 = vpop.eup %2562  ;;  %v1866_v12 = vmul.f32 0.6931472, %v2561_v41  ;;  %v2018_v20 = vadd.f32 %v2017_v56, %v2016_v0  ;;  %v1905_v62 = vmul.f32 %v4489_v15, %v1904_v11  ;;  %v1758_v60 = vmax.f32 %v4481_v8, 0.0 }
 0x247   :  { %2568 = vlog2.f32 %v1909_v24  ;;  %v2565_v28 = vpop.eup %2564  ;;  %v1913_v33 = vadd.f32 1.0, %v1912_v25  ;;  %v1776_v4 = vand.u32 2147483647, %v4523_v52  ;;  %v1455_v38 = vmul.f32 0.6931472, %v2563_v29 }
 0x248   :  { %v1872_v34 = vsel %vm4512_vm2, %v1869_v2, %v1866_v12  ;;  %2570 = vlog2.f32 %v4487_v35  ;;  %v4520_v30 = vpop.eup %2566  ;;  %v1902_v7 = vmul.f32 0.6931472, %v2565_v28  ;;  %vm4541_vm3 = vcmp.lt.f32.partialorder %v1915_v57, 0.0004427343  ;;  %v4553_v12 = vpop.xlane.xlu1 %1144 }
 0x249   :  { %v1976_v53 = vadd.f32 %v1872_v34, %v1752_v21  ;;  %v1918_v42 = vadd.f32 1.0, %v4520_v30  ;;  %2572 = vpow2.f32 %v1818_v27  ;;  %v1921_v58 = vmul.f32 -0.5, %v4520_v30 }
 0x24a   :  { %v1792_v61 = vsub.f32 0.0, %v1776_v4  ;;  %v1908_v21 = vsel %vm4529_vm0, %v1905_v62, %v1902_v7  ;;  %v1914_v40 = vmul.f32 %v2559_v54, %v1913_v33  ;;  %v1473_v47 = vadd.f32 36.1, %v1455_v38  ;;  %v4560_v28 = vpop.xlane.xlu2 %876 }
 0x24b   :  { %v1999_v32 = vmul.f32 %v4379_v13, %v1976_v53  ;;  %2574 = vlog2.f32 %v1918_v42  ;;  %v1980_v24 = vadd.f32 %v1908_v21, %v1756_v26  ;;  %v1922_v29 = vadd.f32 1.0, %v1921_v58 }
 0x24c   :  { %2576 = vlog2.f32 %v1657_v46  ;;  %v1820_v15 = vmul.f32 1.442695, %v1792_v61  ;;  %v1757_v46 = vmax.f32 %v4470_v19, 0.0  ;;  %v1924_v54 = vand.u32 2147483647, %v4520_v30  ;;  %v1141_v19 = vpop.xlane.xlu0 %1140 }
 0x24d   :  { %v2569_v43 = vpop.eup %2568  ;;  %v2019_v37 = vsel %vm1223_vm8, %v1999_v32, 0.0  ;;  %2578 = vlog2.f32 %v1425_v44  ;;  %v1759_v26 = vmax.f32 %v4495_v23, 0.0  ;;  %v897_v31 = vsub.f32 1.0, %v4525_v36 }
 0x24e   :  { %v2571_v39 = vpop.eup %2570  ;;  %v2020_v22 = vadd.f32 %v2019_v37, %v2018_v20  ;;  %v1911_v48 = vmul.f32 0.6931472, %v2569_v43  ;;  %2580 = vlog2.f32 %v4503_v1  ;;  %v2003_v0 = vmul.f32 %v4379_v13, %v1980_v24 }
 0x24f   :  { %v1687_v59 = vmul.f32 0.6931472, %v2571_v39  ;;  %v4545_v41 = vpop.eup %2572  ;;  %2582 = vpow2.f32 %v1820_v15  ;;  %vm4566_vm4 = vcmp.lt.f32.partialorder %v1924_v54, 0.0004427343  ;;  %v1760_v8 = vmax.f32 %v4523_v52, 0.0 }
 0x250   :  { %v2022_v63 = vadd.f32 %v4456_v55, %v2020_v22  ;;  %v1917_v16 = vsel %vm4541_vm3, %v1914_v40, %v1911_v48  ;;  %v1927_v25 = vadd.f32 1.0, %v4545_v41  ;;  %v1930_v34 = vmul.f32 -0.5, %v4545_v41  ;;  %v4591_v21 = vpop.xlane.xlu1 %879 }
 0x251   :  { %v2575_v2 = vpop.eup %2574  ;;  %v1705_v55 = vadd.f32 19.6, %v1687_v59  ;;  %v1981_v9 = vadd.f32 %v1917_v16, %v1757_v46  ;;  %2584 = vlog2.f32 %v1659_v50  ;;  %v1923_v53 = vmul.f32 %v4520_v30, %v1922_v29 }
 0x252   :  { %v2024_v44 = vadd.f32 %v4499_v51, %v2022_v63  ;;  %v2577_v5 = vpop.eup %2576  ;;  %v1920_v1 = vmul.f32 0.6931472, %v2575_v2  ;;  %2586 = vlog2.f32 %v1927_v25  ;;  %v1933_v36 = vand.u32 2147483647, %v4545_v41  ;;  %v4596_v63 = vpop.xlane.xlu2 %1148 }
 0x253   :  { %v4563_v11 = vadd.f32 %v1705_v55, %v1473_v47  ;;  %v1689_v51 = vmul.f32 0.6931472, %v2577_v5  ;;  %v2579_v27 = vpop.eup %2578  ;;  %v2004_v42 = vmul.f32 %v4379_v13, %v1981_v9  ;;  %v4575_v57 = vmax.f32 %v897_v31, 0.0 }
 0x254   :  { %v2581_v33 = vpop.eup %2580  ;;  %v1457_v35 = vmul.f32 0.6931472, %v2579_v27  ;;  %v2026_v20 = vadd.f32 %v4506_v3, %v2024_v44  ;;  %v1926_v50 = vsel %vm4566_vm4, %v1923_v53, %v1920_v1  ;;  %v1931_v30 = vadd.f32 1.0, %v1930_v34  ;;  %v874_v48 = vpop.xlane.xlu0 %873 }
 0x255   :  { %v1777_v7 = vand.u32 2147483647, %v4563_v11  ;;  %v1706_v32 = vadd.f32 19.6, %v1689_v51  ;;  %v4577_v4 = vpop.eup %2582  ;;  %v2027_v38 = vsel %vm1223_vm8, %v2003_v0, 0.0  ;;  %v1167_v58 = vsub.f32 %v4422_v6, %v4534_v49 }
 0x256   :  { %v1936_v43 = vadd.f32 1.0, %v4577_v4  ;;  %v1474_v37 = vadd.f32 36.1, %v1457_v35  ;;  %vm4586_vm5 = vcmp.lt.f32.partialorder %v1933_v36, 0.0004427343  ;;  %v1166_v3 = vsub.f32 %v4416_v14, %v1141_v19 }
 0x257   :  { %v1793_v62 = vsub.f32 0.0, %v1777_v7  ;;  %v1459_v22 = vmul.f32 0.6931472, %v2581_v33  ;;  %v2585_v40 = vpop.eup %2584  ;;  %v2029_v17 = vsel %vm1223_vm8, %v2004_v42, 0.0  ;;  %v1982_v15 = vadd.f32 %v1926_v50, %v1758_v60 }
 0x258   :  { %2588 = vlog2.f32 %v1936_v43  ;;  %v4594_v59 = vadd.f32 %v1706_v32, %v1474_v37  ;;  %v2587_v6 = vpop.eup %2586  ;;  %v2028_v49 = vadd.f32 %v2027_v38, %v2026_v20  ;;  %v1932_v46 = vmul.f32 %v4545_v41, %v1931_v30  ;;  %v1151_v50 = vpop.xlane.xlu1 %1150 }
 0x259   :  { %v1822_v39 = vmul.f32 1.442695, %v1793_v62  ;;  %v1691_v16 = vmul.f32 0.6931472, %v2585_v40  ;;  %v1761_v14 = vmax.f32 %v4563_v11, 0.0  ;;  %vm1183_vm6 = vcmp.lt.f32.partialorder %v1167_v58, 0.0 }
 0x25a   :  { %v1778_v47 = vand.u32 2147483647, %v4594_v59  ;;  %v1168_v24 = vsub.f32 %v4414_v45, %v4553_v12  ;;  %v1939_v29 = vmul.f32 -0.5, %v4577_v4  ;;  %v1475_v54 = vadd.f32 36.1, %v1459_v22  ;;  %v886_v32 = vpop.xlane.xlu2 %885 }
 0x25b   :  { %2590 = vpow2.f32 %v1822_v39  ;;  %v1707_v2 = vadd.f32 19.6, %v1691_v16  ;;  %vm1182_vm7 = vcmp.lt.f32.partialorder %v1166_v3, 0.0  ;;  %v4605_v44 = vmul.f32 %v4379_v13, %v1982_v15 }
 0x25c   :  { %v1929_v25 = vmul.f32 0.6931472, %v2587_v6  ;;  %v1794_v41 = vsub.f32 0.0, %v1778_v47  ;;  %v2240_v55 = vsel %vm1182_vm7, 1.0, %v2668_v18  ;;  %v1942_v19 = vand.u32 2147483647, %v4577_v4  ;;  %v1147_v53 = vpop.xlane.xlu0 %1146 }
 0x25d   :  { %v4609_v5 = vadd.f32 %v1707_v2, %v1475_v54  ;;  %v2241_v9 = vsel %vm1183_vm6, 1.0, %v2668_v18  ;;  %v1237_v45 = vsel %vm1223_vm8, %v2240_v55, 0.0  ;;  %vm4613_vm11 = vcmp.lt.f32.partialorder %v1168_v24, 0.0 }
 0x25e   :  { %v2589_v12 = vpop.eup %2588  ;;  %v1824_v60 = vmul.f32 1.442695, %v1794_v41  ;;  %v1238_v1 = vadd.f32 %v1237_v45, %v4374_v10  ;;  %v899_v34 = vsub.f32 1.0, %v4560_v28  ;;  %v1940_v27 = vadd.f32 1.0, %v1939_v29 }
 0x25f   :  { %v1779_v0 = vand.u32 2147483647, %v4609_v5  ;;  %v898_v56 = vsub.f32 1.0, %v874_v48  ;;  %v4620_v36 = vadd.f32 %v2029_v17, %v2028_v49  ;;  %v1935_v7 = vsel %vm4586_vm5, %v1932_v46, %v1929_v25 }
 0x260   :  { %2592 = vpow2.f32 %v1824_v60  ;;  %vm4624_vm10 = vcmp.lt.f32.partialorder %v1942_v19, 0.0004427343  ;;  %v1239_v28 = vsel %vm1223_vm8, %v2241_v9, 0.0  ;;  %v2242_v20 = vsel %vm4613_vm11, 1.0, %v2668_v18 }
 0x261   :  { %v2591_v51 = vpop.eup %2590  ;;  %v1795_v10 = vsub.f32 0.0, %v1779_v0  ;;  %v1938_v30 = vmul.f32 0.6931472, %v2589_v12  ;;  %v1240_v62 = vadd.f32 %v1239_v28, %v1238_v1  ;;  %v915_v38 = vmax.f32 %v899_v34, 0.0  ;;  %v1155_v34 = vpop.xlane.xlu1 %1154 }
 0x262   :  { %v1945_v33 = vadd.f32 1.0, %v2591_v51  ;;  %v1948_v42 = vmul.f32 -0.5, %v2591_v51  ;;  %v1983_v43 = vadd.f32 %v1935_v7, %v1759_v26  ;;  %v914_v61 = vmax.f32 %v898_v56, 0.0  ;;  %v1157_v29 = vpop.xlane.xlu2 %1156 }
 0x263   :  { %v1826_v58 = vmul.f32 1.442695, %v1795_v10  ;;  %v1941_v39 = vmul.f32 %v4577_v4, %v1940_v27  ;;  %v1241_v22 = vsel %vm1223_vm8, %v2242_v20, 0.0  ;;  %v1171_v3 = vsub.f32 %v915_v38, %v1151_v50 }
 0x264   :  { %2594 = vlog2.f32 %v1945_v33  ;;  %v1949_v37 = vadd.f32 1.0, %v1948_v42  ;;  %v1169_v48 = vsub.f32 %v4575_v57, %v1147_v53  ;;  %v900_v40 = vsub.f32 1.0, %v4591_v21  ;;  %v883_v16 = vpop.xlane.xlu0 %882 }
 0x265   :  { %2596 = vpow2.f32 %v1826_v58  ;;  %v1170_v17 = vsub.f32 %v914_v61, %v4596_v63  ;;  %v902_v15 = vsub.f32 1.0, %v886_v32  ;;  %v1944_v23 = vsel %vm4624_vm10, %v1941_v39, %v1938_v30 }
 0x266   :  { %v2593_v6 = vpop.eup %2592  ;;  %v1951_v26 = vand.u32 2147483647, %v2591_v51  ;;  %v1242_v49 = vadd.f32 %v1241_v22, %v1240_v62  ;;  %vm1185_vm12 = vcmp.lt.f32.partialorder %v1169_v48, 0.0  ;;  %v1950_v46 = vmul.f32 %v2591_v51, %v1949_v37 }
 0x267   :  { %vm1186_vm13 = vcmp.lt.f32.partialorder %v1170_v17, 0.0  ;;  %v2243_v4 = vsel %vm1185_vm12, 1.0, %v2668_v18  ;;  %v1954_v47 = vadd.f32 1.0, %v2593_v6  ;;  %vm4642_vm9 = vcmp.lt.f32.partialorder %v1171_v3, 0.0 }
 0x268   :  { %v1243_v21 = vsel %vm1223_vm8, %v2243_v4, 0.0  ;;  %v901_v63 = vsub.f32 1.0, %v883_v16  ;;  %v1957_v54 = vmul.f32 -0.5, %v2593_v6  ;;  %v2244_v25 = vsel %vm1186_vm13, 1.0, %v2668_v18 }
 0x269   :  { %v1244_v41 = vadd.f32 %v1243_v21, %v1242_v49  ;;  %v918_v55 = vmax.f32 %v902_v15, 0.0  ;;  %v1984_v19 = vadd.f32 %v1944_v23, %v1760_v8  ;;  %vm4650_vm14 = vcmp.lt.f32.partialorder %v1951_v26, 0.0004427343 }
 0x26a   :  { %v2595_v57 = vpop.eup %2594  ;;  %v917_v45 = vmax.f32 %v901_v63, 0.0  ;;  %2598 = vlog2.f32 %v1954_v47  ;;  %v2006_v60 = vmul.f32 %v4379_v13, %v1983_v43  ;;  %v1762_v1 = vmax.f32 %v4594_v59, 0.0 }
 0x26b   :  { %v1947_v2 = vmul.f32 0.6931472, %v2595_v57  ;;  %v2597_v12 = vpop.eup %2596  ;;  %v1174_v51 = vsub.f32 %v918_v55, %v1157_v29  ;;  %v1245_v27 = vsel %vm1223_vm8, %v2244_v25, 0.0  ;;  %v2245_v52 = vsel %vm4642_vm9, 1.0, %v2668_v18 }
 0x26c   :  { %v1173_v8 = vsub.f32 %v917_v45, %v1155_v34  ;;  %v1958_v0 = vadd.f32 1.0, %v1957_v54  ;;  %v916_v56 = vmax.f32 %v900_v40, 0.0  ;;  %v1246_v53 = vadd.f32 %v1245_v27, %v1244_v41  ;;  %v1153_v20 = vpop.xlane.xlu0 %1152 }
 0x26d   :  { %v1953_v31 = vsel %vm4650_vm14, %v1950_v46, %v1947_v2  ;;  %v1960_v7 = vand.u32 2147483647, %v2593_v6  ;;  %v1963_v33 = vadd.f32 1.0, %v2597_v12  ;;  %v1966_v32 = vmul.f32 -0.5, %v2597_v12 }
 0x26e   :  { %v1985_v42 = vadd.f32 %v1953_v31, %v1761_v14  ;;  %v2007_v59 = vmul.f32 %v4379_v13, %v1984_v19  ;;  %v2031_v35 = vsel %vm1223_vm8, %v4605_v44, 0.0  ;;  %v1247_v10 = vsel %vm1223_vm8, %v2245_v52, 0.0 }
 0x26f   :  { %vm4668_vm1 = vcmp.lt.f32.partialorder %v1174_v51, 0.0  ;;  %2600 = vlog2.f32 %v1963_v33  ;;  %v2032_v50 = vadd.f32 %v2031_v35, %v4620_v36  ;;  %vm1189_vm15 = vcmp.lt.f32.partialorder %v1173_v8, 0.0 }
 0x270   :  { %v2599_v30 = vpop.eup %2598  ;;  %v1172_v11 = vsub.f32 %v916_v56, %v1153_v20  ;;  %v1959_v14 = vmul.f32 %v2593_v6, %v1958_v0  ;;  %v2033_v62 = vsel %vm1223_vm8, %v2006_v60, 0.0  ;;  %v1248_v38 = vadd.f32 %v1247_v10, %v1246_v53 }
 0x271   :  { %v1956_v43 = vmul.f32 0.6931472, %v2599_v30  ;;  %vm1961_vm2 = vcmp.lt.f32.partialorder %v1960_v7, 0.0004427343  ;;  %v1969_v44 = vand.u32 2147483647, %v2597_v12  ;;  %v2008_v58 = vmul.f32 %v4379_v13, %v1985_v42 }
 0x272   :  { %vm1188_vm0 = vcmp.lt.f32.partialorder %v1172_v11, 0.0  ;;  %v1967_v37 = vadd.f32 1.0, %v1966_v32  ;;  %v2035_v61 = vsel %vm1223_vm8, %v2007_v59, 0.0  ;;  %v2247_v39 = vsel %vm1189_vm15, 1.0, %v2668_v18 }
 0x273   :  { %v2246_v36 = vsel %vm1188_vm0, 1.0, %v2668_v18  ;;  %v1962_v22 = vsel %vm1961_vm2, %v1959_v14, %v1956_v43  ;;  %v2034_v3 = vadd.f32 %v2033_v62, %v2032_v50  ;;  %v2248_v15 = vsel %vm4668_vm1, 1.0, %v2668_v18 }
 0x274   :  { %v1249_v48 = vsel %vm1223_vm8, %v2246_v36, 0.0  ;;  %v1986_v40 = vadd.f32 %v1962_v22, %v1762_v1  ;;  %v1968_v49 = vmul.f32 %v2597_v12, %v1967_v37  ;;  %v1251_v4 = vsel %vm1223_vm8, %v2247_v39, 0.0 }
 0x275   :  { %v2601_v17 = vpop.eup %2600  ;;  %v1250_v6 = vadd.f32 %v1249_v48, %v1248_v38  ;;  %v2036_v23 = vadd.f32 %v2035_v61, %v2034_v3  ;;  %v1763_v16 = vmax.f32 %v4609_v5, 0.0  ;;  %vm1970_vm3 = vcmp.lt.f32.partialorder %v1969_v44, 0.0004427343 }
 0x276   :  { %v1965_v26 = vmul.f32 0.6931472, %v2601_v17  ;;  %v2009_v46 = vmul.f32 %v4379_v13, %v1986_v40  ;;  %v2037_v47 = vsel %vm1223_vm8, %v2008_v58, 0.0  ;;  %v1253_v21 = vsel %vm1223_vm8, %v2248_v15, 0.0 }
 0x277   :  { %v1252_v57 = vadd.f32 %v1251_v4, %v1250_v6  ;;  %v2038_v2 = vadd.f32 %v2037_v47, %v2036_v23  ;;  %vm336_vm4 = vcmask 0   ;;  %v2673_v0 = vmov 128.0  }
 0x278   :  { %v1971_v24 = vsel %vm1970_vm3, %v1968_v49, %v1965_v26  ;;  %v2039_v29 = vsel %vm1223_vm8, %v2009_v46, 0.0  ;;  %338 = vst.msk [vmem:[#allocation7] sm:$0x1] %vm336_vm4, %v2668_v18  ;;  %2602 = vrcp.f32 %v2673_v0 }
 0x279   :  { %v1987_v63 = vadd.f32 %v1971_v24, %v1763_v16  ;;  %v1254_v54 = vadd.f32 %v1253_v21, %v1252_v57  ;;  %v2040_v41 = vadd.f32 %v2039_v29, %v2038_v2  ;;  %337 = vst.msk [vmem:[#allocation6] sm:$0x1] %vm336_vm4, %v2668_v18 }
 0x27b   :  { %v2010_v25 = vmul.f32 %v4379_v13, %v1987_v63  ;;  %1255 = vadd.xlane.f32.xlu0 %v1254_v54 }
 0x27d   :  { %v2041_v55 = vsel %vm1223_vm8, %v2010_v25, 0.0 }
 0x27e   :  { %v2042_v19 = vadd.f32 %v2041_v55, %v2040_v41  ;;  %v2603_v7 = vpop.eup %2602 }
 0x27f   :  { %v1158_v33 = vld [vmem:[#allocation7] sm:$0x1]  ;;  %v2108_v32 = vmul.f32 128.0, %v2603_v7  ;;  %vm2112_vm8 = vweird.f32 %v2603_v7 }
 0x280   :  { %2043 = vadd.xlane.f32.xlu1 %v2042_v19  ;;  %v2011_v28 = vld [vmem:[#allocation6] sm:$0x1] }
 0x281   :  { %v2109_v20 = vsub.f32 1.0, %v2108_v32 }
 0x283   :  { %v2110_v14 = vmul.f32 %v2603_v7, %v2109_v20 }
 0x285   :  { %v2111_v38 = vadd.f32 %v2603_v7, %v2110_v14 }
 0x287   :  { %v2113_v37 = vsel %vm2112_vm8, %v2603_v7, %v2111_v38 }
 0x28d   :  { %v2098_v56 = vpop.xlane.xlu2 %2097 }
 0x28e   :  { %v2099_v53 = vrot.slane %v2098_v56, 4 }
 0x290   :  { %v2100_v42 = vadd.f32 %v2099_v53, %v2098_v56 }
 0x292   :  { %v2101_v10 = vrot.slane %v2100_v42, 2 }
 0x294   :  { %v2102_v11 = vadd.f32 %v2101_v10, %v2100_v42 }
 0x296   :  { %v2103_v62 = vrot.slane %v2102_v11, 1 }
 0x298   :  { %v2104_v44 = vadd.f32 %v2103_v62, %v2102_v11 }
 0x2ee   :  { %v1256_v5 = vpop.xlane.xlu0 %1255 }
 0x2ef   :  { %v1257_v9 = vrot.slane %v1256_v5, 4 }
 0x2f1   :  { %v1258_v45 = vadd.f32 %v1257_v9, %v1256_v5 }
 0x2f3   :  { %v2044_v12 = vpop.xlane.xlu1 %2043  ;;  %v1259_v60 = vrot.slane %v1258_v45, 2 }
 0x2f4   :  { %v2045_v31 = vrot.slane %v2044_v12, 4 }
 0x2f5   :  { %v1260_v13 = vadd.f32 %v1259_v60, %v1258_v45 }
 0x2f6   :  { %v2046_v1 = vadd.f32 %v2045_v31, %v2044_v12 }
 0x2f7   :  { %v1261_v34 = vrot.slane %v1260_v13, 1 }
 0x2f8   :  { %v2047_v51 = vrot.slane %v2046_v1, 2 }
 0x2f9   :  { %v1262_v27 = vadd.f32 %v1261_v34, %v1260_v13 }
 0x2fa   :  { %v2048_v52 = vadd.f32 %v2047_v51, %v2046_v1 }
 0x2fb   :  { %2313 = vpush %v1262_v27 }
 0x2fc   :  { %v2049_v18 = vrot.slane %v2048_v52, 1 }
 0x2fe   :  { %v2050_v8 = vadd.f32 %v2049_v18, %v2048_v52 }
 0x300   :  { %2315 = vpush %v2050_v8 }
 0x32c   :  { %s2314_s3 = spop %2313 }
 0x32d   :  { %v1264_v59 = vstv %s2314_s3 }
 0x32e   :  { %v1265_v35 = vadd.f32 %v1264_v59, %v1158_v33 }
 0x330   :  { %1267 = vst.msk [vmem:[#allocation7] sm:$0x1] %vm336_vm4, %v1265_v35 }
 0x331   :  { %s2316_s27 = spop %2315 }
 0x332   :  { %v2052_v50 = vstv %s2316_s27 }
 0x333   :  { %v2053_v30 = vadd.f32 %v2052_v50, %v2011_v28 }
 0x335   :  { %2054 = vst.msk [vmem:[#allocation6] sm:$0x1] %vm336_vm4, %v2053_v30 }
 0x337   :  { %v2116_v58 = vld [vmem:[#allocation7] sm:$0x1] }
 0x33c   :  { %v2093_v43 = vld [vmem:[#allocation6] sm:$0x1] }
 0x33d   :  { %2317 = vpush %v2093_v43 }
 0x33e   :  { %2319 = vpush %v2104_v44 }
 0x33f   :  { %2321 = vpush %v2113_v37 }
 0x340   :  { %2323 = vpush %v2116_v58 }
 0x36e   :  { %s2318_s28 = spop %2317 }
 0x36f   :  { %s2320_s29 = spop %2319 }
 0x370   :  { %s2106_s30 = sadd.f32 %s2320_s29, %s2318_s28  ;;  %s2322_s5 = spop %2321 }
 0x371   :  { %s2324_s6 = spop %2323 }
 0x372   :  { %s2115_s7 = smul.f32 %s2322_s5, %s2106_s30 }
 0x373   :  { %s2118_s10 = smul.f32 100.0, %s2324_s6 }
 0x374   :  { %v2128_v61 = vstv %s2115_s7 }
 0x375   :  { %2129 = vst [vmem:[#allocation10 + $0x2] sm:$0x1] %v2128_v61  ;;  %s2127_s14 = smul.f32 %s2322_s5, %s2118_s10 }
 0x377   :  { %v2130_v39 = vstv %s2127_s14 }
 0x378   :  { %2131 = vst [vmem:[#allocation10 + $0x3] sm:$0x1] %v2130_v39 }
 0x379   :  { %2155 = dma.vmem_to_hbm [thread:$0]  %s2151_s9, 128, %s2153_s13, [#allocation11]  }
 0x37a   :  { %2662 = dma.done.wait [#allocation9], 2048  }
 0x37b   :  { %2663 = vsyncadd [#allocation9], 4294965248 }
 0x37c   :  { %2664 = dma.done.wait [#allocation11], 128  }
 0x37d   :  { %2665 = vsyncadd [#allocation11], 4294967168 }
 0x37e   :  { %2164 = vsyncpa [#allocation9], 1 }
 0x37f   :  { %2165 = vsyncpa [#allocation11], 1 }

</bundles_post_ra>
